<compile_context>
chip_gen: v6e
topology: v6e:2x2x1
jax: 0.10.0
libtpu: 0.0.40
codegen_flags: <defaults>
</compile_context>

<pallas_src>
import functools

import jax
import jax.numpy as jnp
from jax.experimental import pallas as pl
from jax.experimental.pallas import tpu as pltpu

N_CLASS = 11
HIDDEN = 32
LANE = 128
B_PAD = 8           # batch zero-padded to one full sublane tile
T_STEPS = 8         # sequence length after the CNN (W=16 -> pool1 -> 8)

# ---- weight-slab row layout (every segment starts at a multiple of 8 rows) ----
_W1_OFF, _W1_ROWS = 0, 64        # 3 x (64, 256)   conv1 Toeplitz (per kernel row)
_W2_OFF, _W2_ROWS = 192, 128     # 3 x (128, 256)  conv2
_W3_OFF, _W3_ROWS = 576, 256     # 3 x (256, 256)  conv3
_B1_OFF = 1344                   # (1, 256) bias rows (each padded to 8 rows)
_B2_OFF = 1352
_B3_OFF = 1360
_WIH_OFF = 1368                  # (32, 256)  [fwd i|f|g|o | bwd i|f|g|o]
_BIH_OFF = 1400                  # (1, 256)   b_ih + b_hh, both directions
_WHH_OFF = 1408                  # (64, 256)  block-diagonal fwd/bwd recurrent W
_FCW_OFF = 1472                  # (64, 128)  in columns 0:128
_FCB_OFF = 1536                  # (1, 128)
_SLAB_ROWS = 1544


# ---------------------------------------------------------------------------
# The single fused kernel: CNN -> BiLSTM -> Linear.
# ---------------------------------------------------------------------------
def _crann_kernel(x_ref, w_ref, o_ref, scr2, scr3, rec_ref):
    f32 = jnp.float32
    B = B_PAD
    T = T_STEPS

    def rows(a, n):                      # static row-range read of the slab
        return w_ref[a:a + n, :]

    # ----- CNN front-end: rows=(h, b), lanes=(w, c); 3 matmuls per conv -----
    def conv(xwin, w_off, w_rows, b_off, h, k):
        acc = rows(b_off, 1)                              # (1, 256) bias row
        for ky in range(3):
            a = xwin(ky).reshape(h * B, k)                # leading-dim window
            acc = acc + jnp.dot(a, rows(w_off + ky * w_rows, w_rows),
                                preferred_element_type=f32)
        return jnp.maximum(acc, 0.0)                      # bias + ReLU fused

    # conv1: input pre-padded on the host to (18, 8, 64)  [(h halo), b, (w,c)]
    out1 = conv(lambda ky: x_ref[ky:ky + 16, :, :],
                _W1_OFF, _W1_ROWS, _B1_OFF, 16, 64)       # (128, 256)

    # pool1 (2,2): H via leading-dim max; W via parity-major conv1 columns
    # (even w in lanes 0:128, odd w in lanes 128:256) -> one aligned-tile max.
    v1 = out1.reshape(8, 2, B, 256)
    h1 = jnp.maximum(v1[:, 0], v1[:, 1])                  # (8, 8, 256)
    p1 = jnp.maximum(h1[:, :, 0:128], h1[:, :, 128:256])  # (8, 8, 128)

    # conv2: halo lives in a zero-edged VMEM scratch plane (no concat padding).
    scr2[0:1, :, :] = jnp.zeros((1, B, 128), f32)
    scr2[9:10, :, :] = jnp.zeros((1, B, 128), f32)
    scr2[1:9, :, :] = p1
    out2 = conv(lambda ky: scr2[ky:ky + 8, :, :],
                _W2_OFF, _W2_ROWS, _B2_OFF, 8, 128)       # (64, 256)

    # pool2 (2,1)
    v2 = out2.reshape(4, 2, B, 256)
    p2 = jnp.maximum(v2[:, 0], v2[:, 1])                  # (4, 8, 256)

    # conv3
    scr3[0:1, :, :] = jnp.zeros((1, B, 256), f32)
    scr3[5:6, :, :] = jnp.zeros((1, B, 256), f32)
    scr3[1:5, :, :] = p2
    out3 = conv(lambda ky: scr3[ky:ky + 4, :, :],
                _W3_OFF, _W3_ROWS, _B3_OFF, 4, 256)       # (32, 256)

    # pool3 (4,1) -> height 1.  feat lanes are (t, c), c minor.
    v3 = out3.reshape(4, B, 256)
    feat = jnp.maximum(jnp.maximum(v3[0], v3[1]),
                       jnp.maximum(v3[2], v3[3]))         # (8, 256) = (b, (t,c))

    # ----- BiLSTM: hoisted input projections (independent of the recurrence) -----
    wih = rows(_WIH_OFF, 32)                              # (32, 256)
    bih = rows(_BIH_OFF, 1)                               # (1, 256)
    gxf, gxb = [], []
    for t in range(T):
        g = jnp.dot(feat[:, t * 32:(t + 1) * 32], wih,
                    preferred_element_type=f32) + bih     # (8, 256)
        gxf.append(g[:, 0:128])
        gxb.append(g[:, 128:256])

    whh = rows(_WHH_OFF, 64)                              # (64, 256) block-diag

    def cell(g, c):
        # Gates stay packed [i|f|g|o] in one 128-lane block: 2 EUP ops + slices.
        sg = jax.nn.sigmoid(g)
        tg = jnp.tanh(g)
        c_new = sg[:, 32:64] * c + sg[:, 0:32] * tg[:, 64:96]
        h_new = sg[:, 96:128] * jnp.tanh(c_new)
        return h_new, c_new

    z = jnp.zeros((B, HIDDEN), f32)
    h_f, c_f, h_b, c_b = z, z, z, z
    # Fully unrolled recurrence; fwd(t=s) and bwd(t=T-1-s) share ONE per-step
    # recurrent GEMM via the block-diagonal whh.
    for s in range(T):
        rec = jnp.dot(jnp.concatenate([h_f, h_b], axis=1), whh,
                      preferred_element_type=f32)         # (8, 256)
        h_f, c_f = cell(gxf[s] + rec[:, 0:128], c_f)
        tb = T - 1 - s
        h_b, c_b = cell(gxb[tb] + rec[:, 128:256], c_b)
        # Per-step writeback into the FC-input scratch (overlaps with compute).
        rec_ref[s * B:(s + 1) * B, 0:HIDDEN] = h_f
        rec_ref[tb * B:(tb + 1) * B, HIDDEN:2 * HIDDEN] = h_b

    # ----- Linear head fused into the epilogue; only HBM write is (64, 128) -----
    fcw = w_ref[_FCW_OFF:_FCW_OFF + 64, 0:128]
    fcb = w_ref[_FCB_OFF:_FCB_OFF + 1, 0:128]
    o_ref[...] = jnp.dot(rec_ref[...], fcw, preferred_element_type=f32) + fcb


# ---------------------------------------------------------------------------
# Host-side weight prep (tiny; constant-folded under jit).
# ---------------------------------------------------------------------------
def _toeplitz(conv_w, ky, w_in, w_out_order, cin, cout):
    """Banded weight (w_in*cin, len(order)*cout) for one conv kernel row: the
    3 W-taps and the zero padding along W are folded into the matmul."""
    zeros = jnp.zeros((cin, cout), jnp.float32)
    cols = []
    for wo in w_out_order:
        blocks = []
        for wi in range(w_in):
            kx = wi - wo + 1
            blocks.append(jnp.transpose(conv_w[:, :, ky, kx]).astype(jnp.float32)
                          if 0 <= kx <= 2 else zeros)
        cols.append(jnp.concatenate(blocks, axis=0))
    return jnp.concatenate(cols, axis=1)


def _bias_row(vec256):
    """(256,) vector -> (8, 256) segment with the bias in row 0."""
    return jnp.pad(vec256.astype(jnp.float32)[None, :], ((0, 7), (0, 0)))


def _prep_weight_slab(params):
    f32 = jnp.float32
    parity = list(range(0, 16, 2)) + list(range(1, 16, 2))   # pool1 W-max trick
    segs = []
    for ky in range(3):
        segs.append(_toeplitz(params["conv1_w"], ky, 16, parity, 4, 16))
    for ky in range(3):
        segs.append(_toeplitz(params["conv2_w"], ky, 8, list(range(8)), 16, 32))
    for ky in range(3):
        segs.append(_toeplitz(params["conv3_w"], ky, 8, list(range(8)), 32, 32))
    segs.append(_bias_row(jnp.tile(params["conv1_b"], 16)))
    segs.append(_bias_row(jnp.tile(params["conv2_b"], 8)))
    segs.append(_bias_row(jnp.tile(params["conv3_b"], 8)))

    # LSTM input projection, gates packed [i|f|g|o] per direction (PyTorch order).
    wih = jnp.concatenate([params["lstm_fwd_weight_ih"].T,
                           params["lstm_bwd_weight_ih"].T], axis=1).astype(f32)
    segs.append(wih)                                                   # (32, 256)
    bih = jnp.concatenate(
        [params["lstm_fwd_bias_ih"] + params["lstm_fwd_bias_hh"],
         params["lstm_bwd_bias_ih"] + params["lstm_bwd_bias_hh"]])
    segs.append(_bias_row(bih))

    # Block-diagonal recurrent weight: rows 0:32 -> fwd gates, 32:64 -> bwd gates.
    whh = jnp.zeros((64, 256), f32)
    whh = whh.at[0:32, 0:128].set(params["lstm_fwd_weight_hh"].T.astype(f32))
    whh = whh.at[32:64, 128:256].set(params["lstm_bwd_weight_hh"].T.astype(f32))
    segs.append(whh)

    fcw = jnp.pad(params["fc_w"].T.astype(f32), ((0, 0), (0, LANE - N_CLASS)))
    segs.append(jnp.pad(fcw, ((0, 0), (0, 128))))                      # (64, 256)
    fcb = jnp.pad(params["fc_b"].astype(f32), (0, LANE - N_CLASS))
    segs.append(_bias_row(jnp.pad(fcb, (0, 128))))

    slab = jnp.concatenate(segs, axis=0)
    assert slab.shape == (_SLAB_ROWS, 256), slab.shape
    return slab


def crann_forward(params, x):
    """x: (B, Cin, H, W) NCHW, same convention as the PyTorch module."""
    f32 = jnp.float32
    Bx, Cin, Hin, Win = x.shape
    assert (Cin, Hin, Win) == (4, 16, 16) and Bx <= B_PAD, x.shape
    assert Hin // 2 // 2 // 4 == 1, "the height of the conv must be 1"
    T = Win // 2
    assert T == T_STEPS

    wslab = _prep_weight_slab(params)
    # NCHW -> rows=(h, b), lanes=(w, c); batch zero-padded to a full sublane
    # tile and H zero-padded by 1 for the conv1 halo (host-side layout only).
    x_op = jnp.pad(
        jnp.transpose(x.astype(f32), (2, 0, 3, 1)).reshape(Hin, Bx, Win * Cin),
        ((1, 1), (0, B_PAD - Bx), (0, 0)))                            # (18, 8, 64)

    logits = pl.pallas_call(
        _crann_kernel,
        out_shape=jax.ShapeDtypeStruct((T * B_PAD, LANE), f32),
        grid=(1,),
        in_specs=[pl.BlockSpec(x_op.shape, lambda i: (0, 0, 0)),
                  pl.BlockSpec(wslab.shape, lambda i: (0, 0))],
        out_specs=pl.BlockSpec((T * B_PAD, LANE), lambda i: (0, 0)),
        scratch_shapes=[pltpu.VMEM((10, B_PAD, 128), f32),     # conv2 halo plane
                        pltpu.VMEM((6, B_PAD, 256), f32),      # conv3 halo plane
                        pltpu.VMEM((T * B_PAD, 2 * HIDDEN), f32)],  # FC input
        compiler_params=pltpu.CompilerParams(
            dimension_semantics=("arbitrary",),
            vmem_limit_bytes=16 * 1024 * 1024),
    )(x_op, wslab)

    # Strip lane/batch padding and restore (T, B, n_class) like the module.
    return logits.reshape(T, B_PAD, LANE)[:, :Bx, :N_CLASS]
    # TODO(synk): some CRANN SeqNets variants apply log_softmax before CTC; raw logits here.


# ---------------------------------------------------------------------------
# Deterministic synthetic parameters (PyTorch layouts; no checkpoint load).
# ---------------------------------------------------------------------------
def init_params(key, n_class=N_CLASS, hidden=HIDDEN):
    ks = jax.random.split(key, 20)
    it = iter(ks)

    def w(shape, scale=0.1):
        return (scale * jax.random.normal(next(it), shape)).astype(jnp.float32)

    H = hidden
    return {
        "conv1_w": w((16, 4, 3, 3)), "conv1_b": w((16,)),
        "conv2_w": w((32, 16, 3, 3)), "conv2_b": w((32,)),
        "conv3_w": w((32, 32, 3, 3)), "conv3_b": w((32,)),
        # PyTorch nn.LSTM layouts: weight_ih (4H, C), weight_hh (4H, H), two biases.
        "lstm_fwd_weight_ih": w((4 * H, 32)), "lstm_fwd_weight_hh": w((4 * H, H)),
        "lstm_fwd_bias_ih": w((4 * H,)), "lstm_fwd_bias_hh": w((4 * H,)),
        "lstm_bwd_weight_ih": w((4 * H, 32)), "lstm_bwd_weight_hh": w((4 * H, H)),
        "lstm_bwd_bias_ih": w((4 * H,)), "lstm_bwd_bias_hh": w((4 * H,)),
        # nn.Linear layout: (out, in) + (out,)
        "fc_w": w((n_class, 2 * H)), "fc_b": w((n_class,)),
    }


if __name__ == "__main__":
    key = jax.random.PRNGKey(0)
    pkey, xkey = jax.random.split(key)
    params = init_params(pkey)
    x = jax.random.normal(xkey, (2, 4, 16, 16), dtype=jnp.float32)  # NCHW input

    fwd = jax.jit(functools.partial(crann_forward, params))
    out = jax.block_until_ready(fwd(x))

    assert out.shape == (T_STEPS, 2, N_CLASS), out.shape
    assert out.dtype == jnp.float32
    assert bool(jnp.all(jnp.isfinite(out)))
    print("KERNEL_OK")
</pallas_src>

<mosaic_0001>
module attributes {stable_mosaic.version = 11 : i64} {
  func.func @_crann_kernel(%arg0: i32, %arg1: memref<18x8x64xf32, #tpu.memory_space<vmem>>, %arg2: memref<1544x256xf32, #tpu.memory_space<vmem>>, %arg3: memref<64x128xf32, #tpu.memory_space<vmem>>, %arg4: memref<10x8x128xf32, #tpu.memory_space<vmem>>, %arg5: memref<6x8x256xf32, #tpu.memory_space<vmem>>, %arg6: memref<64x64xf32, #tpu.memory_space<vmem>>) attributes {dimension_semantics = [#tpu.dimension_semantics<arbitrary>], iteration_bounds = array<i64: 1>, scalar_prefetch = 0 : i64, scratch_operands = 3 : i64, tpu.core_type = #tpu.core_type<tc>, window_params = [{pipeline_mode = #tpu.pipeline_mode<synchronous>, transform_indices = @transform_0, window_bounds = array<i64: 18, 8, 64>}, {pipeline_mode = #tpu.pipeline_mode<synchronous>, transform_indices = @transform_1, window_bounds = array<i64: 1544, 256>}, {pipeline_mode = #tpu.pipeline_mode<synchronous>, transform_indices = @transform_2, window_bounds = array<i64: 64, 128>}]} {
    %c1344 = arith.constant 1344 : index
    %c0 = arith.constant 0 : index
    %0 = vector.load %arg2[%c1344, %c0] : memref<1544x256xf32, #tpu.memory_space<vmem>>, vector<1x256xf32>
    %c0_0 = arith.constant 0 : index
    %c0_1 = arith.constant 0 : index
    %c0_2 = arith.constant 0 : index
    %1 = vector.load %arg1[%c0_0, %c0_1, %c0_2] : memref<18x8x64xf32, #tpu.memory_space<vmem>>, vector<16x8x64xf32>
    %2 = vector.shape_cast %1 : vector<16x8x64xf32> to vector<128x64xf32>
    %c0_3 = arith.constant 0 : index
    %c0_4 = arith.constant 0 : index
    %3 = vector.load %arg2[%c0_3, %c0_4] : memref<1544x256xf32, #tpu.memory_space<vmem>>, vector<64x256xf32>
    %cst = arith.constant dense<0.000000e+00> : vector<128x256xf32>
    %4 = tpu.matmul %2, %3, %cst {dimension_numbers = #tpu.dot_dimension_numbers<[1], [0], [0], [1], [0, 0, 1, 1], [], []>} : vector<128x64xf32>, vector<64x256xf32>, vector<128x256xf32> -> vector<128x256xf32>
    %5 = vector.broadcast %0 : vector<1x256xf32> to vector<128x256xf32>
    %6 = arith.addf %5, %4 : vector<128x256xf32>
    %c1 = arith.constant 1 : index
    %c0_5 = arith.constant 0 : index
    %c0_6 = arith.constant 0 : index
    %7 = vector.load %arg1[%c1, %c0_5, %c0_6] : memref<18x8x64xf32, #tpu.memory_space<vmem>>, vector<16x8x64xf32>
    %8 = vector.shape_cast %7 : vector<16x8x64xf32> to vector<128x64xf32>
    %c64 = arith.constant 64 : index
    %c0_7 = arith.constant 0 : index
    %9 = vector.load %arg2[%c64, %c0_7] : memref<1544x256xf32, #tpu.memory_space<vmem>>, vector<64x256xf32>
    %cst_8 = arith.constant dense<0.000000e+00> : vector<128x256xf32>
    %10 = tpu.matmul %8, %9, %cst_8 {dimension_numbers = #tpu.dot_dimension_numbers<[1], [0], [0], [1], [0, 0, 1, 1], [], []>} : vector<128x64xf32>, vector<64x256xf32>, vector<128x256xf32> -> vector<128x256xf32>
    %11 = arith.addf %6, %10 : vector<128x256xf32>
    %c2 = arith.constant 2 : index
    %c0_9 = arith.constant 0 : index
    %c0_10 = arith.constant 0 : index
    %12 = vector.load %arg1[%c2, %c0_9, %c0_10] : memref<18x8x64xf32, #tpu.memory_space<vmem>>, vector<16x8x64xf32>
    %13 = vector.shape_cast %12 : vector<16x8x64xf32> to vector<128x64xf32>
    %c128 = arith.constant 128 : index
    %c0_11 = arith.constant 0 : index
    %14 = vector.load %arg2[%c128, %c0_11] : memref<1544x256xf32, #tpu.memory_space<vmem>>, vector<64x256xf32>
    %cst_12 = arith.constant dense<0.000000e+00> : vector<128x256xf32>
    %15 = tpu.matmul %13, %14, %cst_12 {dimension_numbers = #tpu.dot_dimension_numbers<[1], [0], [0], [1], [0, 0, 1, 1], [], []>} : vector<128x64xf32>, vector<64x256xf32>, vector<128x256xf32> -> vector<128x256xf32>
    %16 = arith.addf %11, %15 : vector<128x256xf32>
    %cst_13 = arith.constant 0.000000e+00 : f32
    %17 = vector.broadcast %cst_13 : f32 to vector<128x256xf32>
    %18 = arith.maximumf %16, %17 : vector<128x256xf32>
    %19 = vector.shape_cast %18 : vector<128x256xf32> to vector<8x2x8x256xf32>
    %20 = vector.extract_strided_slice %19 {offsets = [0, 0, 0, 0], sizes = [8, 1, 8, 256], strides = [1, 1, 1, 1]} : vector<8x2x8x256xf32> to vector<8x1x8x256xf32>
    %21 = vector.shape_cast %20 : vector<8x1x8x256xf32> to vector<8x8x256xf32>
    %22 = vector.extract_strided_slice %19 {offsets = [0, 1, 0, 0], sizes = [8, 1, 8, 256], strides = [1, 1, 1, 1]} : vector<8x2x8x256xf32> to vector<8x1x8x256xf32>
    %23 = vector.shape_cast %22 : vector<8x1x8x256xf32> to vector<8x8x256xf32>
    %24 = arith.maximumf %21, %23 : vector<8x8x256xf32>
    %25 = vector.extract_strided_slice %24 {offsets = [0, 0, 0], sizes = [8, 8, 128], strides = [1, 1, 1]} : vector<8x8x256xf32> to vector<8x8x128xf32>
    %26 = vector.extract_strided_slice %24 {offsets = [0, 0, 128], sizes = [8, 8, 128], strides = [1, 1, 1]} : vector<8x8x256xf32> to vector<8x8x128xf32>
    %27 = arith.maximumf %25, %26 : vector<8x8x128xf32>
    %cst_14 = arith.constant 0.000000e+00 : f32
    %28 = vector.broadcast %cst_14 : f32 to vector<1x8x128xf32>
    %c0_15 = arith.constant 0 : index
    %c0_16 = arith.constant 0 : index
    %c0_17 = arith.constant 0 : index
    %29 = vector.load %arg4[%c0_15, %c0_16, %c0_17] : memref<10x8x128xf32, #tpu.memory_space<vmem>>, vector<1x8x128xf32>
    tpu.vector_store %arg4[%c0_15, %c0_16, %c0_17], %28 {strides = array<i32>} : memref<10x8x128xf32, #tpu.memory_space<vmem>>, vector<1x8x128xf32>,
    %cst_18 = arith.constant 0.000000e+00 : f32
    %30 = vector.broadcast %cst_18 : f32 to vector<1x8x128xf32>
    %c9 = arith.constant 9 : index
    %c0_19 = arith.constant 0 : index
    %c0_20 = arith.constant 0 : index
    %31 = vector.load %arg4[%c9, %c0_19, %c0_20] : memref<10x8x128xf32, #tpu.memory_space<vmem>>, vector<1x8x128xf32>
    tpu.vector_store %arg4[%c9, %c0_19, %c0_20], %30 {strides = array<i32>} : memref<10x8x128xf32, #tpu.memory_space<vmem>>, vector<1x8x128xf32>,
    %c1_21 = arith.constant 1 : index
    %c0_22 = arith.constant 0 : index
    %c0_23 = arith.constant 0 : index
    %32 = vector.load %arg4[%c1_21, %c0_22, %c0_23] : memref<10x8x128xf32, #tpu.memory_space<vmem>>, vector<8x8x128xf32>
    tpu.vector_store %arg4[%c1_21, %c0_22, %c0_23], %27 {strides = array<i32>} : memref<10x8x128xf32, #tpu.memory_space<vmem>>, vector<8x8x128xf32>,
    %c1352 = arith.constant 1352 : index
    %c0_24 = arith.constant 0 : index
    %33 = vector.load %arg2[%c1352, %c0_24] : memref<1544x256xf32, #tpu.memory_space<vmem>>, vector<1x256xf32>
    %c0_25 = arith.constant 0 : index
    %c0_26 = arith.constant 0 : index
    %c0_27 = arith.constant 0 : index
    %34 = vector.load %arg4[%c0_25, %c0_26, %c0_27] : memref<10x8x128xf32, #tpu.memory_space<vmem>>, vector<8x8x128xf32>
    %35 = vector.shape_cast %34 : vector<8x8x128xf32> to vector<64x128xf32>
    %c192 = arith.constant 192 : index
    %c0_28 = arith.constant 0 : index
    %36 = vector.load %arg2[%c192, %c0_28] : memref<1544x256xf32, #tpu.memory_space<vmem>>, vector<128x256xf32>
    %cst_29 = arith.constant dense<0.000000e+00> : vector<64x256xf32>
    %37 = tpu.matmul %35, %36, %cst_29 {dimension_numbers = #tpu.dot_dimension_numbers<[1], [0], [0], [1], [0, 0, 1, 1], [], []>} : vector<64x128xf32>, vector<128x256xf32>, vector<64x256xf32> -> vector<64x256xf32>
    %38 = vector.broadcast %33 : vector<1x256xf32> to vector<64x256xf32>
    %39 = arith.addf %38, %37 : vector<64x256xf32>
    %c1_30 = arith.constant 1 : index
    %c0_31 = arith.constant 0 : index
    %c0_32 = arith.constant 0 : index
    %40 = vector.load %arg4[%c1_30, %c0_31, %c0_32] : memref<10x8x128xf32, #tpu.memory_space<vmem>>, vector<8x8x128xf32>
    %41 = vector.shape_cast %40 : vector<8x8x128xf32> to vector<64x128xf32>
    %c320 = arith.constant 320 : index
    %c0_33 = arith.constant 0 : index
    %42 = vector.load %arg2[%c320, %c0_33] : memref<1544x256xf32, #tpu.memory_space<vmem>>, vector<128x256xf32>
    %cst_34 = arith.constant dense<0.000000e+00> : vector<64x256xf32>
    %43 = tpu.matmul %41, %42, %cst_34 {dimension_numbers = #tpu.dot_dimension_numbers<[1], [0], [0], [1], [0, 0, 1, 1], [], []>} : vector<64x128xf32>, vector<128x256xf32>, vector<64x256xf32> -> vector<64x256xf32>
    %44 = arith.addf %39, %43 : vector<64x256xf32>
    %c2_35 = arith.constant 2 : index
    %c0_36 = arith.constant 0 : index
    %c0_37 = arith.constant 0 : index
    %45 = vector.load %arg4[%c2_35, %c0_36, %c0_37] : memref<10x8x128xf32, #tpu.memory_space<vmem>>, vector<8x8x128xf32>
    %46 = vector.shape_cast %45 : vector<8x8x128xf32> to vector<64x128xf32>
    %c448 = arith.constant 448 : index
    %c0_38 = arith.constant 0 : index
    %47 = vector.load %arg2[%c448, %c0_38] : memref<1544x256xf32, #tpu.memory_space<vmem>>, vector<128x256xf32>
    %cst_39 = arith.constant dense<0.000000e+00> : vector<64x256xf32>
    %48 = tpu.matmul %46, %47, %cst_39 {dimension_numbers = #tpu.dot_dimension_numbers<[1], [0], [0], [1], [0, 0, 1, 1], [], []>} : vector<64x128xf32>, vector<128x256xf32>, vector<64x256xf32> -> vector<64x256xf32>
    %49 = arith.addf %44, %48 : vector<64x256xf32>
    %cst_40 = arith.constant 0.000000e+00 : f32
    %50 = vector.broadcast %cst_40 : f32 to vector<64x256xf32>
    %51 = arith.maximumf %49, %50 : vector<64x256xf32>
    %52 = vector.shape_cast %51 : vector<64x256xf32> to vector<4x2x8x256xf32>
    %53 = vector.extract_strided_slice %52 {offsets = [0, 0, 0, 0], sizes = [4, 1, 8, 256], strides = [1, 1, 1, 1]} : vector<4x2x8x256xf32> to vector<4x1x8x256xf32>
    %54 = vector.shape_cast %53 : vector<4x1x8x256xf32> to vector<4x8x256xf32>
    %55 = vector.extract_strided_slice %52 {offsets = [0, 1, 0, 0], sizes = [4, 1, 8, 256], strides = [1, 1, 1, 1]} : vector<4x2x8x256xf32> to vector<4x1x8x256xf32>
    %56 = vector.shape_cast %55 : vector<4x1x8x256xf32> to vector<4x8x256xf32>
    %57 = arith.maximumf %54, %56 : vector<4x8x256xf32>
    %cst_41 = arith.constant 0.000000e+00 : f32
    %58 = vector.broadcast %cst_41 : f32 to vector<1x8x256xf32>
    %c0_42 = arith.constant 0 : index
    %c0_43 = arith.constant 0 : index
    %c0_44 = arith.constant 0 : index
    %59 = vector.load %arg5[%c0_42, %c0_43, %c0_44] : memref<6x8x256xf32, #tpu.memory_space<vmem>>, vector<1x8x256xf32>
    tpu.vector_store %arg5[%c0_42, %c0_43, %c0_44], %58 {strides = array<i32>} : memref<6x8x256xf32, #tpu.memory_space<vmem>>, vector<1x8x256xf32>,
    %cst_45 = arith.constant 0.000000e+00 : f32
    %60 = vector.broadcast %cst_45 : f32 to vector<1x8x256xf32>
    %c5 = arith.constant 5 : index
    %c0_46 = arith.constant 0 : index
    %c0_47 = arith.constant 0 : index
    %61 = vector.load %arg5[%c5, %c0_46, %c0_47] : memref<6x8x256xf32, #tpu.memory_space<vmem>>, vector<1x8x256xf32>
    tpu.vector_store %arg5[%c5, %c0_46, %c0_47], %60 {strides = array<i32>} : memref<6x8x256xf32, #tpu.memory_space<vmem>>, vector<1x8x256xf32>,
    %c1_48 = arith.constant 1 : index
    %c0_49 = arith.constant 0 : index
    %c0_50 = arith.constant 0 : index
    %62 = vector.load %arg5[%c1_48, %c0_49, %c0_50] : memref<6x8x256xf32, #tpu.memory_space<vmem>>, vector<4x8x256xf32>
    tpu.vector_store %arg5[%c1_48, %c0_49, %c0_50], %57 {strides = array<i32>} : memref<6x8x256xf32, #tpu.memory_space<vmem>>, vector<4x8x256xf32>,
    %c1360 = arith.constant 1360 : index
    %c0_51 = arith.constant 0 : index
    %63 = vector.load %arg2[%c1360, %c0_51] : memref<1544x256xf32, #tpu.memory_space<vmem>>, vector<1x256xf32>
    %c0_52 = arith.constant 0 : index
    %c0_53 = arith.constant 0 : index
    %c0_54 = arith.constant 0 : index
    %64 = vector.load %arg5[%c0_52, %c0_53, %c0_54] : memref<6x8x256xf32, #tpu.memory_space<vmem>>, vector<4x8x256xf32>
    %65 = vector.shape_cast %64 : vector<4x8x256xf32> to vector<32x256xf32>
    %c576 = arith.constant 576 : index
    %c0_55 = arith.constant 0 : index
    %66 = vector.load %arg2[%c576, %c0_55] : memref<1544x256xf32, #tpu.memory_space<vmem>>, vector<256x256xf32>
    %cst_56 = arith.constant dense<0.000000e+00> : vector<32x256xf32>
    %67 = tpu.matmul %65, %66, %cst_56 {dimension_numbers = #tpu.dot_dimension_numbers<[1], [0], [0], [1], [0, 0, 1, 1], [], []>} : vector<32x256xf32>, vector<256x256xf32>, vector<32x256xf32> -> vector<32x256xf32>
    %68 = vector.broadcast %63 : vector<1x256xf32> to vector<32x256xf32>
    %69 = arith.addf %68, %67 : vector<32x256xf32>
    %c1_57 = arith.constant 1 : index
    %c0_58 = arith.constant 0 : index
    %c0_59 = arith.constant 0 : index
    %70 = vector.load %arg5[%c1_57, %c0_58, %c0_59] : memref<6x8x256xf32, #tpu.memory_space<vmem>>, vector<4x8x256xf32>
    %71 = vector.shape_cast %70 : vector<4x8x256xf32> to vector<32x256xf32>
    %c832 = arith.constant 832 : index
    %c0_60 = arith.constant 0 : index
    %72 = vector.load %arg2[%c832, %c0_60] : memref<1544x256xf32, #tpu.memory_space<vmem>>, vector<256x256xf32>
    %cst_61 = arith.constant dense<0.000000e+00> : vector<32x256xf32>
    %73 = tpu.matmul %71, %72, %cst_61 {dimension_numbers = #tpu.dot_dimension_numbers<[1], [0], [0], [1], [0, 0, 1, 1], [], []>} : vector<32x256xf32>, vector<256x256xf32>, vector<32x256xf32> -> vector<32x256xf32>
    %74 = arith.addf %69, %73 : vector<32x256xf32>
    %c2_62 = arith.constant 2 : index
    %c0_63 = arith.constant 0 : index
    %c0_64 = arith.constant 0 : index
    %75 = vector.load %arg5[%c2_62, %c0_63, %c0_64] : memref<6x8x256xf32, #tpu.memory_space<vmem>>, vector<4x8x256xf32>
    %76 = vector.shape_cast %75 : vector<4x8x256xf32> to vector<32x256xf32>
    %c1088 = arith.constant 1088 : index
    %c0_65 = arith.constant 0 : index
    %77 = vector.load %arg2[%c1088, %c0_65] : memref<1544x256xf32, #tpu.memory_space<vmem>>, vector<256x256xf32>
    %cst_66 = arith.constant dense<0.000000e+00> : vector<32x256xf32>
    %78 = tpu.matmul %76, %77, %cst_66 {dimension_numbers = #tpu.dot_dimension_numbers<[1], [0], [0], [1], [0, 0, 1, 1], [], []>} : vector<32x256xf32>, vector<256x256xf32>, vector<32x256xf32> -> vector<32x256xf32>
    %79 = arith.addf %74, %78 : vector<32x256xf32>
    %cst_67 = arith.constant 0.000000e+00 : f32
    %80 = vector.broadcast %cst_67 : f32 to vector<32x256xf32>
    %81 = arith.maximumf %79, %80 : vector<32x256xf32>
    %82 = vector.shape_cast %81 : vector<32x256xf32> to vector<4x8x256xf32>
    %83 = vector.extract_strided_slice %82 {offsets = [0, 0, 0], sizes = [1, 8, 256], strides = [1, 1, 1]} : vector<4x8x256xf32> to vector<1x8x256xf32>
    %84 = vector.shape_cast %83 : vector<1x8x256xf32> to vector<8x256xf32>
    %85 = vector.extract_strided_slice %82 {offsets = [1, 0, 0], sizes = [1, 8, 256], strides = [1, 1, 1]} : vector<4x8x256xf32> to vector<1x8x256xf32>
    %86 = vector.shape_cast %85 : vector<1x8x256xf32> to vector<8x256xf32>
    %87 = arith.maximumf %84, %86 : vector<8x256xf32>
    %88 = vector.extract_strided_slice %82 {offsets = [2, 0, 0], sizes = [1, 8, 256], strides = [1, 1, 1]} : vector<4x8x256xf32> to vector<1x8x256xf32>
    %89 = vector.shape_cast %88 : vector<1x8x256xf32> to vector<8x256xf32>
    %90 = vector.extract_strided_slice %82 {offsets = [3, 0, 0], sizes = [1, 8, 256], strides = [1, 1, 1]} : vector<4x8x256xf32> to vector<1x8x256xf32>
    %91 = vector.shape_cast %90 : vector<1x8x256xf32> to vector<8x256xf32>
    %92 = arith.maximumf %89, %91 : vector<8x256xf32>
    %93 = arith.maximumf %87, %92 : vector<8x256xf32>
    %c1368 = arith.constant 1368 : index
    %c0_68 = arith.constant 0 : index
    %94 = vector.load %arg2[%c1368, %c0_68] : memref<1544x256xf32, #tpu.memory_space<vmem>>, vector<32x256xf32>
    %c1400 = arith.constant 1400 : index
    %c0_69 = arith.constant 0 : index
    %95 = vector.load %arg2[%c1400, %c0_69] : memref<1544x256xf32, #tpu.memory_space<vmem>>, vector<1x256xf32>
    %96 = vector.extract_strided_slice %93 {offsets = [0, 0], sizes = [8, 32], strides = [1, 1]} : vector<8x256xf32> to vector<8x32xf32>
    %cst_70 = arith.constant dense<0.000000e+00> : vector<8x256xf32>
    %97 = tpu.matmul %96, %94, %cst_70 {dimension_numbers = #tpu.dot_dimension_numbers<[1], [0], [0], [1], [0, 0, 1, 1], [], []>} : vector<8x32xf32>, vector<32x256xf32>, vector<8x256xf32> -> vector<8x256xf32>
    %98 = vector.broadcast %95 : vector<1x256xf32> to vector<8x256xf32>
    %99 = arith.addf %97, %98 : vector<8x256xf32>
    %100 = vector.extract_strided_slice %99 {offsets = [0, 0], sizes = [8, 128], strides = [1, 1]} : vector<8x256xf32> to vector<8x128xf32>
    %101 = vector.extract_strided_slice %99 {offsets = [0, 128], sizes = [8, 128], strides = [1, 1]} : vector<8x256xf32> to vector<8x128xf32>
    %102 = vector.extract_strided_slice %93 {offsets = [0, 32], sizes = [8, 32], strides = [1, 1]} : vector<8x256xf32> to vector<8x32xf32>
    %cst_71 = arith.constant dense<0.000000e+00> : vector<8x256xf32>
    %103 = tpu.matmul %102, %94, %cst_71 {dimension_numbers = #tpu.dot_dimension_numbers<[1], [0], [0], [1], [0, 0, 1, 1], [], []>} : vector<8x32xf32>, vector<32x256xf32>, vector<8x256xf32> -> vector<8x256xf32>
    %104 = vector.broadcast %95 : vector<1x256xf32> to vector<8x256xf32>
    %105 = arith.addf %103, %104 : vector<8x256xf32>
    %106 = vector.extract_strided_slice %105 {offsets = [0, 0], sizes = [8, 128], strides = [1, 1]} : vector<8x256xf32> to vector<8x128xf32>
    %107 = vector.extract_strided_slice %105 {offsets = [0, 128], sizes = [8, 128], strides = [1, 1]} : vector<8x256xf32> to vector<8x128xf32>
    %108 = vector.extract_strided_slice %93 {offsets = [0, 64], sizes = [8, 32], strides = [1, 1]} : vector<8x256xf32> to vector<8x32xf32>
    %cst_72 = arith.constant dense<0.000000e+00> : vector<8x256xf32>
    %109 = tpu.matmul %108, %94, %cst_72 {dimension_numbers = #tpu.dot_dimension_numbers<[1], [0], [0], [1], [0, 0, 1, 1], [], []>} : vector<8x32xf32>, vector<32x256xf32>, vector<8x256xf32> -> vector<8x256xf32>
    %110 = vector.broadcast %95 : vector<1x256xf32> to vector<8x256xf32>
    %111 = arith.addf %109, %110 : vector<8x256xf32>
    %112 = vector.extract_strided_slice %111 {offsets = [0, 0], sizes = [8, 128], strides = [1, 1]} : vector<8x256xf32> to vector<8x128xf32>
    %113 = vector.extract_strided_slice %111 {offsets = [0, 128], sizes = [8, 128], strides = [1, 1]} : vector<8x256xf32> to vector<8x128xf32>
    %114 = vector.extract_strided_slice %93 {offsets = [0, 96], sizes = [8, 32], strides = [1, 1]} : vector<8x256xf32> to vector<8x32xf32>
    %cst_73 = arith.constant dense<0.000000e+00> : vector<8x256xf32>
    %115 = tpu.matmul %114, %94, %cst_73 {dimension_numbers = #tpu.dot_dimension_numbers<[1], [0], [0], [1], [0, 0, 1, 1], [], []>} : vector<8x32xf32>, vector<32x256xf32>, vector<8x256xf32> -> vector<8x256xf32>
    %116 = vector.broadcast %95 : vector<1x256xf32> to vector<8x256xf32>
    %117 = arith.addf %115, %116 : vector<8x256xf32>
    %118 = vector.extract_strided_slice %117 {offsets = [0, 0], sizes = [8, 128], strides = [1, 1]} : vector<8x256xf32> to vector<8x128xf32>
    %119 = vector.extract_strided_slice %117 {offsets = [0, 128], sizes = [8, 128], strides = [1, 1]} : vector<8x256xf32> to vector<8x128xf32>
    %120 = vector.extract_strided_slice %93 {offsets = [0, 128], sizes = [8, 32], strides = [1, 1]} : vector<8x256xf32> to vector<8x32xf32>
    %cst_74 = arith.constant dense<0.000000e+00> : vector<8x256xf32>
    %121 = tpu.matmul %120, %94, %cst_74 {dimension_numbers = #tpu.dot_dimension_numbers<[1], [0], [0], [1], [0, 0, 1, 1], [], []>} : vector<8x32xf32>, vector<32x256xf32>, vector<8x256xf32> -> vector<8x256xf32>
    %122 = vector.broadcast %95 : vector<1x256xf32> to vector<8x256xf32>
    %123 = arith.addf %121, %122 : vector<8x256xf32>
    %124 = vector.extract_strided_slice %123 {offsets = [0, 0], sizes = [8, 128], strides = [1, 1]} : vector<8x256xf32> to vector<8x128xf32>
    %125 = vector.extract_strided_slice %123 {offsets = [0, 128], sizes = [8, 128], strides = [1, 1]} : vector<8x256xf32> to vector<8x128xf32>
    %126 = vector.extract_strided_slice %93 {offsets = [0, 160], sizes = [8, 32], strides = [1, 1]} : vector<8x256xf32> to vector<8x32xf32>
    %cst_75 = arith.constant dense<0.000000e+00> : vector<8x256xf32>
    %127 = tpu.matmul %126, %94, %cst_75 {dimension_numbers = #tpu.dot_dimension_numbers<[1], [0], [0], [1], [0, 0, 1, 1], [], []>} : vector<8x32xf32>, vector<32x256xf32>, vector<8x256xf32> -> vector<8x256xf32>
    %128 = vector.broadcast %95 : vector<1x256xf32> to vector<8x256xf32>
    %129 = arith.addf %127, %128 : vector<8x256xf32>
    %130 = vector.extract_strided_slice %129 {offsets = [0, 0], sizes = [8, 128], strides = [1, 1]} : vector<8x256xf32> to vector<8x128xf32>
    %131 = vector.extract_strided_slice %129 {offsets = [0, 128], sizes = [8, 128], strides = [1, 1]} : vector<8x256xf32> to vector<8x128xf32>
    %132 = vector.extract_strided_slice %93 {offsets = [0, 192], sizes = [8, 32], strides = [1, 1]} : vector<8x256xf32> to vector<8x32xf32>
    %cst_76 = arith.constant dense<0.000000e+00> : vector<8x256xf32>
    %133 = tpu.matmul %132, %94, %cst_76 {dimension_numbers = #tpu.dot_dimension_numbers<[1], [0], [0], [1], [0, 0, 1, 1], [], []>} : vector<8x32xf32>, vector<32x256xf32>, vector<8x256xf32> -> vector<8x256xf32>
    %134 = vector.broadcast %95 : vector<1x256xf32> to vector<8x256xf32>
    %135 = arith.addf %133, %134 : vector<8x256xf32>
    %136 = vector.extract_strided_slice %135 {offsets = [0, 0], sizes = [8, 128], strides = [1, 1]} : vector<8x256xf32> to vector<8x128xf32>
    %137 = vector.extract_strided_slice %135 {offsets = [0, 128], sizes = [8, 128], strides = [1, 1]} : vector<8x256xf32> to vector<8x128xf32>
    %138 = vector.extract_strided_slice %93 {offsets = [0, 224], sizes = [8, 32], strides = [1, 1]} : vector<8x256xf32> to vector<8x32xf32>
    %cst_77 = arith.constant dense<0.000000e+00> : vector<8x256xf32>
    %139 = tpu.matmul %138, %94, %cst_77 {dimension_numbers = #tpu.dot_dimension_numbers<[1], [0], [0], [1], [0, 0, 1, 1], [], []>} : vector<8x32xf32>, vector<32x256xf32>, vector<8x256xf32> -> vector<8x256xf32>
    %140 = vector.broadcast %95 : vector<1x256xf32> to vector<8x256xf32>
    %141 = arith.addf %139, %140 : vector<8x256xf32>
    %142 = vector.extract_strided_slice %141 {offsets = [0, 0], sizes = [8, 128], strides = [1, 1]} : vector<8x256xf32> to vector<8x128xf32>
    %143 = vector.extract_strided_slice %141 {offsets = [0, 128], sizes = [8, 128], strides = [1, 1]} : vector<8x256xf32> to vector<8x128xf32>
    %c1408 = arith.constant 1408 : index
    %c0_78 = arith.constant 0 : index
    %144 = vector.load %arg2[%c1408, %c0_78] : memref<1544x256xf32, #tpu.memory_space<vmem>>, vector<64x256xf32>
    %cst_79 = arith.constant 0.000000e+00 : f32
    %145 = vector.broadcast %cst_79 : f32 to vector<8x32xf32>
    %146 = tpu.concatenate %145, %145 in 1 : vector<8x32xf32>, vector<8x32xf32> -> vector<8x64xf32>
    %cst_80 = arith.constant dense<0.000000e+00> : vector<8x256xf32>
    %147 = tpu.matmul %146, %144, %cst_80 {dimension_numbers = #tpu.dot_dimension_numbers<[1], [0], [0], [1], [0, 0, 1, 1], [], []>} : vector<8x64xf32>, vector<64x256xf32>, vector<8x256xf32> -> vector<8x256xf32>
    %148 = vector.extract_strided_slice %147 {offsets = [0, 0], sizes = [8, 128], strides = [1, 1]} : vector<8x256xf32> to vector<8x128xf32>
    %149 = arith.addf %100, %148 : vector<8x128xf32>
    %150 = arith.negf %149 : vector<8x128xf32>
    %151 = math.exp %150 : vector<8x128xf32>
    %cst_81 = arith.constant 1.000000e+00 : f32
    %152 = vector.broadcast %cst_81 : f32 to vector<8x128xf32>
    %153 = arith.addf %152, %151 : vector<8x128xf32>
    %154 = arith.divf %152, %153 : vector<8x128xf32>
    %155 = math.tanh %149 : vector<8x128xf32>
    %156 = vector.extract_strided_slice %154 {offsets = [0, 32], sizes = [8, 32], strides = [1, 1]} : vector<8x128xf32> to vector<8x32xf32>
    %157 = arith.mulf %156, %145 : vector<8x32xf32>
    %158 = vector.extract_strided_slice %154 {offsets = [0, 0], sizes = [8, 32], strides = [1, 1]} : vector<8x128xf32> to vector<8x32xf32>
    %159 = vector.extract_strided_slice %155 {offsets = [0, 64], sizes = [8, 32], strides = [1, 1]} : vector<8x128xf32> to vector<8x32xf32>
    %160 = arith.mulf %158, %159 : vector<8x32xf32>
    %161 = arith.addf %157, %160 : vector<8x32xf32>
    %162 = vector.extract_strided_slice %154 {offsets = [0, 96], sizes = [8, 32], strides = [1, 1]} : vector<8x128xf32> to vector<8x32xf32>
    %163 = math.tanh %161 : vector<8x32xf32>
    %164 = arith.mulf %162, %163 : vector<8x32xf32>
    %165 = vector.extract_strided_slice %147 {offsets = [0, 128], sizes = [8, 128], strides = [1, 1]} : vector<8x256xf32> to vector<8x128xf32>
    %166 = arith.addf %143, %165 : vector<8x128xf32>
    %167 = arith.negf %166 : vector<8x128xf32>
    %168 = math.exp %167 : vector<8x128xf32>
    %cst_82 = arith.constant 1.000000e+00 : f32
    %169 = vector.broadcast %cst_82 : f32 to vector<8x128xf32>
    %170 = arith.addf %169, %168 : vector<8x128xf32>
    %171 = arith.divf %169, %170 : vector<8x128xf32>
    %172 = math.tanh %166 : vector<8x128xf32>
    %173 = vector.extract_strided_slice %171 {offsets = [0, 32], sizes = [8, 32], strides = [1, 1]} : vector<8x128xf32> to vector<8x32xf32>
    %174 = arith.mulf %173, %145 : vector<8x32xf32>
    %175 = vector.extract_strided_slice %171 {offsets = [0, 0], sizes = [8, 32], strides = [1, 1]} : vector<8x128xf32> to vector<8x32xf32>
    %176 = vector.extract_strided_slice %172 {offsets = [0, 64], sizes = [8, 32], strides = [1, 1]} : vector<8x128xf32> to vector<8x32xf32>
    %177 = arith.mulf %175, %176 : vector<8x32xf32>
    %178 = arith.addf %174, %177 : vector<8x32xf32>
    %179 = vector.extract_strided_slice %171 {offsets = [0, 96], sizes = [8, 32], strides = [1, 1]} : vector<8x128xf32> to vector<8x32xf32>
    %180 = math.tanh %178 : vector<8x32xf32>
    %181 = arith.mulf %179, %180 : vector<8x32xf32>
    %c0_83 = arith.constant 0 : index
    %c0_84 = arith.constant 0 : index
    %182 = vector.load %arg6[%c0_83, %c0_84] : memref<64x64xf32, #tpu.memory_space<vmem>>, vector<8x32xf32>
    tpu.vector_store %arg6[%c0_83, %c0_84], %164 {strides = array<i32>} : memref<64x64xf32, #tpu.memory_space<vmem>>, vector<8x32xf32>,
    %c56 = arith.constant 56 : index
    %c32 = arith.constant 32 : index
    %183 = vector.load %arg6[%c56, %c32] : memref<64x64xf32, #tpu.memory_space<vmem>>, vector<8x32xf32>
    tpu.vector_store %arg6[%c56, %c32], %181 {strides = array<i32>} : memref<64x64xf32, #tpu.memory_space<vmem>>, vector<8x32xf32>,
    %184 = tpu.concatenate %164, %181 in 1 : vector<8x32xf32>, vector<8x32xf32> -> vector<8x64xf32>
    %cst_85 = arith.constant dense<0.000000e+00> : vector<8x256xf32>
    %185 = tpu.matmul %184, %144, %cst_85 {dimension_numbers = #tpu.dot_dimension_numbers<[1], [0], [0], [1], [0, 0, 1, 1], [], []>} : vector<8x64xf32>, vector<64x256xf32>, vector<8x256xf32> -> vector<8x256xf32>
    %186 = vector.extract_strided_slice %185 {offsets = [0, 0], sizes = [8, 128], strides = [1, 1]} : vector<8x256xf32> to vector<8x128xf32>
    %187 = arith.addf %106, %186 : vector<8x128xf32>
    %188 = arith.negf %187 : vector<8x128xf32>
    %189 = math.exp %188 : vector<8x128xf32>
    %cst_86 = arith.constant 1.000000e+00 : f32
    %190 = vector.broadcast %cst_86 : f32 to vector<8x128xf32>
    %191 = arith.addf %190, %189 : vector<8x128xf32>
    %192 = arith.divf %190, %191 : vector<8x128xf32>
    %193 = math.tanh %187 : vector<8x128xf32>
    %194 = vector.extract_strided_slice %192 {offsets = [0, 32], sizes = [8, 32], strides = [1, 1]} : vector<8x128xf32> to vector<8x32xf32>
    %195 = arith.mulf %194, %161 : vector<8x32xf32>
    %196 = vector.extract_strided_slice %192 {offsets = [0, 0], sizes = [8, 32], strides = [1, 1]} : vector<8x128xf32> to vector<8x32xf32>
    %197 = vector.extract_strided_slice %193 {offsets = [0, 64], sizes = [8, 32], strides = [1, 1]} : vector<8x128xf32> to vector<8x32xf32>
    %198 = arith.mulf %196, %197 : vector<8x32xf32>
    %199 = arith.addf %195, %198 : vector<8x32xf32>
    %200 = vector.extract_strided_slice %192 {offsets = [0, 96], sizes = [8, 32], strides = [1, 1]} : vector<8x128xf32> to vector<8x32xf32>
    %201 = math.tanh %199 : vector<8x32xf32>
    %202 = arith.mulf %200, %201 : vector<8x32xf32>
    %203 = vector.extract_strided_slice %185 {offsets = [0, 128], sizes = [8, 128], strides = [1, 1]} : vector<8x256xf32> to vector<8x128xf32>
    %204 = arith.addf %137, %203 : vector<8x128xf32>
    %205 = arith.negf %204 : vector<8x128xf32>
    %206 = math.exp %205 : vector<8x128xf32>
    %cst_87 = arith.constant 1.000000e+00 : f32
    %207 = vector.broadcast %cst_87 : f32 to vector<8x128xf32>
    %208 = arith.addf %207, %206 : vector<8x128xf32>
    %209 = arith.divf %207, %208 : vector<8x128xf32>
    %210 = math.tanh %204 : vector<8x128xf32>
    %211 = vector.extract_strided_slice %209 {offsets = [0, 32], sizes = [8, 32], strides = [1, 1]} : vector<8x128xf32> to vector<8x32xf32>
    %212 = arith.mulf %211, %178 : vector<8x32xf32>
    %213 = vector.extract_strided_slice %209 {offsets = [0, 0], sizes = [8, 32], strides = [1, 1]} : vector<8x128xf32> to vector<8x32xf32>
    %214 = vector.extract_strided_slice %210 {offsets = [0, 64], sizes = [8, 32], strides = [1, 1]} : vector<8x128xf32> to vector<8x32xf32>
    %215 = arith.mulf %213, %214 : vector<8x32xf32>
    %216 = arith.addf %212, %215 : vector<8x32xf32>
    %217 = vector.extract_strided_slice %209 {offsets = [0, 96], sizes = [8, 32], strides = [1, 1]} : vector<8x128xf32> to vector<8x32xf32>
    %218 = math.tanh %216 : vector<8x32xf32>
    %219 = arith.mulf %217, %218 : vector<8x32xf32>
    %c8 = arith.constant 8 : index
    %c0_88 = arith.constant 0 : index
    %220 = vector.load %arg6[%c8, %c0_88] : memref<64x64xf32, #tpu.memory_space<vmem>>, vector<8x32xf32>
    tpu.vector_store %arg6[%c8, %c0_88], %202 {strides = array<i32>} : memref<64x64xf32, #tpu.memory_space<vmem>>, vector<8x32xf32>,
    %c48 = arith.constant 48 : index
    %c32_89 = arith.constant 32 : index
    %221 = vector.load %arg6[%c48, %c32_89] : memref<64x64xf32, #tpu.memory_space<vmem>>, vector<8x32xf32>
    tpu.vector_store %arg6[%c48, %c32_89], %219 {strides = array<i32>} : memref<64x64xf32, #tpu.memory_space<vmem>>, vector<8x32xf32>,
    %222 = tpu.concatenate %202, %219 in 1 : vector<8x32xf32>, vector<8x32xf32> -> vector<8x64xf32>
    %cst_90 = arith.constant dense<0.000000e+00> : vector<8x256xf32>
    %223 = tpu.matmul %222, %144, %cst_90 {dimension_numbers = #tpu.dot_dimension_numbers<[1], [0], [0], [1], [0, 0, 1, 1], [], []>} : vector<8x64xf32>, vector<64x256xf32>, vector<8x256xf32> -> vector<8x256xf32>
    %224 = vector.extract_strided_slice %223 {offsets = [0, 0], sizes = [8, 128], strides = [1, 1]} : vector<8x256xf32> to vector<8x128xf32>
    %225 = arith.addf %112, %224 : vector<8x128xf32>
    %226 = arith.negf %225 : vector<8x128xf32>
    %227 = math.exp %226 : vector<8x128xf32>
    %cst_91 = arith.constant 1.000000e+00 : f32
    %228 = vector.broadcast %cst_91 : f32 to vector<8x128xf32>
    %229 = arith.addf %228, %227 : vector<8x128xf32>
    %230 = arith.divf %228, %229 : vector<8x128xf32>
    %231 = math.tanh %225 : vector<8x128xf32>
    %232 = vector.extract_strided_slice %230 {offsets = [0, 32], sizes = [8, 32], strides = [1, 1]} : vector<8x128xf32> to vector<8x32xf32>
    %233 = arith.mulf %232, %199 : vector<8x32xf32>
    %234 = vector.extract_strided_slice %230 {offsets = [0, 0], sizes = [8, 32], strides = [1, 1]} : vector<8x128xf32> to vector<8x32xf32>
    %235 = vector.extract_strided_slice %231 {offsets = [0, 64], sizes = [8, 32], strides = [1, 1]} : vector<8x128xf32> to vector<8x32xf32>
    %236 = arith.mulf %234, %235 : vector<8x32xf32>
    %237 = arith.addf %233, %236 : vector<8x32xf32>
    %238 = vector.extract_strided_slice %230 {offsets = [0, 96], sizes = [8, 32], strides = [1, 1]} : vector<8x128xf32> to vector<8x32xf32>
    %239 = math.tanh %237 : vector<8x32xf32>
    %240 = arith.mulf %238, %239 : vector<8x32xf32>
    %241 = vector.extract_strided_slice %223 {offsets = [0, 128], sizes = [8, 128], strides = [1, 1]} : vector<8x256xf32> to vector<8x128xf32>
    %242 = arith.addf %131, %241 : vector<8x128xf32>
    %243 = arith.negf %242 : vector<8x128xf32>
    %244 = math.exp %243 : vector<8x128xf32>
    %cst_92 = arith.constant 1.000000e+00 : f32
    %245 = vector.broadcast %cst_92 : f32 to vector<8x128xf32>
    %246 = arith.addf %245, %244 : vector<8x128xf32>
    %247 = arith.divf %245, %246 : vector<8x128xf32>
    %248 = math.tanh %242 : vector<8x128xf32>
    %249 = vector.extract_strided_slice %247 {offsets = [0, 32], sizes = [8, 32], strides = [1, 1]} : vector<8x128xf32> to vector<8x32xf32>
    %250 = arith.mulf %249, %216 : vector<8x32xf32>
    %251 = vector.extract_strided_slice %247 {offsets = [0, 0], sizes = [8, 32], strides = [1, 1]} : vector<8x128xf32> to vector<8x32xf32>
    %252 = vector.extract_strided_slice %248 {offsets = [0, 64], sizes = [8, 32], strides = [1, 1]} : vector<8x128xf32> to vector<8x32xf32>
    %253 = arith.mulf %251, %252 : vector<8x32xf32>
    %254 = arith.addf %250, %253 : vector<8x32xf32>
    %255 = vector.extract_strided_slice %247 {offsets = [0, 96], sizes = [8, 32], strides = [1, 1]} : vector<8x128xf32> to vector<8x32xf32>
    %256 = math.tanh %254 : vector<8x32xf32>
    %257 = arith.mulf %255, %256 : vector<8x32xf32>
    %c16 = arith.constant 16 : index
    %c0_93 = arith.constant 0 : index
    %258 = vector.load %arg6[%c16, %c0_93] : memref<64x64xf32, #tpu.memory_space<vmem>>, vector<8x32xf32>
    tpu.vector_store %arg6[%c16, %c0_93], %240 {strides = array<i32>} : memref<64x64xf32, #tpu.memory_space<vmem>>, vector<8x32xf32>,
    %c40 = arith.constant 40 : index
    %c32_94 = arith.constant 32 : index
    %259 = vector.load %arg6[%c40, %c32_94] : memref<64x64xf32, #tpu.memory_space<vmem>>, vector<8x32xf32>
    tpu.vector_store %arg6[%c40, %c32_94], %257 {strides = array<i32>} : memref<64x64xf32, #tpu.memory_space<vmem>>, vector<8x32xf32>,
    %260 = tpu.concatenate %240, %257 in 1 : vector<8x32xf32>, vector<8x32xf32> -> vector<8x64xf32>
    %cst_95 = arith.constant dense<0.000000e+00> : vector<8x256xf32>
    %261 = tpu.matmul %260, %144, %cst_95 {dimension_numbers = #tpu.dot_dimension_numbers<[1], [0], [0], [1], [0, 0, 1, 1], [], []>} : vector<8x64xf32>, vector<64x256xf32>, vector<8x256xf32> -> vector<8x256xf32>
    %262 = vector.extract_strided_slice %261 {offsets = [0, 0], sizes = [8, 128], strides = [1, 1]} : vector<8x256xf32> to vector<8x128xf32>
    %263 = arith.addf %118, %262 : vector<8x128xf32>
    %264 = arith.negf %263 : vector<8x128xf32>
    %265 = math.exp %264 : vector<8x128xf32>
    %cst_96 = arith.constant 1.000000e+00 : f32
    %266 = vector.broadcast %cst_96 : f32 to vector<8x128xf32>
    %267 = arith.addf %266, %265 : vector<8x128xf32>
    %268 = arith.divf %266, %267 : vector<8x128xf32>
    %269 = math.tanh %263 : vector<8x128xf32>
    %270 = vector.extract_strided_slice %268 {offsets = [0, 32], sizes = [8, 32], strides = [1, 1]} : vector<8x128xf32> to vector<8x32xf32>
    %271 = arith.mulf %270, %237 : vector<8x32xf32>
    %272 = vector.extract_strided_slice %268 {offsets = [0, 0], sizes = [8, 32], strides = [1, 1]} : vector<8x128xf32> to vector<8x32xf32>
    %273 = vector.extract_strided_slice %269 {offsets = [0, 64], sizes = [8, 32], strides = [1, 1]} : vector<8x128xf32> to vector<8x32xf32>
    %274 = arith.mulf %272, %273 : vector<8x32xf32>
    %275 = arith.addf %271, %274 : vector<8x32xf32>
    %276 = vector.extract_strided_slice %268 {offsets = [0, 96], sizes = [8, 32], strides = [1, 1]} : vector<8x128xf32> to vector<8x32xf32>
    %277 = math.tanh %275 : vector<8x32xf32>
    %278 = arith.mulf %276, %277 : vector<8x32xf32>
    %279 = vector.extract_strided_slice %261 {offsets = [0, 128], sizes = [8, 128], strides = [1, 1]} : vector<8x256xf32> to vector<8x128xf32>
    %280 = arith.addf %125, %279 : vector<8x128xf32>
    %281 = arith.negf %280 : vector<8x128xf32>
    %282 = math.exp %281 : vector<8x128xf32>
    %cst_97 = arith.constant 1.000000e+00 : f32
    %283 = vector.broadcast %cst_97 : f32 to vector<8x128xf32>
    %284 = arith.addf %283, %282 : vector<8x128xf32>
    %285 = arith.divf %283, %284 : vector<8x128xf32>
    %286 = math.tanh %280 : vector<8x128xf32>
    %287 = vector.extract_strided_slice %285 {offsets = [0, 32], sizes = [8, 32], strides = [1, 1]} : vector<8x128xf32> to vector<8x32xf32>
    %288 = arith.mulf %287, %254 : vector<8x32xf32>
    %289 = vector.extract_strided_slice %285 {offsets = [0, 0], sizes = [8, 32], strides = [1, 1]} : vector<8x128xf32> to vector<8x32xf32>
    %290 = vector.extract_strided_slice %286 {offsets = [0, 64], sizes = [8, 32], strides = [1, 1]} : vector<8x128xf32> to vector<8x32xf32>
    %291 = arith.mulf %289, %290 : vector<8x32xf32>
    %292 = arith.addf %288, %291 : vector<8x32xf32>
    %293 = vector.extract_strided_slice %285 {offsets = [0, 96], sizes = [8, 32], strides = [1, 1]} : vector<8x128xf32> to vector<8x32xf32>
    %294 = math.tanh %292 : vector<8x32xf32>
    %295 = arith.mulf %293, %294 : vector<8x32xf32>
    %c24 = arith.constant 24 : index
    %c0_98 = arith.constant 0 : index
    %296 = vector.load %arg6[%c24, %c0_98] : memref<64x64xf32, #tpu.memory_space<vmem>>, vector<8x32xf32>
    tpu.vector_store %arg6[%c24, %c0_98], %278 {strides = array<i32>} : memref<64x64xf32, #tpu.memory_space<vmem>>, vector<8x32xf32>,
    %c32_99 = arith.constant 32 : index
    %c32_100 = arith.constant 32 : index
    %297 = vector.load %arg6[%c32_99, %c32_100] : memref<64x64xf32, #tpu.memory_space<vmem>>, vector<8x32xf32>
    tpu.vector_store %arg6[%c32_99, %c32_100], %295 {strides = array<i32>} : memref<64x64xf32, #tpu.memory_space<vmem>>, vector<8x32xf32>,
    %298 = tpu.concatenate %278, %295 in 1 : vector<8x32xf32>, vector<8x32xf32> -> vector<8x64xf32>
    %cst_101 = arith.constant dense<0.000000e+00> : vector<8x256xf32>
    %299 = tpu.matmul %298, %144, %cst_101 {dimension_numbers = #tpu.dot_dimension_numbers<[1], [0], [0], [1], [0, 0, 1, 1], [], []>} : vector<8x64xf32>, vector<64x256xf32>, vector<8x256xf32> -> vector<8x256xf32>
    %300 = vector.extract_strided_slice %299 {offsets = [0, 0], sizes = [8, 128], strides = [1, 1]} : vector<8x256xf32> to vector<8x128xf32>
    %301 = arith.addf %124, %300 : vector<8x128xf32>
    %302 = arith.negf %301 : vector<8x128xf32>
    %303 = math.exp %302 : vector<8x128xf32>
    %cst_102 = arith.constant 1.000000e+00 : f32
    %304 = vector.broadcast %cst_102 : f32 to vector<8x128xf32>
    %305 = arith.addf %304, %303 : vector<8x128xf32>
    %306 = arith.divf %304, %305 : vector<8x128xf32>
    %307 = math.tanh %301 : vector<8x128xf32>
    %308 = vector.extract_strided_slice %306 {offsets = [0, 32], sizes = [8, 32], strides = [1, 1]} : vector<8x128xf32> to vector<8x32xf32>
    %309 = arith.mulf %308, %275 : vector<8x32xf32>
    %310 = vector.extract_strided_slice %306 {offsets = [0, 0], sizes = [8, 32], strides = [1, 1]} : vector<8x128xf32> to vector<8x32xf32>
    %311 = vector.extract_strided_slice %307 {offsets = [0, 64], sizes = [8, 32], strides = [1, 1]} : vector<8x128xf32> to vector<8x32xf32>
    %312 = arith.mulf %310, %311 : vector<8x32xf32>
    %313 = arith.addf %309, %312 : vector<8x32xf32>
    %314 = vector.extract_strided_slice %306 {offsets = [0, 96], sizes = [8, 32], strides = [1, 1]} : vector<8x128xf32> to vector<8x32xf32>
    %315 = math.tanh %313 : vector<8x32xf32>
    %316 = arith.mulf %314, %315 : vector<8x32xf32>
    %317 = vector.extract_strided_slice %299 {offsets = [0, 128], sizes = [8, 128], strides = [1, 1]} : vector<8x256xf32> to vector<8x128xf32>
    %318 = arith.addf %119, %317 : vector<8x128xf32>
    %319 = arith.negf %318 : vector<8x128xf32>
    %320 = math.exp %319 : vector<8x128xf32>
    %cst_103 = arith.constant 1.000000e+00 : f32
    %321 = vector.broadcast %cst_103 : f32 to vector<8x128xf32>
    %322 = arith.addf %321, %320 : vector<8x128xf32>
    %323 = arith.divf %321, %322 : vector<8x128xf32>
    %324 = math.tanh %318 : vector<8x128xf32>
    %325 = vector.extract_strided_slice %323 {offsets = [0, 32], sizes = [8, 32], strides = [1, 1]} : vector<8x128xf32> to vector<8x32xf32>
    %326 = arith.mulf %325, %292 : vector<8x32xf32>
    %327 = vector.extract_strided_slice %323 {offsets = [0, 0], sizes = [8, 32], strides = [1, 1]} : vector<8x128xf32> to vector<8x32xf32>
    %328 = vector.extract_strided_slice %324 {offsets = [0, 64], sizes = [8, 32], strides = [1, 1]} : vector<8x128xf32> to vector<8x32xf32>
    %329 = arith.mulf %327, %328 : vector<8x32xf32>
    %330 = arith.addf %326, %329 : vector<8x32xf32>
    %331 = vector.extract_strided_slice %323 {offsets = [0, 96], sizes = [8, 32], strides = [1, 1]} : vector<8x128xf32> to vector<8x32xf32>
    %332 = math.tanh %330 : vector<8x32xf32>
    %333 = arith.mulf %331, %332 : vector<8x32xf32>
    %c32_104 = arith.constant 32 : index
    %c0_105 = arith.constant 0 : index
    %334 = vector.load %arg6[%c32_104, %c0_105] : memref<64x64xf32, #tpu.memory_space<vmem>>, vector<8x32xf32>
    tpu.vector_store %arg6[%c32_104, %c0_105], %316 {strides = array<i32>} : memref<64x64xf32, #tpu.memory_space<vmem>>, vector<8x32xf32>,
    %c24_106 = arith.constant 24 : index
    %c32_107 = arith.constant 32 : index
    %335 = vector.load %arg6[%c24_106, %c32_107] : memref<64x64xf32, #tpu.memory_space<vmem>>, vector<8x32xf32>
    tpu.vector_store %arg6[%c24_106, %c32_107], %333 {strides = array<i32>} : memref<64x64xf32, #tpu.memory_space<vmem>>, vector<8x32xf32>,
    %336 = tpu.concatenate %316, %333 in 1 : vector<8x32xf32>, vector<8x32xf32> -> vector<8x64xf32>
    %cst_108 = arith.constant dense<0.000000e+00> : vector<8x256xf32>
    %337 = tpu.matmul %336, %144, %cst_108 {dimension_numbers = #tpu.dot_dimension_numbers<[1], [0], [0], [1], [0, 0, 1, 1], [], []>} : vector<8x64xf32>, vector<64x256xf32>, vector<8x256xf32> -> vector<8x256xf32>
    %338 = vector.extract_strided_slice %337 {offsets = [0, 0], sizes = [8, 128], strides = [1, 1]} : vector<8x256xf32> to vector<8x128xf32>
    %339 = arith.addf %130, %338 : vector<8x128xf32>
    %340 = arith.negf %339 : vector<8x128xf32>
    %341 = math.exp %340 : vector<8x128xf32>
    %cst_109 = arith.constant 1.000000e+00 : f32
    %342 = vector.broadcast %cst_109 : f32 to vector<8x128xf32>
    %343 = arith.addf %342, %341 : vector<8x128xf32>
    %344 = arith.divf %342, %343 : vector<8x128xf32>
    %345 = math.tanh %339 : vector<8x128xf32>
    %346 = vector.extract_strided_slice %344 {offsets = [0, 32], sizes = [8, 32], strides = [1, 1]} : vector<8x128xf32> to vector<8x32xf32>
    %347 = arith.mulf %346, %313 : vector<8x32xf32>
    %348 = vector.extract_strided_slice %344 {offsets = [0, 0], sizes = [8, 32], strides = [1, 1]} : vector<8x128xf32> to vector<8x32xf32>
    %349 = vector.extract_strided_slice %345 {offsets = [0, 64], sizes = [8, 32], strides = [1, 1]} : vector<8x128xf32> to vector<8x32xf32>
    %350 = arith.mulf %348, %349 : vector<8x32xf32>
    %351 = arith.addf %347, %350 : vector<8x32xf32>
    %352 = vector.extract_strided_slice %344 {offsets = [0, 96], sizes = [8, 32], strides = [1, 1]} : vector<8x128xf32> to vector<8x32xf32>
    %353 = math.tanh %351 : vector<8x32xf32>
    %354 = arith.mulf %352, %353 : vector<8x32xf32>
    %355 = vector.extract_strided_slice %337 {offsets = [0, 128], sizes = [8, 128], strides = [1, 1]} : vector<8x256xf32> to vector<8x128xf32>
    %356 = arith.addf %113, %355 : vector<8x128xf32>
    %357 = arith.negf %356 : vector<8x128xf32>
    %358 = math.exp %357 : vector<8x128xf32>
    %cst_110 = arith.constant 1.000000e+00 : f32
    %359 = vector.broadcast %cst_110 : f32 to vector<8x128xf32>
    %360 = arith.addf %359, %358 : vector<8x128xf32>
    %361 = arith.divf %359, %360 : vector<8x128xf32>
    %362 = math.tanh %356 : vector<8x128xf32>
    %363 = vector.extract_strided_slice %361 {offsets = [0, 32], sizes = [8, 32], strides = [1, 1]} : vector<8x128xf32> to vector<8x32xf32>
    %364 = arith.mulf %363, %330 : vector<8x32xf32>
    %365 = vector.extract_strided_slice %361 {offsets = [0, 0], sizes = [8, 32], strides = [1, 1]} : vector<8x128xf32> to vector<8x32xf32>
    %366 = vector.extract_strided_slice %362 {offsets = [0, 64], sizes = [8, 32], strides = [1, 1]} : vector<8x128xf32> to vector<8x32xf32>
    %367 = arith.mulf %365, %366 : vector<8x32xf32>
    %368 = arith.addf %364, %367 : vector<8x32xf32>
    %369 = vector.extract_strided_slice %361 {offsets = [0, 96], sizes = [8, 32], strides = [1, 1]} : vector<8x128xf32> to vector<8x32xf32>
    %370 = math.tanh %368 : vector<8x32xf32>
    %371 = arith.mulf %369, %370 : vector<8x32xf32>
    %c40_111 = arith.constant 40 : index
    %c0_112 = arith.constant 0 : index
    %372 = vector.load %arg6[%c40_111, %c0_112] : memref<64x64xf32, #tpu.memory_space<vmem>>, vector<8x32xf32>
    tpu.vector_store %arg6[%c40_111, %c0_112], %354 {strides = array<i32>} : memref<64x64xf32, #tpu.memory_space<vmem>>, vector<8x32xf32>,
    %c16_113 = arith.constant 16 : index
    %c32_114 = arith.constant 32 : index
    %373 = vector.load %arg6[%c16_113, %c32_114] : memref<64x64xf32, #tpu.memory_space<vmem>>, vector<8x32xf32>
    tpu.vector_store %arg6[%c16_113, %c32_114], %371 {strides = array<i32>} : memref<64x64xf32, #tpu.memory_space<vmem>>, vector<8x32xf32>,
    %374 = tpu.concatenate %354, %371 in 1 : vector<8x32xf32>, vector<8x32xf32> -> vector<8x64xf32>
    %cst_115 = arith.constant dense<0.000000e+00> : vector<8x256xf32>
    %375 = tpu.matmul %374, %144, %cst_115 {dimension_numbers = #tpu.dot_dimension_numbers<[1], [0], [0], [1], [0, 0, 1, 1], [], []>} : vector<8x64xf32>, vector<64x256xf32>, vector<8x256xf32> -> vector<8x256xf32>
    %376 = vector.extract_strided_slice %375 {offsets = [0, 0], sizes = [8, 128], strides = [1, 1]} : vector<8x256xf32> to vector<8x128xf32>
    %377 = arith.addf %136, %376 : vector<8x128xf32>
    %378 = arith.negf %377 : vector<8x128xf32>
    %379 = math.exp %378 : vector<8x128xf32>
    %cst_116 = arith.constant 1.000000e+00 : f32
    %380 = vector.broadcast %cst_116 : f32 to vector<8x128xf32>
    %381 = arith.addf %380, %379 : vector<8x128xf32>
    %382 = arith.divf %380, %381 : vector<8x128xf32>
    %383 = math.tanh %377 : vector<8x128xf32>
    %384 = vector.extract_strided_slice %382 {offsets = [0, 32], sizes = [8, 32], strides = [1, 1]} : vector<8x128xf32> to vector<8x32xf32>
    %385 = arith.mulf %384, %351 : vector<8x32xf32>
    %386 = vector.extract_strided_slice %382 {offsets = [0, 0], sizes = [8, 32], strides = [1, 1]} : vector<8x128xf32> to vector<8x32xf32>
    %387 = vector.extract_strided_slice %383 {offsets = [0, 64], sizes = [8, 32], strides = [1, 1]} : vector<8x128xf32> to vector<8x32xf32>
    %388 = arith.mulf %386, %387 : vector<8x32xf32>
    %389 = arith.addf %385, %388 : vector<8x32xf32>
    %390 = vector.extract_strided_slice %382 {offsets = [0, 96], sizes = [8, 32], strides = [1, 1]} : vector<8x128xf32> to vector<8x32xf32>
    %391 = math.tanh %389 : vector<8x32xf32>
    %392 = arith.mulf %390, %391 : vector<8x32xf32>
    %393 = vector.extract_strided_slice %375 {offsets = [0, 128], sizes = [8, 128], strides = [1, 1]} : vector<8x256xf32> to vector<8x128xf32>
    %394 = arith.addf %107, %393 : vector<8x128xf32>
    %395 = arith.negf %394 : vector<8x128xf32>
    %396 = math.exp %395 : vector<8x128xf32>
    %cst_117 = arith.constant 1.000000e+00 : f32
    %397 = vector.broadcast %cst_117 : f32 to vector<8x128xf32>
    %398 = arith.addf %397, %396 : vector<8x128xf32>
    %399 = arith.divf %397, %398 : vector<8x128xf32>
    %400 = math.tanh %394 : vector<8x128xf32>
    %401 = vector.extract_strided_slice %399 {offsets = [0, 32], sizes = [8, 32], strides = [1, 1]} : vector<8x128xf32> to vector<8x32xf32>
    %402 = arith.mulf %401, %368 : vector<8x32xf32>
    %403 = vector.extract_strided_slice %399 {offsets = [0, 0], sizes = [8, 32], strides = [1, 1]} : vector<8x128xf32> to vector<8x32xf32>
    %404 = vector.extract_strided_slice %400 {offsets = [0, 64], sizes = [8, 32], strides = [1, 1]} : vector<8x128xf32> to vector<8x32xf32>
    %405 = arith.mulf %403, %404 : vector<8x32xf32>
    %406 = arith.addf %402, %405 : vector<8x32xf32>
    %407 = vector.extract_strided_slice %399 {offsets = [0, 96], sizes = [8, 32], strides = [1, 1]} : vector<8x128xf32> to vector<8x32xf32>
    %408 = math.tanh %406 : vector<8x32xf32>
    %409 = arith.mulf %407, %408 : vector<8x32xf32>
    %c48_118 = arith.constant 48 : index
    %c0_119 = arith.constant 0 : index
    %410 = vector.load %arg6[%c48_118, %c0_119] : memref<64x64xf32, #tpu.memory_space<vmem>>, vector<8x32xf32>
    tpu.vector_store %arg6[%c48_118, %c0_119], %392 {strides = array<i32>} : memref<64x64xf32, #tpu.memory_space<vmem>>, vector<8x32xf32>,
    %c8_120 = arith.constant 8 : index
    %c32_121 = arith.constant 32 : index
    %411 = vector.load %arg6[%c8_120, %c32_121] : memref<64x64xf32, #tpu.memory_space<vmem>>, vector<8x32xf32>
    tpu.vector_store %arg6[%c8_120, %c32_121], %409 {strides = array<i32>} : memref<64x64xf32, #tpu.memory_space<vmem>>, vector<8x32xf32>,
    %412 = tpu.concatenate %392, %409 in 1 : vector<8x32xf32>, vector<8x32xf32> -> vector<8x64xf32>
    %cst_122 = arith.constant dense<0.000000e+00> : vector<8x256xf32>
    %413 = tpu.matmul %412, %144, %cst_122 {dimension_numbers = #tpu.dot_dimension_numbers<[1], [0], [0], [1], [0, 0, 1, 1], [], []>} : vector<8x64xf32>, vector<64x256xf32>, vector<8x256xf32> -> vector<8x256xf32>
    %414 = vector.extract_strided_slice %413 {offsets = [0, 0], sizes = [8, 128], strides = [1, 1]} : vector<8x256xf32> to vector<8x128xf32>
    %415 = arith.addf %142, %414 : vector<8x128xf32>
    %416 = arith.negf %415 : vector<8x128xf32>
    %417 = math.exp %416 : vector<8x128xf32>
    %cst_123 = arith.constant 1.000000e+00 : f32
    %418 = vector.broadcast %cst_123 : f32 to vector<8x128xf32>
    %419 = arith.addf %418, %417 : vector<8x128xf32>
    %420 = arith.divf %418, %419 : vector<8x128xf32>
    %421 = math.tanh %415 : vector<8x128xf32>
    %422 = vector.extract_strided_slice %420 {offsets = [0, 32], sizes = [8, 32], strides = [1, 1]} : vector<8x128xf32> to vector<8x32xf32>
    %423 = arith.mulf %422, %389 : vector<8x32xf32>
    %424 = vector.extract_strided_slice %420 {offsets = [0, 0], sizes = [8, 32], strides = [1, 1]} : vector<8x128xf32> to vector<8x32xf32>
    %425 = vector.extract_strided_slice %421 {offsets = [0, 64], sizes = [8, 32], strides = [1, 1]} : vector<8x128xf32> to vector<8x32xf32>
    %426 = arith.mulf %424, %425 : vector<8x32xf32>
    %427 = arith.addf %423, %426 : vector<8x32xf32>
    %428 = vector.extract_strided_slice %420 {offsets = [0, 96], sizes = [8, 32], strides = [1, 1]} : vector<8x128xf32> to vector<8x32xf32>
    %429 = math.tanh %427 : vector<8x32xf32>
    %430 = arith.mulf %428, %429 : vector<8x32xf32>
    %431 = vector.extract_strided_slice %413 {offsets = [0, 128], sizes = [8, 128], strides = [1, 1]} : vector<8x256xf32> to vector<8x128xf32>
    %432 = arith.addf %101, %431 : vector<8x128xf32>
    %433 = arith.negf %432 : vector<8x128xf32>
    %434 = math.exp %433 : vector<8x128xf32>
    %cst_124 = arith.constant 1.000000e+00 : f32
    %435 = vector.broadcast %cst_124 : f32 to vector<8x128xf32>
    %436 = arith.addf %435, %434 : vector<8x128xf32>
    %437 = arith.divf %435, %436 : vector<8x128xf32>
    %438 = math.tanh %432 : vector<8x128xf32>
    %439 = vector.extract_strided_slice %437 {offsets = [0, 32], sizes = [8, 32], strides = [1, 1]} : vector<8x128xf32> to vector<8x32xf32>
    %440 = arith.mulf %439, %406 : vector<8x32xf32>
    %441 = vector.extract_strided_slice %437 {offsets = [0, 0], sizes = [8, 32], strides = [1, 1]} : vector<8x128xf32> to vector<8x32xf32>
    %442 = vector.extract_strided_slice %438 {offsets = [0, 64], sizes = [8, 32], strides = [1, 1]} : vector<8x128xf32> to vector<8x32xf32>
    %443 = arith.mulf %441, %442 : vector<8x32xf32>
    %444 = arith.addf %440, %443 : vector<8x32xf32>
    %445 = vector.extract_strided_slice %437 {offsets = [0, 96], sizes = [8, 32], strides = [1, 1]} : vector<8x128xf32> to vector<8x32xf32>
    %446 = math.tanh %444 : vector<8x32xf32>
    %447 = arith.mulf %445, %446 : vector<8x32xf32>
    %c56_125 = arith.constant 56 : index
    %c0_126 = arith.constant 0 : index
    %448 = vector.load %arg6[%c56_125, %c0_126] : memref<64x64xf32, #tpu.memory_space<vmem>>, vector<8x32xf32>
    tpu.vector_store %arg6[%c56_125, %c0_126], %430 {strides = array<i32>} : memref<64x64xf32, #tpu.memory_space<vmem>>, vector<8x32xf32>,
    %c0_127 = arith.constant 0 : index
    %c32_128 = arith.constant 32 : index
    %449 = vector.load %arg6[%c0_127, %c32_128] : memref<64x64xf32, #tpu.memory_space<vmem>>, vector<8x32xf32>
    tpu.vector_store %arg6[%c0_127, %c32_128], %447 {strides = array<i32>} : memref<64x64xf32, #tpu.memory_space<vmem>>, vector<8x32xf32>,
    %c1472 = arith.constant 1472 : index
    %c0_129 = arith.constant 0 : index
    %450 = vector.load %arg2[%c1472, %c0_129] : memref<1544x256xf32, #tpu.memory_space<vmem>>, vector<64x128xf32>
    %c1536 = arith.constant 1536 : index
    %c0_130 = arith.constant 0 : index
    %451 = vector.load %arg2[%c1536, %c0_130] : memref<1544x256xf32, #tpu.memory_space<vmem>>, vector<1x128xf32>
    %c0_131 = arith.constant 0 : index
    %c0_132 = arith.constant 0 : index
    %452 = vector.load %arg6[%c0_131, %c0_132] : memref<64x64xf32, #tpu.memory_space<vmem>>, vector<64x64xf32>
    %cst_133 = arith.constant dense<0.000000e+00> : vector<64x128xf32>
    %453 = tpu.matmul %452, %450, %cst_133 {dimension_numbers = #tpu.dot_dimension_numbers<[1], [0], [0], [1], [0, 0, 1, 1], [], []>} : vector<64x64xf32>, vector<64x128xf32>, vector<64x128xf32> -> vector<64x128xf32>
    %454 = vector.broadcast %451 : vector<1x128xf32> to vector<64x128xf32>
    %455 = arith.addf %453, %454 : vector<64x128xf32>
    %c0_134 = arith.constant 0 : index
    %c0_135 = arith.constant 0 : index
    %456 = vector.load %arg3[%c0_134, %c0_135] : memref<64x128xf32, #tpu.memory_space<vmem>>, vector<64x128xf32>
    tpu.vector_store %arg3[%c0_134, %c0_135], %455 {strides = array<i32>} : memref<64x128xf32, #tpu.memory_space<vmem>>, vector<64x128xf32>,
    return
  }
  func.func @transform_0(%arg0: i32) -> (i32, i32, i32) {
    %c0_i32 = arith.constant 0 : i32
    %c0_i32_0 = arith.constant 0 : i32
    %c0_i32_1 = arith.constant 0 : i32
    %c0_i32_2 = arith.constant 0 : i32
    return %c0_i32, %c0_i32_0, %c0_i32_1 : i32, i32, i32
  }
  func.func @transform_1(%arg0: i32) -> (i32, i32) {
    %c0_i32 = arith.constant 0 : i32
    %c0_i32_0 = arith.constant 0 : i32
    %c0_i32_1 = arith.constant 0 : i32
    return %c0_i32, %c0_i32_0 : i32, i32
  }
  func.func @transform_2(%arg0: i32) -> (i32, i32) {
    %c0_i32 = arith.constant 0 : i32
    %c0_i32_0 = arith.constant 0 : i32
    %c0_i32_1 = arith.constant 0 : i32
    return %c0_i32, %c0_i32_0 : i32, i32
  }
}

</mosaic_0001>

<bundles_post_ra>
// kernel: tile.14
= control target key start
LH: loop header
LB: loop body
LE: loop exit
PB: predicated region body
PF: predicated region fallthrough
CT: control target
= control target key end

     0   :  { %s28_s0 = inlined_call_operand.vmem [shape: f32[16], index: 0, kind: input, shape index: {}]   ;;  %s29_s1 = inlined_call_operand.vmem [shape: f32[16,16], index: 1, kind: output, shape index: {}]  }
   0x1   :  { %v4_v0 = vld [vmem:[%s28_s0] ss:$0 sm:$0xff] }
   0x2   :  { %5 = vst [vmem:[%s29_s1] sm:$0xff] %v4_v0  ;;  %8 = vst [vmem:[%s29_s1 + $0x8] sm:$0xff] %v4_v0 }

// kernel: tile.18
= control target key start
LH: loop header
LB: loop body
LE: loop exit
PB: predicated region body
PF: predicated region fallthrough
CT: control target
= control target key end

     0   :  { %s22_s0 = inlined_call_operand.vmem [shape: f32[32], index: 0, kind: input, shape index: {}]   ;;  %s23_s1 = inlined_call_operand.vmem [shape: f32[8,32], index: 1, kind: output, shape index: {}]  }
   0x1   :  { %v4_v0 = vld [vmem:[%s22_s0] ss:$0 sm:$0xff] }
   0x2   :  { %5 = vst [vmem:[%s23_s1] sm:$0xff] %v4_v0 }

// kernel: tile.15
= control target key start
LH: loop header
LB: loop body
LE: loop exit
PB: predicated region body
PF: predicated region fallthrough
CT: control target
= control target key end

     0   :  { %s7_s6 = smov 3  ;;  %s21_s9 = smov 3  ;;  %vm4_vm0 = vcmask 130048   ;;  %vm11_vm1 = vcmask 1048448   ;;  %vm18_vm2 = vcmask 917248   ;;  %vm25_vm3 = vcmask 786048   ;;  %s131_s0 = inlined_call_operand.vmem [shape: f32[16,16], index: 0, kind: input, shape index: {}]   ;;  %s132_s1 = inlined_call_operand.vmem [shape: f32[1,256], index: 1, kind: output, shape index: {}]  }
   0x1   :  { %v69_v0 = vld [vmem:[%s131_s0 + $0x7] ss:$8 sm:%s7_s6]   ;;  %s84_s10 = smov 112   ;;  %v71_v1 = vld [vmem:[%s131_s0 + $0x5] ss:$8 sm:%s21_s9]   ;;  %s14_s13 = smov 3 }
   0x2   :  { %9 = vrot.lane.b32.xlu0 %v69_v0, %s84_s10  ;;  %s85_s14 = smov 80   ;;  %v70_v2 = vld [vmem:[%s131_s0 + $0x6] ss:$8 sm:%s14_s13]   ;;  %s28_s17 = smov 3  ;;  %vm32_vm4 = vcmask 654848   ;;  %vm39_vm5 = vcmask 523648  }
   0x3   :  { %23 = vrot.lane.b32.xlu1 %v71_v1, %s85_s14  ;;  %v72_v3 = vld [vmem:[%s131_s0 + $0x4] ss:$8 sm:%s28_s17]   ;;  %s35_s20 = smov 3  ;;  %s42_s21 = smov 3  ;;  %vm46_vm6 = vcmask 392448   ;;  %vm53_vm7 = vcmask 261248  }
   0x4   :  { %s86_s22 = smov 96   ;;  %s87_s23 = smov 64   ;;  %v73_v4 = vld [vmem:[%s131_s0 + $0x3] ss:$8 sm:%s35_s20]   ;;  %v74_v5 = vld [vmem:[%s131_s0 + $0x2] ss:$8 sm:%s42_s21]  }
   0x5   :  { %s2_s26 = smov 3  ;;  %s49_s29 = smov 3 }
   0x6   :  { %16 = vrot.lane.b32.xlu0 %v70_v2, %s86_s22  ;;  %v3_v6 = vld [vmem:[%s131_s0] ss:$8 sm:%s2_s26]   ;;  %s88_s3 = smov 48   ;;  %s89_s4 = smov 32  }
   0x7   :  { %30 = vrot.lane.b32.xlu1 %v72_v3, %s87_s23  ;;  %5 = vst.msk [vmem:[#allocation0] ss:$8 sm:$0x3] %vm4_vm0, %v3_v6   ;;  %v75_v7 = vld [vmem:[%s131_s0 + $0x1] ss:$8 sm:%s49_s29]   ;;  %s90_s0 = smov 16  }
   0xa   :  { %37 = vrot.lane.b32.xlu0 %v73_v4, %s88_s3 }
   0xb   :  { %44 = vrot.lane.b32.xlu1 %v74_v5, %s89_s4 }
   0xe   :  { %51 = vrot.lane.b32.xlu0 %v75_v7, %s90_s0 }
  0x74   :  { %v10_v8 = vpop.permute.xlu0 %9  }
  0x75   :  { %12 = vst.msk [vmem:[#allocation0] ss:$8 sm:$0x3] %vm11_vm1, %v10_v8   ;;  %v24_v9 = vpop.permute.xlu1 %23  }
  0x78   :  { %v17_v10 = vpop.permute.xlu0 %16  }
  0x79   :  { %19 = vst.msk [vmem:[#allocation0] ss:$8 sm:$0x3] %vm18_vm2, %v17_v10   ;;  %v31_v11 = vpop.permute.xlu1 %30  }
  0x7a   :  { %26 = vst.msk [vmem:[#allocation0] ss:$8 sm:$0x3] %vm25_vm3, %v24_v9  }
  0x7b   :  { %33 = vst.msk [vmem:[#allocation0] ss:$8 sm:$0x3] %vm32_vm4, %v31_v11  }
  0x7c   :  { %v38_v12 = vpop.permute.xlu0 %37  }
  0x7d   :  { %40 = vst.msk [vmem:[#allocation0] ss:$8 sm:$0x3] %vm39_vm5, %v38_v12   ;;  %v45_v13 = vpop.permute.xlu1 %44  }
  0x7e   :  { %47 = vst.msk [vmem:[#allocation0] ss:$8 sm:$0x3] %vm46_vm6, %v45_v13  }
  0x80   :  { %v52_v14 = vpop.permute.xlu0 %51  }
  0x81   :  { %54 = vst.msk [vmem:[#allocation0] ss:$8 sm:$0x3] %vm53_vm7, %v52_v14  }
  0x88   :  { %v59_v15 = vld [vmem:[#allocation0] sm:$0x1]  ;;  %v64_v16 = vld [vmem:[#allocation0 + $0x8] sm:$0x1] }
  0x89   :  { %62 = vst [vmem:[%s132_s1] sm:$0x1] %v59_v15  ;;  %76 = vst [vmem:[%s132_s1 + $0x1] sm:$0x1] %v64_v16 }

// kernel: tile.19
= control target key start
LH: loop header
LB: loop body
LE: loop exit
PB: predicated region body
PF: predicated region fallthrough
CT: control target
= control target key end

     0   :  { %s7_s6 = smov 3  ;;  %s14_s9 = smov 3  ;;  %vm4_vm0 = vcmask 261120   ;;  %vm11_vm1 = vcmask 1048320   ;;  %vm18_vm2 = vcmask 785920   ;;  %vm25_vm3 = vcmask 523520   ;;  %s79_s0 = inlined_call_operand.vmem [shape: f32[8,32], index: 0, kind: input, shape index: {}]   ;;  %s80_s1 = inlined_call_operand.vmem [shape: f32[1,256], index: 1, kind: output, shape index: {}]  }
   0x1   :  { %v41_v0 = vld [vmem:[%s79_s0 + $0x3] ss:$4 sm:%s7_s6]   ;;  %s48_s10 = smov 96   ;;  %s21_s11 = smov 3  ;;  %v42_v1 = vld [vmem:[%s79_s0 + $0x2] ss:$4 sm:%s14_s9]  }
   0x2   :  { %9 = vrot.lane.b32.xlu0 %v41_v0, %s48_s10  ;;  %v43_v2 = vld [vmem:[%s79_s0 + $0x1] ss:$4 sm:%s21_s11]   ;;  %s2_s16 = smov 3  ;;  %s49_s17 = smov 32  }
   0x3   :  { %23 = vrot.lane.b32.xlu1 %v43_v2, %s49_s17  ;;  %v3_v3 = vld [vmem:[%s79_s0] ss:$4 sm:%s2_s16]   ;;  %s50_s0 = smov 64  }
   0x4   :  { %5 = vst.msk [vmem:[#allocation0] ss:$8 sm:$0x3] %vm4_vm0, %v3_v3  }
   0x6   :  { %16 = vrot.lane.b32.xlu0 %v42_v1, %s50_s0 }
  0x74   :  { %v10_v4 = vpop.permute.xlu0 %9  }
  0x75   :  { %12 = vst.msk [vmem:[#allocation0] ss:$8 sm:$0x3] %vm11_vm1, %v10_v4   ;;  %v24_v5 = vpop.permute.xlu1 %23  }
  0x78   :  { %v17_v6 = vpop.permute.xlu0 %16  }
  0x79   :  { %19 = vst.msk [vmem:[#allocation0] ss:$8 sm:$0x3] %vm18_vm2, %v17_v6  }
  0x7a   :  { %26 = vst.msk [vmem:[#allocation0] ss:$8 sm:$0x3] %vm25_vm3, %v24_v5  }
  0x81   :  { %v31_v7 = vld [vmem:[#allocation0] sm:$0x1]  ;;  %v36_v8 = vld [vmem:[#allocation0 + $0x8] sm:$0x1] }
  0x82   :  { %34 = vst [vmem:[%s80_s1] sm:$0x1] %v31_v7  ;;  %44 = vst [vmem:[%s80_s1 + $0x1] sm:$0x1] %v36_v8 }

// kernel: crann_forward.1
= control target key start
LH: loop header
LB: loop body
LE: loop exit
PB: predicated region body
PF: predicated region fallthrough
CT: control target
= control target key end

     0   :  { %v6322_v3 = vmov 0.0   ;;  %vm45_vm0 = vcmask 523264   ;;  %vm2029_vm1 = vcmask 261120   ;;  %s4182_s19 = smov 96   ;;  %s4183_s20 = smov 32   ;;  %vm2777_vm2 = vcmask 523520   ;;  %s6319_s1 = inlined_call_operand.vmem [shape: f32[1544,256], index: 1, kind: input, shape index: {}]   ;;  %s6320_s0 = inlined_call_operand.vmem [shape: f32[18,8,64], index: 0, kind: input, shape index: {}]   ;;  %s6321_s2 = inlined_call_operand.vmem [shape: f32[64,128], index: 2, kind: output, shape index: {}]  }
   0x1   :  { %v44_v0 = vld [vmem:[%s6319_s1 + $0x78] sm:$0xff]  ;;  %v43_v1 = vld [vmem:[%s6319_s1 + $0x70] sm:$0xff]  ;;  %v42_v2 = vld [vmem:[%s6319_s1 + $0x68] sm:$0xff]  ;;  %158 = vmatprep.mubr.f32.mxu0 %v6322_v3  ;;  %443 = vmatprep.mubr.f32.mxu1 %v6322_v3  ;;  %s4184_s28 = smov 64  }
   0x2   :  { %110 = vmatprep.subr.mxu0 %v44_v0  ;;  %v330_v4 = vld [vmem:[%s6319_s1 + $0xf8] sm:$0xff]  ;;  %v41_v5 = vld [vmem:[%s6319_s1 + $0x60] sm:$0xff]  ;;  %v329_v6 = vld [vmem:[%s6319_s1 + $0xf0] sm:$0xff] }
   0x3   :  { %111 = vmatpush1.msra.mxu0 %v43_v1  ;;  %395 = vmatprep.subr.mxu1 %v330_v4  ;;  %v40_v7 = vld [vmem:[%s6319_s1 + $0x58] sm:$0xff]  ;;  %v328_v8 = vld [vmem:[%s6319_s1 + $0xe8] sm:$0xff]  ;;  %v39_v9 = vld [vmem:[%s6319_s1 + $0x50] sm:$0xff] }
   0x4   :  { %112 = vmatprep.subr.mxu0 %v42_v2  ;;  %396 = vmatpush1.msra.mxu1 %v329_v6  ;;  %v327_v10 = vld [vmem:[%s6319_s1 + $0xe0] sm:$0xff]  ;;  %v326_v11 = vld [vmem:[%s6319_s1 + $0xd8] sm:$0xff]  ;;  %v38_v12 = vld [vmem:[%s6319_s1 + $0x48] sm:$0xff] }
   0x5   :  { %113 = vmatpush1.msra.mxu0 %v41_v5  ;;  %397 = vmatprep.subr.mxu1 %v328_v8  ;;  %v325_v13 = vld [vmem:[%s6319_s1 + $0xd0] sm:$0xff]  ;;  %v37_v14 = vld [vmem:[%s6319_s1 + $0x40] sm:$0xff]  ;;  %v324_v15 = vld [vmem:[%s6319_s1 + $0xc8] sm:$0xff] }
   0x6   :  { %114 = vmatprep.subr.mxu0 %v40_v7  ;;  %398 = vmatpush1.msra.mxu1 %v327_v10  ;;  %v36_v16 = vld [vmem:[%s6319_s1 + $0x38] sm:$0xff]  ;;  %v323_v17 = vld [vmem:[%s6319_s1 + $0xc0] sm:$0xff]  ;;  %v35_v18 = vld [vmem:[%s6319_s1 + $0x30] sm:$0xff] }
   0x7   :  { %115 = vmatpush1.msra.mxu0 %v39_v9  ;;  %399 = vmatprep.subr.mxu1 %v326_v11  ;;  %v322_v19 = vld [vmem:[%s6319_s1 + $0xb8] sm:$0xff]  ;;  %v34_v20 = vld [vmem:[%s6319_s1 + $0x28] sm:$0xff]  ;;  %v321_v21 = vld [vmem:[%s6319_s1 + $0xb0] sm:$0xff] }
   0x8   :  { %116 = vmatprep.subr.mxu0 %v38_v12  ;;  %400 = vmatpush1.msra.mxu1 %v325_v13  ;;  %v33_v22 = vld [vmem:[%s6319_s1 + $0x20] sm:$0xff]  ;;  %v320_v23 = vld [vmem:[%s6319_s1 + $0xa8] sm:$0xff]  ;;  %v32_v24 = vld [vmem:[%s6319_s1 + $0x18] sm:$0xff] }
   0x9   :  { %117 = vmatpush1.msra.mxu0 %v37_v14  ;;  %401 = vmatprep.subr.mxu1 %v324_v15  ;;  %v319_v25 = vld [vmem:[%s6319_s1 + $0xa0] sm:$0xff]  ;;  %v31_v26 = vld [vmem:[%s6319_s1 + $0x10] sm:$0xff]  ;;  %v318_v27 = vld [vmem:[%s6319_s1 + $0x98] sm:$0xff] }
   0xa   :  { %118 = vmatprep.subr.mxu0 %v36_v16  ;;  %402 = vmatpush1.msra.mxu1 %v323_v17  ;;  %v30_v28 = vld [vmem:[%s6319_s1 + $0x8] sm:$0xff]  ;;  %v317_v29 = vld [vmem:[%s6319_s1 + $0x90] sm:$0xff]  ;;  %v29_v30 = vld [vmem:[%s6319_s1] sm:$0xff] }
   0xb   :  { %119 = vmatpush1.msra.mxu0 %v35_v18  ;;  %403 = vmatprep.subr.mxu1 %v322_v19  ;;  %v316_v31 = vld [vmem:[%s6319_s1 + $0x88] sm:$0xff]  ;;  %v13_v32 = vld [vmem:[%s6320_s0] sm:$0xff]  ;;  %v604_v33 = vld [vmem:[%s6319_s1 + $0x178] sm:$0xff] }
   0xc   :  { %120 = vmatprep.subr.mxu0 %v34_v20  ;;  %404 = vmatpush1.msra.mxu1 %v321_v21  ;;  %v315_v34 = vld [vmem:[%s6319_s1 + $0x80] sm:$0xff]  ;;  %v603_v35 = vld [vmem:[%s6319_s1 + $0x170] sm:$0xff]  ;;  %v3899_v36 = vld [vmem:[%s6320_s0 + $0x8] sm:$0xff] }
   0xd   :  { %121 = vmatpush1.msra.mxu0 %v33_v22  ;;  %405 = vmatprep.subr.mxu1 %v320_v23  ;;  %v602_v37 = vld [vmem:[%s6319_s1 + $0x168] sm:$0xff]  ;;  %v601_v38 = vld [vmem:[%s6319_s1 + $0x160] sm:$0xff]  ;;  %v4323_v39 = vld [vmem:[%s6320_s0 + $0x10] sm:$0xff] }
   0xe   :  { %122 = vmatprep.subr.mxu0 %v32_v24  ;;  %406 = vmatpush1.msra.mxu1 %v319_v25  ;;  %v600_v40 = vld [vmem:[%s6319_s1 + $0x158] sm:$0xff]  ;;  %v599_v41 = vld [vmem:[%s6319_s1 + $0x150] sm:$0xff]  ;;  %v598_v42 = vld [vmem:[%s6319_s1 + $0x148] sm:$0xff] }
   0xf   :  { %123 = vmatpush1.msra.mxu0 %v31_v26  ;;  %407 = vmatprep.subr.mxu1 %v318_v27  ;;  %v597_v43 = vld [vmem:[%s6319_s1 + $0x140] sm:$0xff]  ;;  %v4345_v44 = vld [vmem:[%s6320_s0 + $0x18] sm:$0xff]  ;;  %v595_v46 = vld [vmem:[%s6319_s1 + $0x130] sm:$0xff] }
  0x10   :  { %124 = vmatprep.subr.mxu0 %v30_v28  ;;  %408 = vmatpush1.msra.mxu1 %v317_v29  ;;  %v596_v45 = vld [vmem:[%s6319_s1 + $0x138] sm:$0xff]  ;;  %v594_v47 = vld [vmem:[%s6319_s1 + $0x128] sm:$0xff]  ;;  %v593_v48 = vld [vmem:[%s6319_s1 + $0x120] sm:$0xff] }
  0x11   :  { %125 = vmatpush1.msra.mxu0 %v29_v30  ;;  %409 = vmatprep.subr.mxu1 %v316_v31  ;;  %v4368_v49 = vld [vmem:[%s6320_s0 + $0x20] sm:$0xff]  ;;  %v592_v50 = vld [vmem:[%s6319_s1 + $0x118] sm:$0xff]  ;;  %v591_v51 = vld [vmem:[%s6319_s1 + $0x110] sm:$0xff] }
  0x12   :  { %3883 = vmatmul.mubr.msk.f32.vlgmr.msra.gmra.mxu0 %vm45_vm0, %v13_v32  ;;  %669 = vmatprep.subr.mxu0 %v604_v33  ;;  %v590_v52 = vld [vmem:[%s6319_s1 + $0x108] sm:$0xff]  ;;  %v589_v53 = vld [vmem:[%s6319_s1 + $0x100] sm:$0xff]  ;;  %v4402_v55 = vld [vmem:[%s6320_s0 + $0x30] sm:$0xff] }
  0x13   :  { %410 = vmatpush1.msra.mxu1 %v315_v34  ;;  %670 = vmatpush1.msra.mxu0 %v603_v35  ;;  %v4391_v54 = vld [vmem:[%s6320_s0 + $0x28] sm:$0xff]  ;;  %v3905_v56 = vld [vmem:[%s6320_s0 + $0x38] sm:$0xff]  ;;  %v3906_v57 = vld [vmem:[%s6320_s0 + $0x40] sm:$0xff] }
  0x14   :  { %3915 = vmatmul.mubr.msk.f32.vlgmr.msra.gmra.mxu1 %vm45_vm0, %v3899_v36  ;;  %164 = vmatprep.mubr.f32.mxu0 %v6322_v3  ;;  %v3907_v58 = vld [vmem:[%s6320_s0 + $0x48] sm:$0xff]  ;;  %v3908_v59 = vld [vmem:[%s6320_s0 + $0x50] sm:$0xff]  ;;  %v3909_v60 = vld [vmem:[%s6320_s0 + $0x58] sm:$0xff] }
  0x15   :  { %449 = vmatprep.mubr.f32.mxu1 %v6322_v3  ;;  %671 = vmatprep.subr.mxu0 %v602_v37  ;;  %v3910_v61 = vld [vmem:[%s6320_s0 + $0x60] sm:$0xff]  ;;  %v3911_v62 = vld [vmem:[%s6320_s0 + $0x68] sm:$0xff]  ;;  %v3912_v63 = vld [vmem:[%s6320_s0 + $0x70] sm:$0xff] }
  0x16   :  { %3884 = vmatmul.mubr.msk.f32.gmra.mxu0 %vm45_vm0, %v3899_v36  ;;  %v3913_v0 = vld [vmem:[%s6320_s0 + $0x78] sm:$0xff]  ;;  %v4477_v1 = vld [vmem:[%s6320_s0 + $0x80] sm:$0xff]  ;;  %v954_v4 = vld [vmem:[%s6319_s1 + $0x270] sm:$0xff] }
  0x17   :  { %170 = vmatprep.mubr.f32.mxu0 %v6322_v3  ;;  %672 = vmatpush1.msra.mxu0 %v601_v38  ;;  %v955_v2 = vld [vmem:[%s6319_s1 + $0x278] sm:$0xff]  ;;  %v953_v5 = vld [vmem:[%s6319_s1 + $0x268] sm:$0xff]  ;;  %v952_v6 = vld [vmem:[%s6319_s1 + $0x260] sm:$0xff] }
  0x18   :  { %3916 = vmatmul.mubr.msk.f32.gmra.mxu1 %vm45_vm0, %v4323_v39  ;;  %673 = vmatprep.subr.mxu0 %v600_v40  ;;  %v951_v7 = vld [vmem:[%s6319_s1 + $0x258] sm:$0xff]  ;;  %v950_v8 = vld [vmem:[%s6319_s1 + $0x250] sm:$0xff]  ;;  %v949_v9 = vld [vmem:[%s6319_s1 + $0x248] sm:$0xff] }
  0x19   :  { %455 = vmatprep.mubr.f32.mxu1 %v6322_v3  ;;  %674 = vmatpush1.msra.mxu0 %v599_v41  ;;  %v948_v10 = vld [vmem:[%s6319_s1 + $0x240] sm:$0xff]  ;;  %v947_v11 = vld [vmem:[%s6319_s1 + $0x238] sm:$0xff]  ;;  %v946_v12 = vld [vmem:[%s6319_s1 + $0x230] sm:$0xff] }
  0x1a   :  { %3885 = vmatmul.mubr.msk.f32.gmra.mxu0 %vm45_vm0, %v4323_v39  ;;  %675 = vmatprep.subr.mxu0 %v598_v42  ;;  %v945_v13 = vld [vmem:[%s6319_s1 + $0x228] sm:$0xff]  ;;  %v944_v14 = vld [vmem:[%s6319_s1 + $0x220] sm:$0xff]  ;;  %v943_v15 = vld [vmem:[%s6319_s1 + $0x218] sm:$0xff] }
  0x1b   :  { %176 = vmatprep.mubr.f32.mxu0 %v6322_v3  ;;  %676 = vmatpush1.msra.mxu0 %v597_v43  ;;  %v1305_v16 = vld [vmem:[%s6319_s1 + $0x478] sm:$0xff]  ;;  %v942_v17 = vld [vmem:[%s6319_s1 + $0x210] sm:$0xff]  ;;  %v941_v19 = vld [vmem:[%s6319_s1 + $0x208] sm:$0xff] }
  0x1c   :  { %3917 = vmatmul.mubr.msk.f32.gmra.mxu1 %vm45_vm0, %v4345_v44  ;;  %677 = vmatprep.subr.mxu0 %v596_v45  ;;  %v1304_v18 = vld [vmem:[%s6319_s1 + $0x470] sm:$0xff]  ;;  %v1303_v20 = vld [vmem:[%s6319_s1 + $0x468] sm:$0xff]  ;;  %v940_v22 = vld [vmem:[%s6319_s1 + $0x200] sm:$0xff] }
  0x1d   :  { %461 = vmatprep.mubr.f32.mxu1 %v6322_v3  ;;  %678 = vmatpush1.msra.mxu0 %v595_v46  ;;  %v3946_v21 = vld [vmem:[%s6320_s0 + $0x88] sm:$0xff]  ;;  %v1302_v23 = vld [vmem:[%s6319_s1 + $0x460] sm:$0xff]  ;;  %v939_v24 = vld [vmem:[%s6319_s1 + $0x1f8] sm:$0xff] }
  0x1e   :  { %3886 = vmatmul.mubr.msk.f32.gmra.mxu0 %vm45_vm0, %v4345_v44  ;;  %679 = vmatprep.subr.mxu0 %v594_v47  ;;  %v1301_v25 = vld [vmem:[%s6319_s1 + $0x458] sm:$0xff]  ;;  %v938_v26 = vld [vmem:[%s6319_s1 + $0x1f0] sm:$0xff]  ;;  %v937_v28 = vld [vmem:[%s6319_s1 + $0x1e8] sm:$0xff] }
  0x1f   :  { %182 = vmatprep.mubr.f32.mxu0 %v6322_v3  ;;  %680 = vmatpush1.msra.mxu0 %v593_v48  ;;  %v1300_v27 = vld [vmem:[%s6319_s1 + $0x450] sm:$0xff]  ;;  %v1299_v29 = vld [vmem:[%s6319_s1 + $0x448] sm:$0xff]  ;;  %v936_v30 = vld [vmem:[%s6319_s1 + $0x1e0] sm:$0xff] }
  0x20   :  { %3918 = vmatmul.mubr.msk.f32.gmra.mxu1 %vm45_vm0, %v4368_v49  ;;  %681 = vmatprep.subr.mxu0 %v592_v50  ;;  %v1298_v31 = vld [vmem:[%s6319_s1 + $0x440] sm:$0xff]  ;;  %v935_v32 = vld [vmem:[%s6319_s1 + $0x1d8] sm:$0xff]  ;;  %v934_v34 = vld [vmem:[%s6319_s1 + $0x1d0] sm:$0xff] }
  0x21   :  { %467 = vmatprep.mubr.f32.mxu1 %v6322_v3  ;;  %682 = vmatpush1.msra.mxu0 %v591_v51  ;;  %v1297_v33 = vld [vmem:[%s6319_s1 + $0x438] sm:$0xff]  ;;  %v1296_v35 = vld [vmem:[%s6319_s1 + $0x430] sm:$0xff]  ;;  %v933_v36 = vld [vmem:[%s6319_s1 + $0x1c8] sm:$0xff] }
  0x22   :  { %3887 = vmatmul.mubr.msk.f32.gmra.mxu0 %vm45_vm0, %v4368_v49  ;;  %683 = vmatprep.subr.mxu0 %v590_v52  ;;  %v1295_v37 = vld [vmem:[%s6319_s1 + $0x428] sm:$0xff]  ;;  %v932_v38 = vld [vmem:[%s6319_s1 + $0x1c0] sm:$0xff]  ;;  %v931_v40 = vld [vmem:[%s6319_s1 + $0x1b8] sm:$0xff] }
  0x23   :  { %188 = vmatprep.mubr.f32.mxu0 %v6322_v3  ;;  %684 = vmatpush1.msra.mxu0 %v589_v53  ;;  %v1293_v41 = vld [vmem:[%s6319_s1 + $0x418] sm:$0xff]  ;;  %v930_v42 = vld [vmem:[%s6319_s1 + $0x1b0] sm:$0xff]  ;;  %v1291_v45 = vld [vmem:[%s6319_s1 + $0x408] sm:$0xff] }
  0x24   :  { %3919 = vmatmul.mubr.msk.f32.gmra.mxu1 %vm45_vm0, %v4391_v54  ;;  %956 = vmatprep.subr.mxu1 %v955_v2  ;;  %v1292_v43 = vld [vmem:[%s6319_s1 + $0x410] sm:$0xff]  ;;  %v928_v46 = vld [vmem:[%s6319_s1 + $0x1a0] sm:$0xff]  ;;  %v927_v48 = vld [vmem:[%s6319_s1 + $0x198] sm:$0xff] }
  0x25   :  { %473 = vmatprep.mubr.f32.mxu1 %v6322_v3  ;;  %957 = vmatpush1.msra.mxu1 %v954_v4  ;;  %v1290_v47 = vld [vmem:[%s6319_s1 + $0x400] sm:$0xff]  ;;  %v926_v50 = vld [vmem:[%s6319_s1 + $0x190] sm:$0xff]  ;;  %v925_v52 = vld [vmem:[%s6319_s1 + $0x188] sm:$0xff] }
  0x26   :  { %3888 = vmatmul.mubr.msk.f32.gmra.mxu0 %vm45_vm0, %v4391_v54  ;;  %958 = vmatprep.subr.mxu1 %v953_v5  ;;  %v1288_v51 = vld [vmem:[%s6319_s1 + $0x3f0] sm:$0xff]  ;;  %v1287_v53 = vld [vmem:[%s6319_s1 + $0x3e8] sm:$0xff]  ;;  %v1274_v4 = vld [vmem:[%s6319_s1 + $0x380] sm:$0xff] }
  0x27   :  { %194 = vmatprep.mubr.f32.mxu0 %v6322_v3  ;;  %959 = vmatpush1.msra.mxu1 %v952_v6  ;;  %v1275_v2 = vld [vmem:[%s6319_s1 + $0x388] sm:$0xff]  ;;  %v1135_v5 = vld [vmem:[%s6319_s1 + $0x378] sm:$0xff]  ;;  %v1134_v6 = vld [vmem:[%s6319_s1 + $0x370] sm:$0xff] }
  0x28   :  { %3920 = vmatmul.mubr.msk.f32.gmra.mxu1 %vm45_vm0, %v4402_v55  ;;  %960 = vmatprep.subr.mxu1 %v951_v7  ;;  %v1133_v7 = vld [vmem:[%s6319_s1 + $0x368] sm:$0xff] }
  0x29   :  { %479 = vmatprep.mubr.f32.mxu1 %v6322_v3  ;;  %961 = vmatpush1.msra.mxu1 %v950_v8  ;;  %v1132_v8 = vld [vmem:[%s6319_s1 + $0x360] sm:$0xff] }
  0x2a   :  { %3889 = vmatmul.mubr.msk.f32.gmra.mxu0 %vm45_vm0, %v4402_v55  ;;  %962 = vmatprep.subr.mxu1 %v949_v9  ;;  %v1131_v9 = vld [vmem:[%s6319_s1 + $0x358] sm:$0xff] }
  0x2b   :  { %200 = vmatprep.mubr.f32.mxu0 %v6322_v3  ;;  %963 = vmatpush1.msra.mxu1 %v948_v10  ;;  %v1130_v10 = vld [vmem:[%s6319_s1 + $0x350] sm:$0xff] }
  0x2c   :  { %3921 = vmatmul.mubr.msk.f32.gmra.mxu1 %vm45_vm0, %v3905_v56  ;;  %964 = vmatprep.subr.mxu1 %v947_v11  ;;  %v1129_v11 = vld [vmem:[%s6319_s1 + $0x348] sm:$0xff] }
  0x2d   :  { %485 = vmatprep.mubr.f32.mxu1 %v6322_v3  ;;  %965 = vmatpush1.msra.mxu1 %v946_v12  ;;  %v1128_v12 = vld [vmem:[%s6319_s1 + $0x340] sm:$0xff] }
  0x2e   :  { %3890 = vmatmul.mubr.msk.f32.gmra.mxu0 %vm45_vm0, %v3905_v56  ;;  %966 = vmatprep.subr.mxu1 %v945_v13  ;;  %v1127_v13 = vld [vmem:[%s6319_s1 + $0x338] sm:$0xff] }
  0x2f   :  { %206 = vmatprep.mubr.f32.mxu0 %v6322_v3  ;;  %967 = vmatpush1.msra.mxu1 %v944_v14  ;;  %v1126_v14 = vld [vmem:[%s6319_s1 + $0x330] sm:$0xff] }
  0x30   :  { %3922 = vmatmul.mubr.msk.f32.gmra.mxu1 %vm45_vm0, %v3906_v57  ;;  %968 = vmatprep.subr.mxu1 %v943_v15  ;;  %v1125_v15 = vld [vmem:[%s6319_s1 + $0x328] sm:$0xff] }
  0x31   :  { %491 = vmatprep.mubr.f32.mxu1 %v6322_v3  ;;  %1306 = vmatprep.subr.mxu0 %v1305_v16  ;;  %v1124_v16 = vld [vmem:[%s6319_s1 + $0x320] sm:$0xff] }
  0x32   :  { %3891 = vmatmul.mubr.msk.f32.gmra.mxu0 %vm45_vm0, %v3906_v57  ;;  %969 = vmatpush1.msra.mxu1 %v942_v17  ;;  %v1123_v17 = vld [vmem:[%s6319_s1 + $0x318] sm:$0xff] }
  0x33   :  { %212 = vmatprep.mubr.f32.mxu0 %v6322_v3  ;;  %970 = vmatprep.subr.mxu1 %v941_v19  ;;  %v1121_v19 = vld [vmem:[%s6319_s1 + $0x308] sm:$0xff] }
  0x34   :  { %3923 = vmatmul.mubr.msk.f32.gmra.mxu1 %vm45_vm0, %v3907_v58 }
  0x35   :  { %497 = vmatprep.mubr.f32.mxu1 %v6322_v3  ;;  %971 = vmatpush1.msra.mxu1 %v940_v22  ;;  %v1118_v22 = vld [vmem:[%s6319_s1 + $0x2f0] sm:$0xff] }
  0x36   :  { %3892 = vmatmul.mubr.msk.f32.gmra.mxu0 %vm45_vm0, %v3907_v58  ;;  %972 = vmatprep.subr.mxu1 %v939_v24  ;;  %v1116_v24 = vld [vmem:[%s6319_s1 + $0x2e0] sm:$0xff] }
  0x37   :  { %218 = vmatprep.mubr.f32.mxu0 %v6322_v3  ;;  %973 = vmatpush1.msra.mxu1 %v938_v26  ;;  %v1114_v26 = vld [vmem:[%s6319_s1 + $0x2d0] sm:$0xff] }
  0x38   :  { %3924 = vmatmul.mubr.msk.f32.gmra.mxu1 %vm45_vm0, %v3908_v59  ;;  %974 = vmatprep.subr.mxu1 %v937_v28  ;;  %v1112_v28 = vld [vmem:[%s6319_s1 + $0x2c0] sm:$0xff] }
  0x39   :  { %503 = vmatprep.mubr.f32.mxu1 %v6322_v3  ;;  %975 = vmatpush1.msra.mxu1 %v936_v30  ;;  %v1110_v30 = vld [vmem:[%s6319_s1 + $0x2b0] sm:$0xff] }
  0x3a   :  { %3893 = vmatmul.mubr.msk.f32.gmra.mxu0 %vm45_vm0, %v3908_v59  ;;  %976 = vmatprep.subr.mxu1 %v935_v32  ;;  %v1108_v32 = vld [vmem:[%s6319_s1 + $0x2a0] sm:$0xff] }
  0x3b   :  { %224 = vmatprep.mubr.f32.mxu0 %v6322_v3  ;;  %977 = vmatpush1.msra.mxu1 %v934_v34  ;;  %v1106_v34 = vld [vmem:[%s6319_s1 + $0x290] sm:$0xff] }
  0x3c   :  { %3925 = vmatmul.mubr.msk.f32.gmra.mxu1 %vm45_vm0, %v3909_v60  ;;  %978 = vmatprep.subr.mxu1 %v933_v36  ;;  %v1105_v36 = vld [vmem:[%s6319_s1 + $0x288] sm:$0xff] }
  0x3d   :  { %509 = vmatprep.mubr.f32.mxu1 %v6322_v3  ;;  %979 = vmatpush1.msra.mxu1 %v932_v38 }
  0x3e   :  { %3894 = vmatmul.mubr.msk.f32.gmra.mxu0 %vm45_vm0, %v3909_v60  ;;  %980 = vmatprep.subr.mxu1 %v931_v40 }
  0x3f   :  { %230 = vmatprep.mubr.f32.mxu0 %v6322_v3  ;;  %981 = vmatpush1.msra.mxu1 %v930_v42 }
  0x40   :  { %3926 = vmatmul.mubr.msk.f32.gmra.mxu1 %vm45_vm0, %v3910_v61 }
  0x41   :  { %515 = vmatprep.mubr.f32.mxu1 %v6322_v3 }
  0x42   :  { %3895 = vmatmul.mubr.msk.f32.gmra.mxu0 %vm45_vm0, %v3910_v61 }
  0x43   :  { %236 = vmatprep.mubr.f32.mxu0 %v6322_v3 }
  0x44   :  { %3927 = vmatmul.mubr.msk.f32.gmra.mxu1 %vm45_vm0, %v3911_v62 }
  0x45   :  { %521 = vmatprep.mubr.f32.mxu1 %v6322_v3 }
  0x46   :  { %3896 = vmatmul.mubr.msk.f32.gmra.mxu0 %vm45_vm0, %v3911_v62 }
  0x47   :  { %242 = vmatprep.mubr.f32.mxu0 %v6322_v3 }
  0x48   :  { %3928 = vmatmul.mubr.msk.f32.gmra.mxu1 %vm45_vm0, %v3912_v63 }
  0x49   :  { %527 = vmatprep.mubr.f32.mxu1 %v6322_v3 }
  0x4a   :  { %3897 = vmatmul.mubr.msk.f32.gmra.mxu0 %vm45_vm0, %v3912_v63 }
  0x4b   :  { %248 = vmatprep.mubr.f32.mxu0 %v6322_v3 }
  0x4c   :  { %3929 = vmatmul.mubr.msk.f32.gmra.mxu1 %vm45_vm0, %v3913_v0 }
  0x4d   :  { %533 = vmatprep.mubr.f32.mxu1 %v6322_v3 }
  0x4e   :  { %3898 = vmatmul.mubr.msk.f32.gmra.mxu0 %vm45_vm0, %v3913_v0 }
  0x4f   :  { %717 = vmatprep.mubr.f32.mxu0 %v6322_v3 }
  0x50   :  { %3930 = vmatmul.mubr.msk.f32.gmra.mxu1 %vm45_vm0, %v4477_v1 }
  0x51   :  { %1020 = vmatprep.mubr.f32.mxu1 %v6322_v3 }
  0x52   :  { %3947 = vmatmul.mubr.msk.f32.vlgmr.msra.gmra.mxu0 %vm45_vm0, %v4323_v39  ;;  %v1294_v39 = vld [vmem:[%s6319_s1 + $0x420] sm:$0xff] }
  0x53   :  { %723 = vmatprep.mubr.f32.mxu0 %v6322_v3  ;;  %1307 = vmatpush1.msra.mxu0 %v1304_v18  ;;  %v1122_v18 = vld [vmem:[%s6319_s1 + $0x310] sm:$0xff] }
  0x54   :  { %1308 = vmatprep.subr.mxu0 %v1303_v20  ;;  %v1120_v20 = vld [vmem:[%s6319_s1 + $0x300] sm:$0xff] }
  0x55   :  { %1309 = vmatpush1.msra.mxu0 %v1302_v23  ;;  %v1117_v23 = vld [vmem:[%s6319_s1 + $0x2e8] sm:$0xff] }
  0x56   :  { %3948 = vmatmul.mubr.msk.f32.gmra.mxu0 %vm45_vm0, %v4345_v44  ;;  %1310 = vmatprep.subr.mxu0 %v1301_v25  ;;  %v929_v44 = vld [vmem:[%s6319_s1 + $0x1a8] sm:$0xff]  ;;  %v1115_v25 = vld [vmem:[%s6319_s1 + $0x2d8] sm:$0xff] }
  0x57   :  { %729 = vmatprep.mubr.f32.mxu0 %v6322_v3  ;;  %1311 = vmatpush1.msra.mxu0 %v1300_v27  ;;  %v1113_v27 = vld [vmem:[%s6319_s1 + $0x2c8] sm:$0xff] }
  0x58   :  { %1312 = vmatprep.subr.mxu0 %v1299_v29  ;;  %982 = vmatprep.subr.mxu1 %v929_v44  ;;  %v1111_v29 = vld [vmem:[%s6319_s1 + $0x2b8] sm:$0xff] }
  0x59   :  { %1313 = vmatpush1.msra.mxu0 %v1298_v31  ;;  %983 = vmatpush1.msra.mxu1 %v928_v46  ;;  %v1109_v31 = vld [vmem:[%s6319_s1 + $0x2a8] sm:$0xff] }
  0x5a   :  { %3949 = vmatmul.mubr.msk.f32.gmra.mxu0 %vm45_vm0, %v4368_v49  ;;  %1314 = vmatprep.subr.mxu0 %v1297_v33  ;;  %v1289_v49 = vld [vmem:[%s6319_s1 + $0x3f8] sm:$0xff] }
  0x5b   :  { %735 = vmatprep.mubr.f32.mxu0 %v6322_v3  ;;  %1315 = vmatpush1.msra.mxu0 %v1296_v35  ;;  %v1107_v33 = vld [vmem:[%s6319_s1 + $0x298] sm:$0xff] }
  0x5c   :  { %1316 = vmatprep.subr.mxu0 %v1295_v37  ;;  %984 = vmatprep.subr.mxu1 %v927_v48  ;;  %v1104_v37 = vld [vmem:[%s6319_s1 + $0x280] sm:$0xff] }
  0x5d   :  { %1317 = vmatpush1.msra.mxu0 %v1294_v39  ;;  %985 = vmatpush1.msra.mxu1 %v926_v50 }
  0x5e   :  { %3950 = vmatmul.mubr.msk.f32.gmra.mxu0 %vm45_vm0, %v4391_v54  ;;  %1318 = vmatprep.subr.mxu0 %v1293_v41  ;;  %v924_v54 = vld [vmem:[%s6319_s1 + $0x180] sm:$0xff] }
  0x5f   :  { %741 = vmatprep.mubr.f32.mxu0 %v6322_v3  ;;  %1319 = vmatpush1.msra.mxu0 %v1292_v43 }
  0x60   :  { %1320 = vmatprep.subr.mxu0 %v1291_v45  ;;  %986 = vmatprep.subr.mxu1 %v925_v52 }
  0x61   :  { %1321 = vmatpush1.msra.mxu0 %v1290_v47  ;;  %987 = vmatpush1.msra.mxu1 %v924_v54 }
  0x62   :  { %3951 = vmatmul.mubr.msk.f32.gmra.mxu0 %vm45_vm0, %v4402_v55  ;;  %1322 = vmatprep.subr.mxu0 %v1289_v49  ;;  %v1286_v55 = vld [vmem:[%s6319_s1 + $0x3e0] sm:$0xff] }
  0x63   :  { %747 = vmatprep.mubr.f32.mxu0 %v6322_v3  ;;  %1323 = vmatpush1.msra.mxu0 %v1288_v51 }
  0x64   :  { %1324 = vmatprep.subr.mxu0 %v1287_v53  ;;  %1021 = vmatmul.mubr.f32.vlgmr.msra.gmra.mxu1 %v6322_v3 }
  0x65   :  { %1325 = vmatpush1.msra.mxu0 %v1286_v55  ;;  %1026 = vmatprep.mubr.f32.mxu1 %v6322_v3 }
  0x66   :  { %3952 = vmatmul.mubr.msk.f32.gmra.mxu0 %vm45_vm0, %v3905_v56  ;;  %v1285_v56 = vld [vmem:[%s6319_s1 + $0x3d8] sm:$0xff]  ;;  %1136 = vmatprep.subr.mxu1 %v1135_v5 }
  0x67   :  { %753 = vmatprep.mubr.f32.mxu0 %v6322_v3  ;;  %1326 = vmatprep.subr.mxu0 %v1285_v56 }
  0x68   :  { %1137 = vmatpush1.msra.mxu1 %v1134_v6 }
  0x69   :  { %1138 = vmatprep.subr.mxu1 %v1133_v7 }
  0x6a   :  { %3953 = vmatmul.mubr.msk.f32.gmra.mxu0 %vm45_vm0, %v3906_v57  ;;  %v1284_v57 = vld [vmem:[%s6319_s1 + $0x3d0] sm:$0xff]  ;;  %1139 = vmatpush1.msra.mxu1 %v1132_v8 }
  0x6b   :  { %759 = vmatprep.mubr.f32.mxu0 %v6322_v3  ;;  %1327 = vmatpush1.msra.mxu0 %v1284_v57 }
  0x6c   :  { %1140 = vmatprep.subr.mxu1 %v1131_v9 }
  0x6d   :  { %1141 = vmatpush1.msra.mxu1 %v1130_v10 }
  0x6e   :  { %3954 = vmatmul.mubr.msk.f32.gmra.mxu0 %vm45_vm0, %v3907_v58  ;;  %v1283_v58 = vld [vmem:[%s6319_s1 + $0x3c8] sm:$0xff]  ;;  %1142 = vmatprep.subr.mxu1 %v1129_v11 }
  0x6f   :  { %765 = vmatprep.mubr.f32.mxu0 %v6322_v3  ;;  %1328 = vmatprep.subr.mxu0 %v1283_v58 }
  0x70   :  { %1143 = vmatpush1.msra.mxu1 %v1128_v12  ;;  %v256_v12 = vlaneseq }
  0x71   :  { %1144 = vmatprep.subr.mxu1 %v1127_v13 }
  0x72   :  { %3955 = vmatmul.mubr.msk.f32.gmra.mxu0 %vm45_vm0, %v3908_v59  ;;  %v1282_v59 = vld [vmem:[%s6319_s1 + $0x3c0] sm:$0xff]  ;;  %1145 = vmatpush1.msra.mxu1 %v1126_v14 }
  0x73   :  { %771 = vmatprep.mubr.f32.mxu0 %v6322_v3  ;;  %1329 = vmatpush1.msra.mxu0 %v1282_v59 }
  0x74   :  { %1146 = vmatprep.subr.mxu1 %v1125_v15 }
  0x75   :  { %1147 = vmatpush1.msra.mxu1 %v1124_v16  ;;  %v257_v16 = vshrl.u32 %v256_v12, 7 }
  0x76   :  { %3956 = vmatmul.mubr.msk.f32.gmra.mxu0 %vm45_vm0, %v3909_v60  ;;  %v1281_v60 = vld [vmem:[%s6319_s1 + $0x3b8] sm:$0xff]  ;;  %1148 = vmatprep.subr.mxu1 %v1123_v17 }
  0x77   :  { %777 = vmatprep.mubr.f32.mxu0 %v6322_v3  ;;  %1330 = vmatprep.subr.mxu0 %v1281_v60 }
  0x78   :  { %1149 = vmatpush1.msra.mxu1 %v1122_v18 }
  0x79   :  { %1150 = vmatprep.subr.mxu1 %v1121_v19 }
  0x7a   :  { %3957 = vmatmul.mubr.msk.f32.gmra.mxu0 %vm45_vm0, %v3910_v61  ;;  %v1280_v61 = vld [vmem:[%s6319_s1 + $0x3b0] sm:$0xff]  ;;  %1151 = vmatpush1.msra.mxu1 %v1120_v20  ;;  %v4892_v20 = vsub.s32 0, %v257_v16 }
  0x7b   :  { %783 = vmatprep.mubr.f32.mxu0 %v6322_v3  ;;  %1331 = vmatpush1.msra.mxu0 %v1280_v61 }
  0x7c   :  { %6328 = vst [vmem:[#allocation5_spill] sm:$0xff] %v4892_v20 }
  0x7e   :  { %3958 = vmatmul.mubr.msk.f32.gmra.mxu0 %vm45_vm0, %v3911_v62  ;;  %v1279_v62 = vld [vmem:[%s6319_s1 + $0x3a8] sm:$0xff] }
  0x7f   :  { %789 = vmatprep.mubr.f32.mxu0 %v6322_v3  ;;  %1332 = vmatprep.subr.mxu0 %v1279_v62  ;;  %v1514_v62 = vld [vmem:[%s6319_s1 + $0x578] sm:$0xff] }
  0x82   :  { %3959 = vmatmul.mubr.msk.f32.gmra.mxu0 %vm45_vm0, %v3912_v63  ;;  %v1278_v63 = vld [vmem:[%s6319_s1 + $0x3a0] sm:$0xff] }
  0x83   :  { %795 = vmatprep.mubr.f32.mxu0 %v6322_v3  ;;  %1333 = vmatpush1.msra.mxu0 %v1278_v63 }
  0x86   :  { %3960 = vmatmul.mubr.msk.f32.gmra.mxu0 %vm45_vm0, %v3913_v0  ;;  %v1277_v0 = vld [vmem:[%s6319_s1 + $0x398] sm:$0xff] }
  0x87   :  { %801 = vmatprep.mubr.f32.mxu0 %v6322_v3  ;;  %1334 = vmatprep.subr.mxu0 %v1277_v0 }
  0x8a   :  { %3961 = vmatmul.mubr.msk.f32.gmra.mxu0 %vm45_vm0, %v4477_v1  ;;  %v1276_v1 = vld [vmem:[%s6319_s1 + $0x390] sm:$0xff] }
  0x8b   :  { %807 = vmatprep.mubr.f32.mxu0 %v6322_v3  ;;  %1335 = vmatpush1.msra.mxu0 %v1276_v1 }
  0x8c   :  { %1336 = vmatprep.subr.mxu0 %v1275_v2 }
  0x8d   :  { %1337 = vmatpush1.msra.mxu0 %v1274_v4 }
  0x8e   :  { %3962 = vmatmul.mubr.msk.f32.gmra.mxu0 %vm45_vm0, %v3946_v21  ;;  %v1119_v21 = vld [vmem:[%s6319_s1 + $0x2f8] sm:$0xff] }
  0x8f   :  { %1370 = vmatprep.mubr.f32.mxu0 %v6322_v3  ;;  %1152 = vmatprep.subr.mxu1 %v1119_v21  ;;  %v4894_v21 = vsub.s32 1, %v257_v16 }
  0x90   :  { %1153 = vmatpush1.msra.mxu1 %v1118_v22  ;;  %v3882_v22 = vld [vmem:[%s6319_s1 + $0xa80] ss:$8 sm:$0x3] }
  0x91   :  { %1154 = vmatprep.subr.mxu1 %v1117_v23  ;;  %6329 = vst [vmem:[#allocation6_spill] sm:$0xff] %v4894_v21 }
  0x92   :  { %1155 = vmatpush1.msra.mxu1 %v1116_v24 }
  0x93   :  { %1156 = vmatprep.subr.mxu1 %v1115_v25 }
  0x94   :  { %1157 = vmatpush1.msra.mxu1 %v1114_v26  ;;  %v4906_v26 = vrot.slane %v3882_v22, %v4892_v20 }
  0x95   :  { %1158 = vmatprep.subr.mxu1 %v1113_v27  ;;  %v4909_v27 = vrot.slane %v3882_v22, %v4894_v21 }
  0x96   :  { %1159 = vmatpush1.msra.mxu1 %v1112_v28 }
  0x97   :  { %1160 = vmatprep.subr.mxu1 %v1111_v29 }
  0x98   :  { %1161 = vmatpush1.msra.mxu1 %v1110_v30 }
  0x99   :  { %1162 = vmatprep.subr.mxu1 %v1109_v31 }
  0x9a   :  { %1163 = vmatpush1.msra.mxu1 %v1108_v32 }
  0x9b   :  { %1164 = vmatprep.subr.mxu1 %v1107_v33 }
  0x9c   :  { %1165 = vmatpush1.msra.mxu1 %v1106_v34 }
  0x9d   :  { %1166 = vmatprep.subr.mxu1 %v1105_v36 }
  0x9e   :  { %1167 = vmatpush1.msra.mxu1 %v1104_v37 }
  0x9f   :  { %1547 = vmatprep.subr.mxu1 %v1514_v62 }
  0xd2   :  { %v4809_v35 = vpop.f32.mrf.mxu0 }
  0xd3   :  { %v266_v31 = vadd.f32 %v4906_v26, %v4809_v35 }
  0xd4   :  { %v162_v38 = vpop.f32.mrf.mxu0  ;;  %v4817_v39 = vpop.f32.mrf.mxu1 }
  0xd5   :  { %v267_v32 = vadd.f32 %v4909_v27, %v162_v38  ;;  %v540_v12 = vadd.f32 %v4817_v39, %v266_v31 }
  0xd6   :  { %v166_v40 = vpop.f32.mrf.mxu0  ;;  %v447_v41 = vpop.f32.mrf.mxu1 }
  0xd7   :  { %v268_v33 = vadd.f32 %v4906_v26, %v166_v40  ;;  %v541_v16 = vadd.f32 %v447_v41, %v267_v32 }
  0xd8   :  { %v168_v42 = vpop.f32.mrf.mxu0  ;;  %v451_v43 = vpop.f32.mrf.mxu1 }
  0xd9   :  { %v269_v36 = vadd.f32 %v4909_v27, %v168_v42  ;;  %v542_v22 = vadd.f32 %v451_v43, %v268_v33 }
  0xda   :  { %v4819_v44 = vpop.f32.mrf.mxu0  ;;  %v453_v45 = vpop.f32.mrf.mxu1 }
  0xdb   :  { %v543_v21 = vadd.f32 %v453_v45, %v269_v36  ;;  %v270_v38 = vadd.f32 %v4906_v26, %v4819_v44 }
  0xdc   :  { %v4821_v46 = vpop.f32.mrf.mxu0  ;;  %v4825_v48 = vpop.f32.mrf.mxu1 }
  0xdd   :  { %v271_v42 = vadd.f32 %v4909_v27, %v4821_v46  ;;  %v544_v44 = vadd.f32 %v4825_v48, %v270_v38 }
  0xde   :  { %v4823_v47 = vpop.f32.mrf.mxu0  ;;  %v4831_v51 = vpop.f32.mrf.mxu1 }
  0xdf   :  { %v545_v36 = vadd.f32 %v4831_v51, %v271_v42  ;;  %v6333_v42 = vmov 0.0  }
  0xe0   :  { %v4827_v49 = vpop.f32.mrf.mxu0  ;;  %v4837_v54 = vpop.f32.mrf.mxu1 }
  0xe1   :  { %v273_v43 = vadd.f32 %v4909_v27, %v4827_v49 }
  0xe2   :  { %v4829_v50 = vpop.f32.mrf.mxu0  ;;  %v4843_v57 = vpop.f32.mrf.mxu1 }
  0xe3   :  { %v274_v48 = vadd.f32 %v4906_v26, %v4829_v50 }
  0xe4   :  { %v4833_v52 = vpop.f32.mrf.mxu0  ;;  %v4849_v60 = vpop.f32.mrf.mxu1 }
  0xe5   :  { %v275_v51 = vadd.f32 %v4909_v27, %v4833_v52  ;;  %v548_v52 = vadd.f32 %v4849_v60, %v274_v48 }
  0xe6   :  { %v4835_v53 = vpop.f32.mrf.mxu0  ;;  %v4858_v0 = vpop.f32.mrf.mxu1 }
  0xe8   :  { %v4839_v55 = vpop.f32.mrf.mxu0  ;;  %v4864_v4 = vpop.f32.mrf.mxu1 }
  0xe9   :  { %v277_v38 = vadd.f32 %v4909_v27, %v4839_v55 }
  0xea   :  { %v4841_v56 = vpop.f32.mrf.mxu0  ;;  %v4870_v7 = vpop.f32.mrf.mxu1 }
  0xeb   :  { %v278_v60 = vadd.f32 %v4906_v26, %v4841_v56 }
  0xec   :  { %v4845_v58 = vpop.f32.mrf.mxu0  ;;  %v4876_v10 = vpop.f32.mrf.mxu1 }
  0xee   :  { %v4847_v59 = vpop.f32.mrf.mxu0  ;;  %v4882_v14 = vpop.f32.mrf.mxu1 }
  0xf0   :  { %v4851_v61 = vpop.f32.mrf.mxu0  ;;  %v4888_v18 = vpop.f32.mrf.mxu1 }
  0xf2   :  { %v4856_v63 = vpop.f32.mrf.mxu0  ;;  %v4901_v24 = vpop.f32.mrf.mxu1 }
  0xf4   :  { %v4860_v1 = vpop.f32.mrf.mxu0  ;;  %v4913_v29 = vpop.f32.mrf.mxu1 }
  0xf6   :  { %v4862_v2 = vpop.f32.mrf.mxu0  ;;  %v4922_v37 = vpop.f32.mrf.mxu1 }
  0xf8   :  { %v4866_v5 = vpop.f32.mrf.mxu0  ;;  %v4925_v20 = vpop.f32.mrf.mxu1 }
  0xfa   :  { %v4868_v6 = vpop.f32.mrf.mxu0  ;;  %v4935_v31 = vpop.f32.mrf.mxu1 }
  0xfc   :  { %v4872_v8 = vpop.f32.mrf.mxu0 }
  0xfe   :  { %v4874_v9 = vpop.f32.mrf.mxu0 }
 0x100   :  { %v4878_v11 = vpop.f32.mrf.mxu0 }
 0x102   :  { %v4880_v13 = vpop.f32.mrf.mxu0 }
 0x104   :  { %v4884_v15 = vpop.f32.mrf.mxu0 }
 0x106   :  { %v4886_v17 = vpop.f32.mrf.mxu0 }
 0x108   :  { %v4890_v19 = vpop.f32.mrf.mxu0 }
 0x10a   :  { %v4899_v23 = vpop.f32.mrf.mxu0 }
 0x10c   :  { %v4903_v25 = vpop.f32.mrf.mxu0 }
 0x10d   :  { %6330 = vst [vmem:[#allocation7_spill] sm:$0xff] %v4903_v25  ;;  %v272_v25 = vadd.f32 %v4906_v26, %v4823_v47 }
 0x10e   :  { %v4911_v28 = vpop.f32.mrf.mxu0 }
 0x10f   :  { %6331 = vst [vmem:[#allocation8_spill] sm:$0xff] %v4911_v28  ;;  %v546_v46 = vadd.f32 %v4837_v54, %v272_v25  ;;  %v276_v54 = vadd.f32 %v4906_v26, %v4835_v53  ;;  %v549_v53 = vadd.f32 %v4858_v0, %v275_v51  ;;  %v279_v0 = vadd.f32 %v4909_v27, %v4845_v58 }
 0x110   :  { %v4915_v30 = vpop.f32.mrf.mxu0 }
 0x111   :  { %6332 = vst [vmem:[#allocation9_spill] sm:$0xff] %v4915_v30  ;;  %v553_v51 = vadd.f32 %v4882_v14, %v279_v0  ;;  %v283_v14 = vadd.f32 %v4909_v27, %v4860_v1 }
 0x112   :  { %v719_v34 = vpop.f32.mrf.mxu0 }
 0x113   :  { %v814_v30 = vadd.f32 %v719_v34, %v540_v12  ;;  %v4941_v12 = vpop.f32.mrf.mxu1 }
 0x114   :  { %v721_v62 = vpop.f32.mrf.mxu0 }
 0x115   :  { %v815_v35 = vadd.f32 %v721_v62, %v541_v16  ;;  %v846_v32 = vmax.f32 %v814_v30, 0.0 }
 0x116   :  { %v725_v3 = vpop.f32.mrf.mxu0 }
 0x117   :  { %v816_v28 = vadd.f32 %v725_v3, %v542_v22  ;;  %v847_v3 = vmax.f32 %v815_v35, 0.0 }
 0x118   :  { %v727_v40 = vpop.f32.mrf.mxu0 }
 0x119   :  { %v848_v39 = vmax.f32 %v816_v28, 0.0  ;;  %v817_v41 = vadd.f32 %v727_v40, %v543_v21  ;;  %v547_v21 = vadd.f32 %v4843_v57, %v273_v43 }
 0x11a   :  { %v731_v45 = vpop.f32.mrf.mxu0 }
 0x11b   :  { %v849_v33 = vmax.f32 %v817_v41, 0.0  ;;  %v878_v62 = vmax.f32 %v846_v32, %v848_v39  ;;  %v818_v49 = vadd.f32 %v731_v45, %v544_v44  ;;  %v4955_v39 = vpop.f32.mrf.mxu1  ;;  %v550_v32 = vadd.f32 %v4864_v4, %v276_v54 }
 0x11c   :  { %v733_v34 = vpop.f32.mrf.mxu0  ;;  %v551_v44 = vadd.f32 %v4870_v7, %v277_v38  ;;  %v280_v4 = vadd.f32 %v4906_v26, %v4847_v59  ;;  %v552_v59 = vadd.f32 %v4876_v10, %v278_v60  ;;  %v282_v10 = vadd.f32 %v4906_v26, %v4856_v63 }
 0x11d   :  { %v879_v47 = vmax.f32 %v847_v3, %v849_v33  ;;  %v819_v16 = vadd.f32 %v733_v34, %v545_v36  ;;  %v850_v50 = vmax.f32 %v818_v49, 0.0  ;;  %v4961_v34 = vpop.f32.mrf.mxu1  ;;  %v281_v49 = vadd.f32 %v4909_v27, %v4851_v61 }
 0x11e   :  { %v737_v28 = vpop.f32.mrf.mxu0  ;;  %v554_v54 = vadd.f32 %v4888_v18, %v280_v4  ;;  %v284_v18 = vadd.f32 %v4906_v26, %v4862_v2  ;;  %v556_v2 = vadd.f32 %v4913_v29, %v282_v10 }
 0x11f   :  { %v820_v22 = vadd.f32 %v737_v28, %v546_v46  ;;  %v4943_v30 = vmax.f32 %v878_v62, %v879_v47  ;;  %v851_v41 = vmax.f32 %v819_v16, 0.0  ;;  %v4977_v56 = vpop.f32.mrf.mxu1  ;;  %v555_v61 = vadd.f32 %v4901_v24, %v281_v49 }
 0x120   :  { %v739_v35 = vpop.f32.mrf.mxu0 }
 0x121   :  { %v852_v25 = vmax.f32 %v820_v22, 0.0  ;;  %v821_v57 = vadd.f32 %v739_v35, %v547_v21  ;;  %1027 = vmatmul.mubr.f32.gmra.mxu1 %v4943_v30 }
 0x122   :  { %v743_v40 = vpop.f32.mrf.mxu0  ;;  %1032 = vmatprep.mubr.f32.mxu1 %v6333_v42 }
 0x123   :  { %v853_v43 = vmax.f32 %v821_v57, 0.0  ;;  %v880_v3 = vmax.f32 %v850_v50, %v852_v25  ;;  %v822_v36 = vadd.f32 %v743_v40, %v548_v52  ;;  %v4983_v40 = vpop.f32.mrf.mxu1 }
 0x124   :  { %v745_v45 = vpop.f32.mrf.mxu0 }
 0x125   :  { %v881_v33 = vmax.f32 %v851_v41, %v853_v43  ;;  %v823_v46 = vadd.f32 %v745_v45, %v549_v53  ;;  %v854_v58 = vmax.f32 %v822_v36, 0.0  ;;  %v4999_v63 = vpop.f32.mrf.mxu1  ;;  %v557_v36 = vadd.f32 %v4922_v37, %v283_v14 }
 0x126   :  { %v749_v55 = vpop.f32.mrf.mxu0  ;;  %v287_v37 = vadd.f32 %v4909_v27, %v4872_v8  ;;  %v290_v14 = vadd.f32 %v4906_v26, %v4880_v13 }
 0x127   :  { %v824_v62 = vadd.f32 %v749_v55, %v550_v32  ;;  %v4963_v47 = vmax.f32 %v880_v3, %v881_v33  ;;  %v855_v22 = vmax.f32 %v823_v46, 0.0  ;;  %v285_v32 = vadd.f32 %v4909_v27, %v4866_v5  ;;  %v523_v0 = vpop.f32.mrf.mxu1 }
 0x128   :  { %v751_v21 = vpop.f32.mrf.mxu0  ;;  %v558_v46 = vadd.f32 %v4925_v20, %v284_v18  ;;  %v288_v20 = vadd.f32 %v4906_v26, %v4874_v9 }
 0x129   :  { %v856_v28 = vmax.f32 %v824_v62, 0.0  ;;  %v825_v7 = vadd.f32 %v751_v21, %v551_v44  ;;  %1033 = vmatmul.mubr.f32.gmra.mxu1 %v4963_v47  ;;  %1371 = vmatmul.mubr.f32.vlgmr.msra.gmra.mxu0 %v4963_v47  ;;  %v559_v5 = vadd.f32 %v4935_v31, %v285_v32  ;;  %v289_v31 = vadd.f32 %v4909_v27, %v4878_v11 }
 0x12a   :  { %v755_v16 = vpop.f32.mrf.mxu0  ;;  %1038 = vmatprep.mubr.f32.mxu1 %v6333_v42  ;;  %1376 = vmatprep.mubr.f32.mxu0 %v6333_v42 }
 0x12b   :  { %v857_v48 = vmax.f32 %v825_v7, 0.0  ;;  %v882_v25 = vmax.f32 %v854_v58, %v856_v28  ;;  %v826_v50 = vadd.f32 %v755_v16, %v552_v59  ;;  %v286_v16 = vadd.f32 %v4906_v26, %v4868_v6  ;;  %v525_v6 = vpop.f32.mrf.mxu1 }
 0x12c   :  { %v757_v35 = vpop.f32.mrf.mxu0  ;;  %v563_v11 = vadd.f32 %v4977_v56, %v289_v31  ;;  %v293_v56 = vadd.f32 %v4909_v27, %v4890_v19 }
 0x12d   :  { %v883_v57 = vmax.f32 %v855_v22, %v857_v48  ;;  %v827_v41 = vadd.f32 %v757_v35, %v553_v51  ;;  %v858_v1 = vmax.f32 %v826_v50, 0.0  ;;  %v560_v9 = vadd.f32 %v4941_v12, %v286_v16  ;;  %v529_v50 = vpop.f32.mrf.mxu1  ;;  %v6335_v16 = vld [vmem:[#allocation8_spill] sm:$0xff] }
 0x12e   :  { %v761_v38 = vpop.f32.mrf.mxu0 }
 0x12f   :  { %v828_v43 = vadd.f32 %v761_v38, %v554_v54  ;;  %v4985_v52 = vmax.f32 %v882_v25, %v883_v57  ;;  %v859_v33 = vmax.f32 %v827_v41, 0.0  ;;  %v561_v54 = vadd.f32 %v4955_v39, %v287_v37  ;;  %v531_v13 = vpop.f32.mrf.mxu1  ;;  %v6336_v37 = vld [vmem:[#allocation9_spill] sm:$0xff] }
 0x130   :  { %v763_v45 = vpop.f32.mrf.mxu0  ;;  %v562_v25 = vadd.f32 %v4961_v34, %v288_v20  ;;  %v291_v39 = vadd.f32 %v4909_v27, %v4884_v15  ;;  %v292_v34 = vadd.f32 %v4906_v26, %v4886_v17  ;;  %v564_v17 = vadd.f32 %v4983_v40, %v290_v14  ;;  %v1513_v14 = vld [vmem:[%s6319_s1 + $0x570] sm:$0xff] }
 0x131   :  { %v860_v53 = vmax.f32 %v828_v43, 0.0  ;;  %v829_v24 = vadd.f32 %v763_v45, %v555_v61  ;;  %1039 = vmatmul.mubr.f32.gmra.mxu1 %v4985_v52  ;;  %1377 = vmatmul.mubr.f32.gmra.mxu0 %v4985_v52  ;;  %v535_v19 = vpop.f32.mrf.mxu1  ;;  %v297_v20 = vadd.f32 %v4909_v27, %v6336_v37  ;;  %v1686_v37 = vld [vmem:[%s6319_s1 + $0x738] sm:$0xff] }
 0x132   :  { %v767_v3 = vpop.f32.mrf.mxu0  ;;  %1044 = vmatprep.mubr.f32.mxu1 %v6333_v42  ;;  %1382 = vmatprep.mubr.f32.mxu0 %v6333_v42 }
 0x133   :  { %v861_v44 = vmax.f32 %v829_v24, 0.0  ;;  %v884_v62 = vmax.f32 %v858_v1, %v860_v53  ;;  %v830_v4 = vadd.f32 %v767_v3, %v556_v2 }
 0x134   :  { %v769_v55 = vpop.f32.mrf.mxu0 }
 0x135   :  { %v885_v60 = vmax.f32 %v859_v33, %v861_v44  ;;  %v831_v28 = vadd.f32 %v769_v55, %v557_v36  ;;  %v862_v59 = vmax.f32 %v830_v4, 0.0  ;;  %v565_v33 = vadd.f32 %v4999_v63, %v291_v39 }
 0x136   :  { %v773_v21 = vpop.f32.mrf.mxu0  ;;  %v566_v44 = vadd.f32 %v523_v0, %v292_v34  ;;  %v567_v36 = vadd.f32 %v525_v6, %v293_v56  ;;  %v294_v4 = vadd.f32 %v4906_v26, %v4899_v23  ;;  %v296_v63 = vadd.f32 %v4906_v26, %v6335_v16  ;;  %v537_v23 = vpop.f32.mrf.mxu1  ;;  %v1510_v56 = vld [vmem:[%s6319_s1 + $0x558] sm:$0xff]  ;;  %v1688_v16 = vld [vmem:[%s6319_s1 + $0x748] sm:$0xff] }
 0x137   :  { %v832_v7 = vadd.f32 %v773_v21, %v558_v46  ;;  %v5005_v49 = vmax.f32 %v884_v62, %v885_v60  ;;  %v863_v8 = vmax.f32 %v831_v28, 0.0 }
 0x138   :  { %v775_v29 = vpop.f32.mrf.mxu0  ;;  %v568_v6 = vadd.f32 %v529_v50, %v294_v4  ;;  %v1491_v4 = vld [vmem:[%s6319_s1 + $0x4c0] sm:$0xff] }
 0x139   :  { %v864_v58 = vmax.f32 %v832_v7, 0.0  ;;  %v833_v22 = vadd.f32 %v775_v29, %v559_v5  ;;  %1045 = vmatmul.mubr.f32.gmra.mxu1 %v5005_v49  ;;  %1383 = vmatmul.mubr.f32.gmra.mxu0 %v5005_v49  ;;  %v6334_v7 = vld [vmem:[#allocation7_spill] sm:$0xff] }
 0x13a   :  { %v779_v48 = vpop.f32.mrf.mxu0  ;;  %1050 = vmatprep.mubr.f32.mxu1 %v6333_v42  ;;  %1388 = vmatprep.mubr.f32.mxu0 %v6333_v42  ;;  %v295_v40 = vadd.f32 %v4909_v27, %v6334_v7  ;;  %v1490_v7 = vld [vmem:[%s6319_s1 + $0x4b8] sm:$0xff] }
 0x13b   :  { %v865_v35 = vmax.f32 %v833_v22, 0.0  ;;  %v886_v57 = vmax.f32 %v862_v59, %v864_v58  ;;  %v834_v41 = vadd.f32 %v779_v48, %v560_v9 }
 0x13c   :  { %v781_v51 = vpop.f32.mrf.mxu0  ;;  %v569_v59 = vadd.f32 %v531_v13, %v295_v40  ;;  %v1506_v13 = vld [vmem:[%s6319_s1 + $0x538] sm:$0xff]  ;;  %v1489_v40 = vld [vmem:[%s6319_s1 + $0x4b0] sm:$0xff] }
 0x13d   :  { %v887_v61 = vmax.f32 %v863_v8, %v865_v35  ;;  %v835_v43 = vadd.f32 %v781_v51, %v561_v54  ;;  %v866_v32 = vmax.f32 %v834_v41, 0.0  ;;  %v570_v8 = vadd.f32 %v535_v19, %v296_v63  ;;  %v1691_v19 = vld [vmem:[%s6319_s1 + $0x760] sm:$0xff]  ;;  %v1488_v63 = vld [vmem:[%s6319_s1 + $0x4a8] sm:$0xff] }
 0x13e   :  { %v785_v38 = vpop.f32.mrf.mxu0  ;;  %v571_v51 = vadd.f32 %v537_v23, %v297_v20  ;;  %v1486_v20 = vld [vmem:[%s6319_s1 + $0x498] sm:$0xff]  ;;  %v1485_v23 = vld [vmem:[%s6319_s1 + $0x490] sm:$0xff] }
 0x13f   :  { %v836_v10 = vadd.f32 %v785_v38, %v562_v25  ;;  %v5023_v45 = vmax.f32 %v886_v57, %v887_v61  ;;  %v867_v15 = vmax.f32 %v835_v43, 0.0 }
 0x140   :  { %v787_v12 = vpop.f32.mrf.mxu0 }
 0x141   :  { %v868_v18 = vmax.f32 %v836_v10, 0.0  ;;  %v837_v53 = vadd.f32 %v787_v12, %v563_v11  ;;  %1051 = vmatmul.mubr.f32.gmra.mxu1 %v5023_v45  ;;  %1389 = vmatmul.mubr.f32.gmra.mxu0 %v5023_v45  ;;  %v1512_v12 = vld [vmem:[%s6319_s1 + $0x568] sm:$0xff] }
 0x142   :  { %v791_v24 = vpop.f32.mrf.mxu0  ;;  %1056 = vmatprep.mubr.f32.mxu1 %v6333_v42  ;;  %1394 = vmatprep.mubr.f32.mxu0 %v6333_v42 }
 0x143   :  { %v869_v3 = vmax.f32 %v837_v53, 0.0  ;;  %v888_v2 = vmax.f32 %v866_v32, %v868_v18  ;;  %v838_v62 = vadd.f32 %v791_v24, %v564_v17  ;;  %v1511_v18 = vld [vmem:[%s6319_s1 + $0x560] sm:$0xff]  ;;  %v1508_v24 = vld [vmem:[%s6319_s1 + $0x548] sm:$0xff]  ;;  %v1505_v32 = vld [vmem:[%s6319_s1 + $0x530] sm:$0xff] }
 0x144   :  { %v793_v1 = vpop.f32.mrf.mxu0  ;;  %v1501_v17 = vld [vmem:[%s6319_s1 + $0x510] sm:$0xff] }
 0x145   :  { %v889_v55 = vmax.f32 %v867_v15, %v869_v3  ;;  %v839_v60 = vadd.f32 %v793_v1, %v565_v33  ;;  %v870_v22 = vmax.f32 %v838_v62, 0.0  ;;  %v1504_v15 = vld [vmem:[%s6319_s1 + $0x528] sm:$0xff]  ;;  %v1502_v3 = vld [vmem:[%s6319_s1 + $0x518] sm:$0xff]  ;;  %v1499_v33 = vld [vmem:[%s6319_s1 + $0x500] sm:$0xff] }
 0x146   :  { %v797_v46 = vpop.f32.mrf.mxu0  ;;  %v1694_v1 = vld [vmem:[%s6319_s1 + $0x778] sm:$0xff] }
 0x147   :  { %v840_v5 = vadd.f32 %v797_v46, %v566_v44  ;;  %v5039_v21 = vmax.f32 %v888_v2, %v889_v55  ;;  %v871_v31 = vmax.f32 %v839_v60, 0.0  ;;  %v1693_v44 = vld [vmem:[%s6319_s1 + $0x770] sm:$0xff]  ;;  %v1498_v2 = vld [vmem:[%s6319_s1 + $0x4f8] sm:$0xff]  ;;  %1727 = vmatprep.subr.mxu0 %v1694_v1  ;;  %v1496_v55 = vld [vmem:[%s6319_s1 + $0x4e8] sm:$0xff] }
 0x148   :  { %v799_v28 = vpop.f32.mrf.mxu0  ;;  %1728 = vmatpush1.msra.mxu0 %v1693_v44  ;;  %v1495_v46 = vld [vmem:[%s6319_s1 + $0x4e0] sm:$0xff]  ;;  %v1494_v62 = vld [vmem:[%s6319_s1 + $0x4d8] sm:$0xff]  ;;  %v1493_v60 = vld [vmem:[%s6319_s1 + $0x4d0] sm:$0xff] }
 0x149   :  { %v872_v0 = vmax.f32 %v840_v5, 0.0  ;;  %v841_v29 = vadd.f32 %v799_v28, %v567_v36  ;;  %1057 = vmatmul.mubr.f32.gmra.mxu1 %v5039_v21  ;;  %1395 = vmatmul.mubr.f32.gmra.mxu0 %v5039_v21  ;;  %v1692_v36 = vld [vmem:[%s6319_s1 + $0x768] sm:$0xff]  ;;  %v1689_v28 = vld [vmem:[%s6319_s1 + $0x750] sm:$0xff] }
 0x14a   :  { %v803_v58 = vpop.f32.mrf.mxu0  ;;  %1062 = vmatprep.mubr.f32.mxu1 %v6333_v42  ;;  %1400 = vmatprep.mubr.f32.mxu0 %v6333_v42  ;;  %v1492_v5 = vld [vmem:[%s6319_s1 + $0x4c8] sm:$0xff]  ;;  %v1529_v1 = vld [vmem:[%s6319_s1 + $0x5f0] sm:$0xff] }
 0x14b   :  { %v873_v48 = vmax.f32 %v841_v29, 0.0  ;;  %v890_v35 = vmax.f32 %v870_v22, %v872_v0  ;;  %v842_v25 = vadd.f32 %v803_v58, %v568_v6  ;;  %1729 = vmatprep.subr.mxu0 %v1692_v36  ;;  %v1687_v0 = vld [vmem:[%s6319_s1 + $0x740] sm:$0xff]  ;;  %v1685_v58 = vld [vmem:[%s6319_s1 + $0x730] sm:$0xff]  ;;  %v1684_v22 = vld [vmem:[%s6319_s1 + $0x728] sm:$0xff] }
 0x14c   :  { %v805_v26 = vpop.f32.mrf.mxu0  ;;  %1730 = vmatpush1.msra.mxu0 %v1691_v19  ;;  %v1487_v29 = vld [vmem:[%s6319_s1 + $0x4a0] sm:$0xff]  ;;  %v1528_v44 = vld [vmem:[%s6319_s1 + $0x5e8] sm:$0xff]  ;;  %v1526_v36 = vld [vmem:[%s6319_s1 + $0x5d8] sm:$0xff] }
 0x14d   :  { %v891_v9 = vmax.f32 %v871_v31, %v873_v48  ;;  %v843_v57 = vadd.f32 %v805_v26, %v569_v59  ;;  %v874_v50 = vmax.f32 %v842_v25, 0.0  ;;  %v1484_v31 = vld [vmem:[%s6319_s1 + $0x488] sm:$0xff]  ;;  %v1683_v48 = vld [vmem:[%s6319_s1 + $0x720] sm:$0xff]  ;;  %v1682_v26 = vld [vmem:[%s6319_s1 + $0x718] sm:$0xff] }
 0x14e   :  { %v809_v54 = vpop.f32.mrf.mxu0  ;;  %v1483_v6 = vld [vmem:[%s6319_s1 + $0x480] sm:$0xff]  ;;  %v1546_v59 = vld [vmem:[%s6319_s1 + $0x678] sm:$0xff]  ;;  %v1525_v19 = vld [vmem:[%s6319_s1 + $0x5d0] sm:$0xff] }
 0x14f   :  { %v844_v27 = vadd.f32 %v809_v54, %v570_v8  ;;  %v5053_v61 = vmax.f32 %v890_v35, %v891_v9  ;;  %v875_v43 = vmax.f32 %v843_v57, 0.0  ;;  %v1681_v8 = vld [vmem:[%s6319_s1 + $0x710] sm:$0xff]  ;;  %v1680_v9 = vld [vmem:[%s6319_s1 + $0x708] sm:$0xff]  ;;  %v1679_v54 = vld [vmem:[%s6319_s1 + $0x700] sm:$0xff] }
 0x150   :  { %v811_v11 = vpop.f32.mrf.mxu0  ;;  %v1545_v35 = vld [vmem:[%s6319_s1 + $0x670] sm:$0xff]  ;;  %v1543_v25 = vld [vmem:[%s6319_s1 + $0x660] sm:$0xff]  ;;  %v1678_v57 = vld [vmem:[%s6319_s1 + $0x6f8] sm:$0xff] }
 0x151   :  { %v876_v38 = vmax.f32 %v844_v27, 0.0  ;;  %v845_v41 = vadd.f32 %v811_v11, %v571_v51  ;;  %1063 = vmatmul.mubr.f32.gmra.mxu1 %v5053_v61  ;;  %1401 = vmatmul.mubr.f32.gmra.mxu0 %v5053_v61  ;;  %v1544_v51 = vld [vmem:[%s6319_s1 + $0x668] sm:$0xff]  ;;  %v1542_v27 = vld [vmem:[%s6319_s1 + $0x658] sm:$0xff]  ;;  %v1541_v11 = vld [vmem:[%s6319_s1 + $0x650] sm:$0xff] }
 0x152   :  { %1200 = vmatprep.mubr.f32.mxu1 %v6333_v42  ;;  %1406 = vmatprep.mubr.f32.mxu0 %v6333_v42 }
 0x153   :  { %v877_v10 = vmax.f32 %v845_v41, 0.0  ;;  %v892_v39 = vmax.f32 %v874_v50, %v876_v38  ;;  %v1676_v38 = vld [vmem:[%s6319_s1 + $0x6e8] sm:$0xff]  ;;  %v1539_v50 = vld [vmem:[%s6319_s1 + $0x640] sm:$0xff] }
 0x154   :  { %v1540_v41 = vld [vmem:[%s6319_s1 + $0x648] sm:$0xff] }
 0x155   :  { %v893_v34 = vmax.f32 %v875_v43, %v877_v10  ;;  %1201 = vmatmul.mubr.f32.vlgmr.msra.gmra.mxu1 %v4943_v30  ;;  %v1509_v30 = vld [vmem:[%s6319_s1 + $0x550] sm:$0xff]  ;;  %v1675_v43 = vld [vmem:[%s6319_s1 + $0x6e0] sm:$0xff]  ;;  %v1538_v10 = vld [vmem:[%s6319_s1 + $0x638] sm:$0xff] }
 0x156   :  { %1206 = vmatprep.mubr.f32.mxu1 %v6333_v42  ;;  %1548 = vmatpush1.msra.mxu1 %v1513_v14  ;;  %v1674_v14 = vld [vmem:[%s6319_s1 + $0x6d8] sm:$0xff] }
 0x157   :  { %v5070_v53 = vmax.f32 %v892_v39, %v893_v34  ;;  %1549 = vmatprep.subr.mxu1 %v1512_v12  ;;  %v1537_v12 = vld [vmem:[%s6319_s1 + $0x630] sm:$0xff]  ;;  %v1536_v34 = vld [vmem:[%s6319_s1 + $0x628] sm:$0xff] }
 0x158   :  { %1550 = vmatpush1.msra.mxu1 %v1511_v18  ;;  %v1673_v39 = vld [vmem:[%s6319_s1 + $0x6d0] sm:$0xff]  ;;  %v1672_v18 = vld [vmem:[%s6319_s1 + $0x6c8] sm:$0xff] }
 0x159   :  { %1207 = vmatmul.mubr.f32.gmra.mxu1 %v4963_v47  ;;  %1407 = vmatmul.mubr.f32.gmra.mxu0 %v5070_v53  ;;  %v1507_v47 = vld [vmem:[%s6319_s1 + $0x540] sm:$0xff] }
 0x15a   :  { %1212 = vmatprep.mubr.f32.mxu1 %v6333_v42  ;;  %1412 = vmatprep.mubr.f32.mxu0 %v6333_v42 }
 0x15b   :  { %1551 = vmatprep.subr.mxu1 %v1510_v56  ;;  %v1671_v56 = vld [vmem:[%s6319_s1 + $0x6c0] sm:$0xff] }
 0x15c   :  { %1552 = vmatpush1.msra.mxu1 %v1509_v30  ;;  %v1534_v30 = vld [vmem:[%s6319_s1 + $0x618] sm:$0xff] }
 0x15d   :  { %1213 = vmatmul.mubr.f32.gmra.mxu1 %v4985_v52  ;;  %1413 = vmatmul.mubr.f32.gmra.mxu0 %v6333_v42  ;;  %v1503_v52 = vld [vmem:[%s6319_s1 + $0x520] sm:$0xff] }
 0x15e   :  { %1218 = vmatprep.mubr.f32.mxu1 %v6333_v42  ;;  %1553 = vmatprep.subr.mxu1 %v1508_v24  ;;  %v1670_v24 = vld [vmem:[%s6319_s1 + $0x6b8] sm:$0xff] }
 0x15f   :  { %1554 = vmatpush1.msra.mxu1 %v1507_v47  ;;  %v1533_v47 = vld [vmem:[%s6319_s1 + $0x610] sm:$0xff] }
 0x160   :  { %1555 = vmatprep.subr.mxu1 %v1506_v13  ;;  %v1669_v13 = vld [vmem:[%s6319_s1 + $0x6b0] sm:$0xff] }
 0x161   :  { %1219 = vmatmul.mubr.f32.gmra.mxu1 %v5005_v49  ;;  %v1500_v49 = vld [vmem:[%s6319_s1 + $0x508] sm:$0xff] }
 0x162   :  { %1224 = vmatprep.mubr.f32.mxu1 %v6333_v42  ;;  %1556 = vmatpush1.msra.mxu1 %v1505_v32  ;;  %v1532_v32 = vld [vmem:[%s6319_s1 + $0x608] sm:$0xff] }
 0x163   :  { %1557 = vmatprep.subr.mxu1 %v1504_v15  ;;  %v1668_v15 = vld [vmem:[%s6319_s1 + $0x6a8] sm:$0xff] }
 0x164   :  { %1558 = vmatpush1.msra.mxu1 %v1503_v52  ;;  %v1531_v52 = vld [vmem:[%s6319_s1 + $0x600] sm:$0xff] }
 0x165   :  { %1225 = vmatmul.mubr.f32.gmra.mxu1 %v5023_v45  ;;  %1559 = vmatprep.subr.mxu1 %v1502_v3  ;;  %v1497_v45 = vld [vmem:[%s6319_s1 + $0x4f0] sm:$0xff]  ;;  %v1667_v3 = vld [vmem:[%s6319_s1 + $0x6a0] sm:$0xff] }
 0x166   :  { %1230 = vmatprep.mubr.f32.mxu1 %v6333_v42  ;;  %1560 = vmatpush1.msra.mxu1 %v1501_v17  ;;  %v1530_v17 = vld [vmem:[%s6319_s1 + $0x5f8] sm:$0xff] }
 0x167   :  { %1561 = vmatprep.subr.mxu1 %v1500_v49  ;;  %v1666_v49 = vld [vmem:[%s6319_s1 + $0x698] sm:$0xff] }
 0x168   :  { %1562 = vmatpush1.msra.mxu1 %v1499_v33  ;;  %v1665_v33 = vld [vmem:[%s6319_s1 + $0x690] sm:$0xff] }
 0x169   :  { %1231 = vmatmul.mubr.f32.gmra.mxu1 %v5039_v21  ;;  %1563 = vmatprep.subr.mxu1 %v1498_v2  ;;  %v1690_v21 = vld [vmem:[%s6319_s1 + $0x758] sm:$0xff]  ;;  %v1664_v2 = vld [vmem:[%s6319_s1 + $0x688] sm:$0xff] }
 0x16a   :  { %1236 = vmatprep.mubr.f32.mxu1 %v6333_v42  ;;  %1564 = vmatpush1.msra.mxu1 %v1497_v45  ;;  %v1527_v45 = vld [vmem:[%s6319_s1 + $0x5e0] sm:$0xff] }
 0x16b   :  { %1565 = vmatprep.subr.mxu1 %v1496_v55  ;;  %1731 = vmatprep.subr.mxu0 %v1690_v21  ;;  %v1663_v55 = vld [vmem:[%s6319_s1 + $0x680] sm:$0xff] }
 0x16c   :  { %1566 = vmatpush1.msra.mxu1 %v1495_v46  ;;  %1732 = vmatpush1.msra.mxu0 %v1689_v28  ;;  %v1726_v46 = vld [vmem:[%s6319_s1 + $0x878] sm:$0xff]  ;;  %v1523_v21 = vld [vmem:[%s6319_s1 + $0x5c0] sm:$0xff] }
 0x16d   :  { %1237 = vmatmul.mubr.f32.gmra.mxu1 %v5053_v61  ;;  %1567 = vmatprep.subr.mxu1 %v1494_v62  ;;  %v1677_v61 = vld [vmem:[%s6319_s1 + $0x6f0] sm:$0xff]  ;;  %v1522_v28 = vld [vmem:[%s6319_s1 + $0x5b8] sm:$0xff] }
 0x16e   :  { %1242 = vmatprep.mubr.f32.mxu1 %v6333_v42  ;;  %1568 = vmatpush1.msra.mxu1 %v1493_v60  ;;  %v1725_v62 = vld [vmem:[%s6319_s1 + $0x870] sm:$0xff]  ;;  %v1524_v60 = vld [vmem:[%s6319_s1 + $0x5c8] sm:$0xff] }
 0x16f   :  { %1569 = vmatprep.subr.mxu1 %v1492_v5  ;;  %1733 = vmatprep.subr.mxu0 %v1688_v16  ;;  %v1724_v5 = vld [vmem:[%s6319_s1 + $0x868] sm:$0xff]  ;;  %v1721_v16 = vld [vmem:[%s6319_s1 + $0x850] sm:$0xff] }
 0x170   :  { %1570 = vmatpush1.msra.mxu1 %v1491_v4  ;;  %1734 = vmatpush1.msra.mxu0 %v1687_v0  ;;  %v1723_v4 = vld [vmem:[%s6319_s1 + $0x860] sm:$0xff]  ;;  %v1720_v0 = vld [vmem:[%s6319_s1 + $0x848] sm:$0xff] }
 0x171   :  { %1243 = vmatmul.mubr.f32.gmra.mxu1 %v5070_v53  ;;  %1571 = vmatprep.subr.mxu1 %v1490_v7  ;;  %v1535_v53 = vld [vmem:[%s6319_s1 + $0x620] sm:$0xff]  ;;  %v1722_v7 = vld [vmem:[%s6319_s1 + $0x858] sm:$0xff] }
 0x172   :  { %1572 = vmatpush1.msra.mxu1 %v1489_v40  ;;  %1735 = vmatprep.subr.mxu0 %v1686_v37  ;;  %v1521_v40 = vld [vmem:[%s6319_s1 + $0x5b0] sm:$0xff]  ;;  %v1719_v37 = vld [vmem:[%s6319_s1 + $0x840] sm:$0xff] }
 0x173   :  { %1573 = vmatprep.subr.mxu1 %v1488_v63  ;;  %1736 = vmatpush1.msra.mxu0 %v1685_v58  ;;  %v1520_v63 = vld [vmem:[%s6319_s1 + $0x5a8] sm:$0xff]  ;;  %v1718_v58 = vld [vmem:[%s6319_s1 + $0x838] sm:$0xff] }
 0x174   :  { %1574 = vmatpush1.msra.mxu1 %v1487_v29  ;;  %1737 = vmatprep.subr.mxu0 %v1684_v22  ;;  %v1519_v29 = vld [vmem:[%s6319_s1 + $0x5a0] sm:$0xff]  ;;  %v1717_v22 = vld [vmem:[%s6319_s1 + $0x830] sm:$0xff] }
 0x175   :  { %1575 = vmatprep.subr.mxu1 %v1486_v20  ;;  %1738 = vmatpush1.msra.mxu0 %v1683_v48  ;;  %v1518_v20 = vld [vmem:[%s6319_s1 + $0x598] sm:$0xff]  ;;  %v1716_v48 = vld [vmem:[%s6319_s1 + $0x828] sm:$0xff] }
 0x176   :  { %1576 = vmatpush1.msra.mxu1 %v1485_v23  ;;  %1739 = vmatprep.subr.mxu0 %v1682_v26  ;;  %v1517_v23 = vld [vmem:[%s6319_s1 + $0x590] sm:$0xff]  ;;  %v1715_v26 = vld [vmem:[%s6319_s1 + $0x820] sm:$0xff] }
 0x177   :  { %1577 = vmatprep.subr.mxu1 %v1484_v31  ;;  %1740 = vmatpush1.msra.mxu0 %v1681_v8  ;;  %v1516_v31 = vld [vmem:[%s6319_s1 + $0x588] sm:$0xff]  ;;  %v1863_v8 = vld [vmem:[%s6319_s1 + $0x970] sm:$0xff] }
 0x178   :  { %1578 = vmatpush1.msra.mxu1 %v1483_v6  ;;  %1741 = vmatprep.subr.mxu0 %v1680_v9  ;;  %v1515_v6 = vld [vmem:[%s6319_s1 + $0x580] sm:$0xff]  ;;  %v1862_v9 = vld [vmem:[%s6319_s1 + $0x968] sm:$0xff] }
 0x179   :  { %1579 = vmatprep.subr.mxu1 %v1546_v59  ;;  %1742 = vmatpush1.msra.mxu0 %v1679_v54  ;;  %v1864_v59 = vld [vmem:[%s6319_s1 + $0x978] sm:$0xff]  ;;  %v1861_v54 = vld [vmem:[%s6319_s1 + $0x960] sm:$0xff] }
 0x17a   :  { %1580 = vmatpush2.msra.mxu1 %v1545_v35  ;;  %1743 = vmatprep.subr.mxu0 %v1678_v57  ;;  %v1714_v35 = vld [vmem:[%s6319_s1 + $0x818] sm:$0xff] }
 0x17b   :  { %1581 = vmatprep.subr.mxu1 %v1544_v51  ;;  %1744 = vmatpush1.msra.mxu0 %v1677_v61  ;;  %v1713_v51 = vld [vmem:[%s6319_s1 + $0x810] sm:$0xff]  ;;  %v1860_v57 = vld [vmem:[%s6319_s1 + $0x958] sm:$0xff] }
 0x17c   :  { %1582 = vmatpush2.msra.mxu1 %v1543_v25  ;;  %1745 = vmatprep.subr.mxu0 %v1676_v38  ;;  %v1712_v25 = vld [vmem:[%s6319_s1 + $0x808] sm:$0xff]  ;;  %v1859_v61 = vld [vmem:[%s6319_s1 + $0x950] sm:$0xff] }
 0x17d   :  { %1583 = vmatprep.subr.mxu1 %v1542_v27  ;;  %1611 = vmatprep.mubr.f32.mxu1 %v6333_v42  ;;  %v1711_v27 = vld [vmem:[%s6319_s1 + $0x800] sm:$0xff]  ;;  %v1858_v38 = vld [vmem:[%s6319_s1 + $0x948] sm:$0xff] }
 0x17e   :  { %1584 = vmatpush2.msra.mxu1 %v1541_v11  ;;  %1746 = vmatpush1.msra.mxu0 %v1675_v43  ;;  %v1710_v11 = vld [vmem:[%s6319_s1 + $0x7f8] sm:$0xff]  ;;  %v1708_v43 = vld [vmem:[%s6319_s1 + $0x7e8] sm:$0xff] }
 0x17f   :  { %1585 = vmatprep.subr.mxu1 %v1540_v41  ;;  %1747 = vmatprep.subr.mxu0 %v1674_v14  ;;  %v1709_v41 = vld [vmem:[%s6319_s1 + $0x7f0] sm:$0xff]  ;;  %v1707_v14 = vld [vmem:[%s6319_s1 + $0x7e0] sm:$0xff] }
 0x180   :  { %1586 = vmatpush2.msra.mxu1 %v1539_v50  ;;  %1748 = vmatpush1.msra.mxu0 %v1673_v39  ;;  %v1857_v50 = vld [vmem:[%s6319_s1 + $0x940] sm:$0xff]  ;;  %v1706_v39 = vld [vmem:[%s6319_s1 + $0x7d8] sm:$0xff] }
 0x181   :  { %1587 = vmatprep.subr.mxu1 %v1538_v10  ;;  %1749 = vmatprep.subr.mxu0 %v1672_v18  ;;  %v1856_v10 = vld [vmem:[%s6319_s1 + $0x938] sm:$0xff]  ;;  %v1705_v18 = vld [vmem:[%s6319_s1 + $0x7d0] sm:$0xff] }
 0x182   :  { %1588 = vmatpush2.msra.mxu1 %v1537_v12  ;;  %1750 = vmatpush1.msra.mxu0 %v1671_v56  ;;  %v1855_v12 = vld [vmem:[%s6319_s1 + $0x930] sm:$0xff]  ;;  %v1704_v56 = vld [vmem:[%s6319_s1 + $0x7c8] sm:$0xff] }
 0x183   :  { %1589 = vmatprep.subr.mxu1 %v1536_v34  ;;  %1751 = vmatprep.subr.mxu0 %v1670_v24  ;;  %v1854_v34 = vld [vmem:[%s6319_s1 + $0x928] sm:$0xff]  ;;  %v1703_v24 = vld [vmem:[%s6319_s1 + $0x7c0] sm:$0xff] }
 0x184   :  { %1590 = vmatpush2.msra.mxu1 %v1535_v53  ;;  %1752 = vmatpush1.msra.mxu0 %v1669_v13  ;;  %v1853_v53 = vld [vmem:[%s6319_s1 + $0x920] sm:$0xff]  ;;  %v1702_v13 = vld [vmem:[%s6319_s1 + $0x7b8] sm:$0xff] }
 0x185   :  { %1591 = vmatprep.subr.mxu1 %v1534_v30  ;;  %1753 = vmatprep.subr.mxu0 %v1668_v15  ;;  %v1852_v30 = vld [vmem:[%s6319_s1 + $0x918] sm:$0xff]  ;;  %v1701_v15 = vld [vmem:[%s6319_s1 + $0x7b0] sm:$0xff] }
 0x186   :  { %1592 = vmatpush2.msra.mxu1 %v1533_v47  ;;  %1754 = vmatpush1.msra.mxu0 %v1667_v3  ;;  %v1851_v47 = vld [vmem:[%s6319_s1 + $0x910] sm:$0xff]  ;;  %v1700_v3 = vld [vmem:[%s6319_s1 + $0x7a8] sm:$0xff] }
 0x187   :  { %1593 = vmatprep.subr.mxu1 %v1532_v32  ;;  %1755 = vmatprep.subr.mxu0 %v1666_v49  ;;  %v1850_v32 = vld [vmem:[%s6319_s1 + $0x908] sm:$0xff]  ;;  %v1699_v49 = vld [vmem:[%s6319_s1 + $0x7a0] sm:$0xff] }
 0x188   :  { %1594 = vmatpush2.msra.mxu1 %v1531_v52  ;;  %1756 = vmatpush1.msra.mxu0 %v1665_v33  ;;  %v1849_v52 = vld [vmem:[%s6319_s1 + $0x900] sm:$0xff]  ;;  %v1698_v33 = vld [vmem:[%s6319_s1 + $0x798] sm:$0xff] }
 0x189   :  { %1595 = vmatprep.subr.mxu1 %v1530_v17  ;;  %1757 = vmatprep.subr.mxu0 %v1664_v2  ;;  %v1848_v17 = vld [vmem:[%s6319_s1 + $0x8f8] sm:$0xff]  ;;  %v1697_v2 = vld [vmem:[%s6319_s1 + $0x790] sm:$0xff] }
 0x18a   :  { %1596 = vmatpush2.msra.mxu1 %v1529_v1  ;;  %1758 = vmatpush1.msra.mxu0 %v1663_v55  ;;  %v1847_v1 = vld [vmem:[%s6319_s1 + $0x8f0] sm:$0xff]  ;;  %v1696_v55 = vld [vmem:[%s6319_s1 + $0x788] sm:$0xff] }
 0x18b   :  { %1597 = vmatprep.subr.mxu1 %v1528_v44  ;;  %1759 = vmatprep.subr.mxu0 %v1726_v46  ;;  %v1846_v44 = vld [vmem:[%s6319_s1 + $0x8e8] sm:$0xff]  ;;  %v1695_v46 = vld [vmem:[%s6319_s1 + $0x780] sm:$0xff] }
 0x18c   :  { %1598 = vmatpush2.msra.mxu1 %v1527_v45  ;;  %1760 = vmatpush2.msra.mxu0 %v1725_v62  ;;  %v1845_v45 = vld [vmem:[%s6319_s1 + $0x8e0] sm:$0xff]  ;;  %v1842_v62 = vld [vmem:[%s6319_s1 + $0x8c8] sm:$0xff] }
 0x18d   :  { %1599 = vmatprep.subr.mxu1 %v1526_v36  ;;  %1761 = vmatprep.subr.mxu0 %v1724_v5  ;;  %v1844_v36 = vld [vmem:[%s6319_s1 + $0x8d8] sm:$0xff] }
 0x18e   :  { %1600 = vmatpush2.msra.mxu1 %v1525_v19  ;;  %1762 = vmatpush2.msra.mxu0 %v1723_v4  ;;  %v1843_v19 = vld [vmem:[%s6319_s1 + $0x8d0] sm:$0xff]  ;;  %v1840_v5 = vld [vmem:[%s6319_s1 + $0x8b8] sm:$0xff]  ;;  %v1838_v4 = vld [vmem:[%s6319_s1 + $0x8a8] sm:$0xff] }
 0x18f   :  { %1601 = vmatprep.subr.mxu1 %v1524_v60  ;;  %1763 = vmatprep.subr.mxu0 %v1722_v7  ;;  %v1841_v60 = vld [vmem:[%s6319_s1 + $0x8c0] sm:$0xff]  ;;  %v1836_v7 = vld [vmem:[%s6319_s1 + $0x898] sm:$0xff] }
 0x190   :  { %1602 = vmatpush2.msra.mxu1 %v1523_v21  ;;  %1764 = vmatpush2.msra.mxu0 %v1721_v16  ;;  %v1839_v21 = vld [vmem:[%s6319_s1 + $0x8b0] sm:$0xff]  ;;  %v1834_v16 = vld [vmem:[%s6319_s1 + $0x888] sm:$0xff] }
 0x191   :  { %1603 = vmatprep.subr.mxu1 %v1522_v28  ;;  %1765 = vmatprep.subr.mxu0 %v1720_v0  ;;  %v1837_v28 = vld [vmem:[%s6319_s1 + $0x8a0] sm:$0xff]  ;;  %v1896_v0 = vld [vmem:[%s6319_s1 + $0xa78] sm:$0xff] }
 0x192   :  { %1604 = vmatpush2.msra.mxu1 %v1521_v40  ;;  %1766 = vmatpush2.msra.mxu0 %v1719_v37  ;;  %v1835_v40 = vld [vmem:[%s6319_s1 + $0x890] sm:$0xff]  ;;  %v1894_v37 = vld [vmem:[%s6319_s1 + $0xa68] sm:$0xff] }
 0x193   :  { %1605 = vmatprep.subr.mxu1 %v1520_v63  ;;  %1767 = vmatprep.subr.mxu0 %v1718_v58  ;;  %v1833_v63 = vld [vmem:[%s6319_s1 + $0x880] sm:$0xff]  ;;  %v1892_v58 = vld [vmem:[%s6319_s1 + $0xa58] sm:$0xff] }
 0x194   :  { %1606 = vmatpush2.msra.mxu1 %v1519_v29  ;;  %1768 = vmatpush2.msra.mxu0 %v1717_v22  ;;  %v1895_v29 = vld [vmem:[%s6319_s1 + $0xa70] sm:$0xff]  ;;  %v1890_v22 = vld [vmem:[%s6319_s1 + $0xa48] sm:$0xff] }
 0x195   :  { %1607 = vmatprep.subr.mxu1 %v1518_v20  ;;  %1769 = vmatprep.subr.mxu0 %v1716_v48  ;;  %v1893_v20 = vld [vmem:[%s6319_s1 + $0xa60] sm:$0xff]  ;;  %v1888_v48 = vld [vmem:[%s6319_s1 + $0xa38] sm:$0xff] }
 0x196   :  { %1608 = vmatpush2.msra.mxu1 %v1517_v23  ;;  %1770 = vmatpush2.msra.mxu0 %v1715_v26  ;;  %v1891_v23 = vld [vmem:[%s6319_s1 + $0xa50] sm:$0xff]  ;;  %v1886_v26 = vld [vmem:[%s6319_s1 + $0xa28] sm:$0xff] }
 0x197   :  { %1609 = vmatprep.subr.mxu1 %v1516_v31  ;;  %1771 = vmatprep.subr.mxu0 %v1714_v35  ;;  %v1889_v31 = vld [vmem:[%s6319_s1 + $0xa40] sm:$0xff]  ;;  %v1883_v35 = vld [vmem:[%s6319_s1 + $0xa10] sm:$0xff] }
 0x198   :  { %1610 = vmatpush2.msra.mxu1 %v1515_v6  ;;  %1772 = vmatpush2.msra.mxu0 %v1713_v51  ;;  %v1887_v6 = vld [vmem:[%s6319_s1 + $0xa30] sm:$0xff]  ;;  %v1881_v51 = vld [vmem:[%s6319_s1 + $0xa00] sm:$0xff] }
 0x199   :  { %1612 = vmatmul.mubr.f32.vlgmr.msra.gmra.mxu1 %v6333_v42  ;;  %1897 = vmatprep.subr.mxu1 %v1864_v59  ;;  %v1885_v59 = vld [vmem:[%s6319_s1 + $0xa20] sm:$0xff] }
 0x19a   :  { %1898 = vmatpush1.msra.mxu1 %v1863_v8  ;;  %1773 = vmatprep.subr.mxu0 %v1712_v25  ;;  %v1884_v8 = vld [vmem:[%s6319_s1 + $0xa18] sm:$0xff]  ;;  %v1879_v25 = vld [vmem:[%s6319_s1 + $0x9f0] sm:$0xff] }
 0x19b   :  { %1899 = vmatprep.subr.mxu1 %v1862_v9  ;;  %1774 = vmatpush2.msra.mxu0 %v1711_v27  ;;  %v1882_v9 = vld [vmem:[%s6319_s1 + $0xa08] sm:$0xff]  ;;  %v1877_v27 = vld [vmem:[%s6319_s1 + $0x9e0] sm:$0xff] }
 0x19c   :  { %1900 = vmatpush1.msra.mxu1 %v1861_v54  ;;  %1775 = vmatprep.subr.mxu0 %v1710_v11  ;;  %v1880_v54 = vld [vmem:[%s6319_s1 + $0x9f8] sm:$0xff]  ;;  %v1875_v11 = vld [vmem:[%s6319_s1 + $0x9d0] sm:$0xff] }
 0x19d   :  { %1901 = vmatprep.subr.mxu1 %v1860_v57  ;;  %1776 = vmatpush2.msra.mxu0 %v1709_v41  ;;  %v1878_v57 = vld [vmem:[%s6319_s1 + $0x9e8] sm:$0xff]  ;;  %v1873_v41 = vld [vmem:[%s6319_s1 + $0x9c0] sm:$0xff] }
 0x19e   :  { %1902 = vmatpush1.msra.mxu1 %v1859_v61  ;;  %1777 = vmatprep.subr.mxu0 %v1708_v43  ;;  %v1876_v61 = vld [vmem:[%s6319_s1 + $0x9d8] sm:$0xff]  ;;  %v1871_v43 = vld [vmem:[%s6319_s1 + $0x9b0] sm:$0xff] }
 0x19f   :  { %1903 = vmatprep.subr.mxu1 %v1858_v38  ;;  %1778 = vmatpush2.msra.mxu0 %v1707_v14  ;;  %v1874_v38 = vld [vmem:[%s6319_s1 + $0x9c8] sm:$0xff]  ;;  %v1869_v14 = vld [vmem:[%s6319_s1 + $0x9a0] sm:$0xff] }
 0x1a0   :  { %1904 = vmatpush1.msra.mxu1 %v1857_v50  ;;  %1779 = vmatprep.subr.mxu0 %v1706_v39  ;;  %v1872_v50 = vld [vmem:[%s6319_s1 + $0x9b8] sm:$0xff]  ;;  %v1867_v39 = vld [vmem:[%s6319_s1 + $0x990] sm:$0xff] }
 0x1a1   :  { %1905 = vmatprep.subr.mxu1 %v1856_v10  ;;  %1780 = vmatpush2.msra.mxu0 %v1705_v18  ;;  %v1870_v10 = vld [vmem:[%s6319_s1 + $0x9a8] sm:$0xff]  ;;  %v1865_v18 = vld [vmem:[%s6319_s1 + $0x980] sm:$0xff] }
 0x1a2   :  { %1906 = vmatpush1.msra.mxu1 %v1855_v12  ;;  %1781 = vmatprep.subr.mxu0 %v1704_v56  ;;  %v1868_v12 = vld [vmem:[%s6319_s1 + $0x998] sm:$0xff] }
 0x1a3   :  { %1907 = vmatprep.subr.mxu1 %v1854_v34  ;;  %1782 = vmatpush2.msra.mxu0 %v1703_v24  ;;  %v1866_v34 = vld [vmem:[%s6319_s1 + $0x988] sm:$0xff] }
 0x1a4   :  { %1908 = vmatpush1.msra.mxu1 %v1853_v53  ;;  %1783 = vmatprep.subr.mxu0 %v1702_v13  ;;  %v1022_v53 = vpop.f32.mrf.mxu1 }
 0x1a5   :  { %1909 = vmatprep.subr.mxu1 %v1852_v30  ;;  %1784 = vmatpush2.msra.mxu0 %v1701_v15 }
 0x1a6   :  { %1910 = vmatpush1.msra.mxu1 %v1851_v47  ;;  %1785 = vmatprep.subr.mxu0 %v1700_v3  ;;  %v1024_v56 = vpop.f32.mrf.mxu1 }
 0x1a7   :  { %1911 = vmatprep.subr.mxu1 %v1850_v32  ;;  %1786 = vmatpush2.msra.mxu0 %v1699_v49 }
 0x1a8   :  { %1912 = vmatpush1.msra.mxu1 %v1849_v52  ;;  %1787 = vmatprep.subr.mxu0 %v1698_v33 }
 0x1a9   :  { %1913 = vmatprep.subr.mxu1 %v1848_v17  ;;  %1788 = vmatpush2.msra.mxu0 %v1697_v2 }
 0x1aa   :  { %1914 = vmatpush1.msra.mxu1 %v1847_v1  ;;  %1789 = vmatprep.subr.mxu0 %v1696_v55 }
 0x1ab   :  { %1915 = vmatprep.subr.mxu1 %v1846_v44  ;;  %1790 = vmatpush2.msra.mxu0 %v1695_v46 }
 0x1ac   :  { %1916 = vmatpush1.msra.mxu1 %v1845_v45 }
 0x1ad   :  { %1917 = vmatprep.subr.mxu1 %v1844_v36  ;;  %v3963_v36 = vld [vmem:[%s6319_s1 + $0xa90] ss:$8 sm:$0x3] }
 0x1ae   :  { %1918 = vmatpush1.msra.mxu1 %v1843_v19 }
 0x1af   :  { %1919 = vmatprep.subr.mxu1 %v1842_v62 }
 0x1b0   :  { %1920 = vmatpush1.msra.mxu1 %v1841_v60  ;;  %v6337_v60 = vld [vmem:[#allocation5_spill] sm:$0xff] }
 0x1b1   :  { %1921 = vmatprep.subr.mxu1 %v1840_v5  ;;  %v5674_v5 = vrot.slane %v3963_v36, %v6337_v60 }
 0x1b2   :  { %1922 = vmatpush1.msra.mxu1 %v1839_v21  ;;  %v6338_v21 = vld [vmem:[#allocation6_spill] sm:$0xff] }
 0x1b3   :  { %1923 = vmatprep.subr.mxu1 %v1838_v4  ;;  %v5677_v4 = vrot.slane %v3963_v36, %v6338_v21 }
 0x1b4   :  { %1924 = vmatpush1.msra.mxu1 %v1837_v28 }
 0x1b5   :  { %1925 = vmatprep.subr.mxu1 %v1836_v7 }
 0x1b6   :  { %1926 = vmatpush1.msra.mxu1 %v1835_v40  ;;  %v1081_v40 = vadd.f32 %v5677_v4, %v1024_v56 }
 0x1b7   :  { %1927 = vmatprep.subr.mxu1 %v1834_v16  ;;  %v1080_v16 = vadd.f32 %v5674_v5, %v1022_v53 }
 0x1b8   :  { %1928 = vmatpush1.msra.mxu1 %v1833_v63 }
 0x1b9   :  { %1929 = vmatprep.subr.mxu1 %v1896_v0 }
 0x1ba   :  { %1930 = vmatpush2.msra.mxu1 %v1895_v29 }
 0x1bb   :  { %1931 = vmatprep.subr.mxu1 %v1894_v37 }
 0x1bc   :  { %1932 = vmatpush2.msra.mxu1 %v1893_v20 }
 0x1bd   :  { %1933 = vmatprep.subr.mxu1 %v1892_v58 }
 0x1be   :  { %1934 = vmatpush2.msra.mxu1 %v1891_v23 }
 0x1bf   :  { %1935 = vmatprep.subr.mxu1 %v1890_v22 }
 0x1c0   :  { %1936 = vmatpush2.msra.mxu1 %v1889_v31 }
 0x1c1   :  { %1937 = vmatprep.subr.mxu1 %v1888_v48 }
 0x1c2   :  { %1938 = vmatpush2.msra.mxu1 %v1887_v6 }
 0x1c3   :  { %1939 = vmatprep.subr.mxu1 %v1886_v26 }
 0x1c4   :  { %1940 = vmatpush2.msra.mxu1 %v1885_v59 }
 0x1c5   :  { %1941 = vmatprep.subr.mxu1 %v1884_v8 }
 0x1c6   :  { %1942 = vmatpush2.msra.mxu1 %v1883_v35 }
 0x1c7   :  { %1943 = vmatprep.subr.mxu1 %v1882_v9 }
 0x1c8   :  { %1944 = vmatpush2.msra.mxu1 %v1881_v51 }
 0x1c9   :  { %1945 = vmatprep.subr.mxu1 %v1880_v54 }
 0x1ca   :  { %1946 = vmatpush2.msra.mxu1 %v1879_v25 }
 0x1cb   :  { %1947 = vmatprep.subr.mxu1 %v1878_v57 }
 0x1cc   :  { %1948 = vmatpush2.msra.mxu1 %v1877_v27 }
 0x1cd   :  { %1949 = vmatprep.subr.mxu1 %v1876_v61 }
 0x1ce   :  { %1950 = vmatpush2.msra.mxu1 %v1875_v11 }
 0x1cf   :  { %1951 = vmatprep.subr.mxu1 %v1874_v38 }
 0x1d0   :  { %1952 = vmatpush2.msra.mxu1 %v1873_v41 }
 0x1d1   :  { %1953 = vmatprep.subr.mxu1 %v1872_v50 }
 0x1d2   :  { %1954 = vmatpush2.msra.mxu1 %v1871_v43 }
 0x1d3   :  { %1955 = vmatprep.subr.mxu1 %v1870_v10 }
 0x1d4   :  { %1956 = vmatpush2.msra.mxu1 %v1869_v14 }
 0x1d5   :  { %1957 = vmatprep.subr.mxu1 %v1868_v12 }
 0x1d6   :  { %1958 = vmatpush2.msra.mxu1 %v1867_v39 }
 0x1d7   :  { %1959 = vmatprep.subr.mxu1 %v1866_v34 }
 0x1d8   :  { %1960 = vmatpush2.msra.mxu1 %v1865_v18 }
 0x1e1   :  { %v1028_v30 = vpop.f32.mrf.mxu1 }
 0x1e2   :  { %v1082_v29 = vadd.f32 %v5674_v5, %v1028_v30 }
 0x1e3   :  { %v1030_v24 = vpop.f32.mrf.mxu1 }
 0x1e4   :  { %v1083_v23 = vadd.f32 %v5677_v4, %v1030_v24 }
 0x1e9   :  { %v1034_v47 = vpop.f32.mrf.mxu1  ;;  %v1372_v17 = vpop.f32.mrf.mxu0 }
 0x1ea   :  { %v1084_v25 = vadd.f32 %v5674_v5, %v1034_v47 }
 0x1eb   :  { %v1036_v13 = vpop.f32.mrf.mxu1  ;;  %v1374_v1 = vpop.f32.mrf.mxu0 }
 0x1ec   :  { %v1085_v51 = vadd.f32 %v5677_v4, %v1036_v13 }
 0x1f1   :  { %v1040_v32 = vpop.f32.mrf.mxu1  ;;  %v1378_v44 = vpop.f32.mrf.mxu0 }
 0x1f2   :  { %v1086_v61 = vadd.f32 %v5674_v5, %v1040_v32 }
 0x1f3   :  { %v1042_v15 = vpop.f32.mrf.mxu1  ;;  %v1380_v45 = vpop.f32.mrf.mxu0 }
 0x1f4   :  { %v1087_v12 = vadd.f32 %v5677_v4, %v1042_v15 }
 0x1f9   :  { %v5654_v52 = vpop.f32.mrf.mxu1  ;;  %v1384_v46 = vpop.f32.mrf.mxu0 }
 0x1fa   :  { %v1088_v15 = vadd.f32 %v5674_v5, %v5654_v52 }
 0x1fb   :  { %v5656_v3 = vpop.f32.mrf.mxu1  ;;  %v1386_v28 = vpop.f32.mrf.mxu0 }
 0x201   :  { %v5658_v49 = vpop.f32.mrf.mxu1  ;;  %v1390_v63 = vpop.f32.mrf.mxu0 }
 0x203   :  { %v5660_v33 = vpop.f32.mrf.mxu1  ;;  %v1392_v31 = vpop.f32.mrf.mxu0 }
 0x209   :  { %v5662_v2 = vpop.f32.mrf.mxu1  ;;  %v1396_v8 = vpop.f32.mrf.mxu0 }
 0x20b   :  { %v5664_v55 = vpop.f32.mrf.mxu1  ;;  %v1398_v50 = vpop.f32.mrf.mxu0 }
 0x211   :  { %v5669_v19 = vpop.f32.mrf.mxu1  ;;  %v1402_v18 = vpop.f32.mrf.mxu0 }
 0x213   :  { %v5671_v62 = vpop.f32.mrf.mxu1 }
 0x215   :  { %v1202_v7 = vpop.f32.mrf.mxu1 }
 0x216   :  { %v1249_v20 = vadd.f32 %v1202_v7, %v1080_v16 }
 0x217   :  { %v1204_v0 = vpop.f32.mrf.mxu1 }
 0x218   :  { %v1250_v37 = vadd.f32 %v1204_v0, %v1081_v40  ;;  %v1419_v35 = vadd.f32 %v1372_v17, %v1249_v20  ;;  %v1089_v17 = vadd.f32 %v5677_v4, %v5656_v3  ;;  %v1091_v3 = vadd.f32 %v5677_v4, %v5660_v33 }
 0x219   :  { %v1208_v58 = vpop.f32.mrf.mxu1  ;;  %v1092_v33 = vadd.f32 %v5674_v5, %v5662_v2 }
 0x21a   :  { %v1251_v22 = vadd.f32 %v1208_v58, %v1082_v29  ;;  %v1420_v6 = vadd.f32 %v1374_v1, %v1250_v37  ;;  %v1435_v43 = vmax.f32 %v1419_v35, 0.0 }
 0x21b   :  { %v1210_v48 = vpop.f32.mrf.mxu1 }
 0x21c   :  { %v1421_v26 = vadd.f32 %v1378_v44, %v1251_v22  ;;  %v1252_v59 = vadd.f32 %v1210_v48, %v1083_v23  ;;  %v1436_v11 = vmax.f32 %v1420_v6, 0.0  ;;  %v1404_v44 = vpop.f32.mrf.mxu0 }
 0x21d   :  { %v1214_v9 = vpop.f32.mrf.mxu1 }
 0x21e   :  { %v1422_v54 = vadd.f32 %v1380_v45, %v1252_v59  ;;  %v1437_v57 = vmax.f32 %v1421_v26, 0.0  ;;  %v1253_v10 = vadd.f32 %v1214_v9, %v1084_v25  ;;  %v1093_v26 = vadd.f32 %v5677_v4, %v5664_v55 }
 0x21f   :  { %v1216_v27 = vpop.f32.mrf.mxu1 }
 0x220   :  { %v1438_v38 = vmax.f32 %v1422_v54, 0.0  ;;  %v1254_v41 = vadd.f32 %v1216_v27, %v1085_v51  ;;  %v1451_v56 = vmax.f32 %v1435_v43, %v1437_v57  ;;  %v1423_v13 = vadd.f32 %v1384_v46, %v1253_v10  ;;  %v1408_v46 = vpop.f32.mrf.mxu0 }
 0x221   :  { %v1220_v14 = vpop.f32.mrf.mxu1  ;;  %v1094_v54 = vadd.f32 %v5674_v5, %v5669_v19 }
 0x222   :  { %v1255_v39 = vadd.f32 %v1220_v14, %v1086_v61  ;;  %v1452_v34 = vmax.f32 %v1436_v11, %v1438_v38  ;;  %v1424_v30 = vadd.f32 %v1386_v28, %v1254_v41  ;;  %v1090_v28 = vadd.f32 %v5674_v5, %v5658_v49  ;;  %v1410_v49 = vpop.f32.mrf.mxu0 }
 0x223   :  { %v1222_v53 = vpop.f32.mrf.mxu1  ;;  %v1095_v38 = vadd.f32 %v5677_v4, %v5671_v62 }
 0x224   :  { %v1425_v24 = vadd.f32 %v1390_v63, %v1255_v39  ;;  %v1256_v47 = vadd.f32 %v1222_v53, %v1087_v12  ;;  %1617 = vmatprep.mubr.f32.mxu1 %v1452_v34  ;;  %1791 = vmatprep.mubr.f32.mxu0 %v1452_v34  ;;  %v1440_v7 = vmax.f32 %v1424_v30, 0.0  ;;  %v1439_v63 = vmax.f32 %v1423_v13, 0.0  ;;  %v1414_v51 = vpop.f32.mrf.mxu0  ;;  %v5716_v30 = vld [vmem:[%s6319_s1 + $0xae0] sm:$0xff]  ;;  %v5737_v13 = vld [vmem:[%s6319_s1 + $0xac8] sm:$0xff] }
 0x225   :  { %v1226_v32 = vpop.f32.mrf.mxu1  ;;  %1618 = vmatmul.mubr.f32.gmra.mxu1 %v1451_v56  ;;  %1792 = vmatmul.mubr.f32.vlgmr.msra.gmra.mxu0 %v1451_v56  ;;  %v5710_v56 = vld [vmem:[%s6319_s1 + $0xae8] sm:$0xff] }
 0x226   :  { %v1426_v1 = vadd.f32 %v1392_v31, %v1256_v47  ;;  %v1441_v45 = vmax.f32 %v1425_v24, 0.0  ;;  %v1257_v0 = vadd.f32 %v1226_v32, %v1088_v15  ;;  %v1416_v43 = vpop.f32.mrf.mxu0  ;;  %2057 = vmatprep.subr.mxu0 %v5710_v56  ;;  %2431 = vmatprep.subr.mxu1 %v5710_v56  ;;  %v5723_v24 = vld [vmem:[%s6319_s1 + $0xad8] sm:$0xff]  ;;  %v5730_v47 = vld [vmem:[%s6319_s1 + $0xad0] sm:$0xff]  ;;  %v5744_v32 = vld [vmem:[%s6319_s1 + $0xac0] sm:$0xff] }
 0x227   :  { %v1228_v36 = vpop.f32.mrf.mxu1  ;;  %2058 = vmatpush1.msra.mxu0 %v5716_v30 }
 0x228   :  { %v1442_v40 = vmax.f32 %v1426_v1, 0.0  ;;  %v1258_v16 = vadd.f32 %v1228_v36, %v1089_v17  ;;  %v1453_v52 = vmax.f32 %v1439_v63, %v1441_v45  ;;  %v1427_v48 = vadd.f32 %v1396_v8, %v1257_v0  ;;  %2059 = vmatprep.subr.mxu0 %v5723_v24  ;;  %v5751_v17 = vld [vmem:[%s6319_s1 + $0xab8] sm:$0xff]  ;;  %v5758_v1 = vld [vmem:[%s6319_s1 + $0xab0] sm:$0xff] }
 0x229   :  { %v1232_v29 = vpop.f32.mrf.mxu1  ;;  %2060 = vmatpush1.msra.mxu0 %v5730_v47 }
 0x22a   :  { %v1259_v37 = vadd.f32 %v1232_v29, %v1090_v28  ;;  %v1454_v20 = vmax.f32 %v1440_v7, %v1442_v40  ;;  %v1428_v23 = vadd.f32 %v1398_v50, %v1258_v16  ;;  %v1443_v8 = vmax.f32 %v1427_v48, 0.0  ;;  %2061 = vmatprep.subr.mxu0 %v5737_v13 }
 0x22b   :  { %v1234_v58 = vpop.f32.mrf.mxu1  ;;  %2062 = vmatpush1.msra.mxu0 %v5744_v32 }
 0x22c   :  { %v1429_v22 = vadd.f32 %v1402_v18, %v1259_v37  ;;  %v1260_v31 = vadd.f32 %v1234_v58, %v1091_v3  ;;  %1623 = vmatprep.mubr.f32.mxu1 %v1454_v20  ;;  %1797 = vmatprep.mubr.f32.mxu0 %v1454_v20  ;;  %v1444_v25 = vmax.f32 %v1428_v23, 0.0  ;;  %v3964_v3 = vld [vmem:[%s6319_s1 + $0xaa0] ss:$8 sm:$0x3] }
 0x22d   :  { %v1238_v6 = vpop.f32.mrf.mxu1  ;;  %1624 = vmatmul.mubr.f32.gmra.mxu1 %v1453_v52  ;;  %1798 = vmatmul.mubr.f32.gmra.mxu0 %v1453_v52  ;;  %v1640_v58 = vrot.slane %v3964_v3, %v6337_v60  ;;  %v1644_v23 = vrot.slane %v3964_v3, %v6338_v21 }
 0x22e   :  { %v1430_v59 = vadd.f32 %v1404_v44, %v1260_v31  ;;  %v1445_v35 = vmax.f32 %v1429_v22, 0.0  ;;  %v1261_v61 = vadd.f32 %v1238_v6, %v1092_v33  ;;  %2063 = vmatprep.subr.mxu0 %v5751_v17 }
 0x22f   :  { %v1240_v9 = vpop.f32.mrf.mxu1  ;;  %2064 = vmatpush1.msra.mxu0 %v5758_v1 }
 0x230   :  { %v1446_v57 = vmax.f32 %v1430_v59, 0.0  ;;  %v1262_v27 = vadd.f32 %v1240_v9, %v1093_v26  ;;  %v1455_v2 = vmax.f32 %v1443_v8, %v1445_v35  ;;  %v1431_v19 = vadd.f32 %v1408_v46, %v1261_v61  ;;  %2132 = vmatprep.subr.mxu0 %v5710_v56 }
 0x231   :  { %v1244_v11 = vpop.f32.mrf.mxu1 }
 0x232   :  { %v1263_v55 = vadd.f32 %v1244_v11, %v1094_v54  ;;  %v1456_v41 = vmax.f32 %v1444_v25, %v1446_v57  ;;  %v1432_v10 = vadd.f32 %v1410_v49, %v1262_v27  ;;  %v1447_v53 = vmax.f32 %v1431_v19, 0.0 }
 0x233   :  { %v1246_v50 = vpop.f32.mrf.mxu1 }
 0x234   :  { %v1264_v14 = vadd.f32 %v1246_v50, %v1095_v38  ;;  %v1433_v12 = vadd.f32 %v1414_v51, %v1263_v55  ;;  %1629 = vmatprep.mubr.f32.mxu1 %v1456_v41  ;;  %1803 = vmatprep.mubr.f32.mxu0 %v1456_v41  ;;  %v1448_v34 = vmax.f32 %v1432_v10, 0.0 }
 0x235   :  { %1630 = vmatmul.mubr.f32.gmra.mxu1 %v1455_v2  ;;  %1804 = vmatmul.mubr.f32.gmra.mxu0 %v1455_v2 }
 0x236   :  { %v1434_v5 = vadd.f32 %v1416_v43, %v1264_v14  ;;  %1961 = vmatprep.mubr.f32.mxu1 %v1454_v20  ;;  %v1449_v39 = vmax.f32 %v1433_v12, 0.0 }
 0x238   :  { %v1450_v18 = vmax.f32 %v1434_v5, 0.0  ;;  %v1457_v4 = vmax.f32 %v1447_v53, %v1449_v39 }
 0x239   :  { %1962 = vmatmul.mubr.f32.vlgmr.msra.gmra.mxu1 %v1453_v52 }
 0x23a   :  { %v1458_v62 = vmax.f32 %v1448_v34, %v1450_v18  ;;  %1967 = vmatprep.mubr.f32.mxu1 %v1456_v41  ;;  %2432 = vmatpush1.msra.mxu1 %v5716_v30 }
 0x23b   :  { %2433 = vmatprep.subr.mxu1 %v5723_v24 }
 0x23c   :  { %1809 = vmatprep.mubr.f32.mxu0 %v1458_v62  ;;  %2434 = vmatpush1.msra.mxu1 %v5730_v47 }
 0x23d   :  { %1810 = vmatmul.mubr.f32.gmra.mxu0 %v1457_v4  ;;  %1968 = vmatmul.mubr.f32.gmra.mxu1 %v1455_v2 }
 0x23e   :  { %1973 = vmatprep.mubr.f32.mxu1 %v1458_v62  ;;  %2097 = vmatprep.mubr.f32.mxu0 %v6333_v42 }
 0x23f   :  { %2435 = vmatprep.subr.mxu1 %v5737_v13 }
 0x240   :  { %2436 = vmatpush1.msra.mxu1 %v5744_v32 }
 0x241   :  { %1974 = vmatmul.mubr.f32.gmra.mxu1 %v1457_v4  ;;  %2437 = vmatprep.subr.mxu1 %v5751_v17 }
 0x242   :  { %1979 = vmatprep.mubr.f32.mxu1 %v6333_v42  ;;  %2438 = vmatpush1.msra.mxu1 %v5758_v1 }
 0x243   :  { %2581 = vmatprep.subr.mxu1 %v5710_v56 }
 0x245   :  { %1980 = vmatmul.mubr.f32.gmra.mxu1 %v6333_v42 }
 0x246   :  { %2471 = vmatprep.mubr.f32.mxu1 %v6333_v42 }
 0x259   :  { %v1613_v15 = vpop.f32.mrf.mxu1 }
 0x25a   :  { %v1647_v48 = vadd.f32 %v1640_v58, %v1613_v15 }
 0x25b   :  { %v1615_v44 = vpop.f32.mrf.mxu1 }
 0x25c   :  { %v1648_v9 = vadd.f32 %v1644_v23, %v1615_v44 }
 0x2e5   :  { %v1619_v45 = vpop.f32.mrf.mxu1  ;;  %v1793_v36 = vpop.f32.mrf.mxu0 }
 0x2e6   :  { %v1649_v49 = vadd.f32 %v1640_v58, %v1619_v45  ;;  %v1816_v51 = vadd.f32 %v1793_v36, %v1647_v48  ;;  %v5843_v48 = vld [vmem:[%s6319_s1 + $0xb40] sm:$0xff] }
 0x2e7   :  { %v1621_v28 = vpop.f32.mrf.mxu1  ;;  %v1795_v40 = vpop.f32.mrf.mxu0 }
 0x2e8   :  { %v1650_v59 = vadd.f32 %v1644_v23, %v1621_v28  ;;  %v1817_v11 = vadd.f32 %v1795_v40, %v1648_v9  ;;  %v5879_v9 = vld [vmem:[%s6319_s1 + $0xb10] sm:$0xff] }
 0x2ed   :  { %v1625_v7 = vpop.f32.mrf.mxu1  ;;  %v1799_v16 = vpop.f32.mrf.mxu0 }
 0x2ee   :  { %v1651_v33 = vadd.f32 %v1640_v58, %v1625_v7  ;;  %v1818_v35 = vadd.f32 %v1799_v16, %v1649_v49  ;;  %v5837_v49 = vld [vmem:[%s6319_s1 + $0xb48] sm:$0xff] }
 0x2ef   :  { %v1627_v46 = vpop.f32.mrf.mxu1  ;;  %v1801_v0 = vpop.f32.mrf.mxu0 }
 0x2f0   :  { %v1652_v54 = vadd.f32 %v1644_v23, %v1627_v46  ;;  %v1819_v57 = vadd.f32 %v1801_v0, %v1650_v59  ;;  %v5861_v59 = vld [vmem:[%s6319_s1 + $0xb28] sm:$0xff] }
 0x2f5   :  { %v1631_v63 = vpop.f32.mrf.mxu1  ;;  %v1805_v37 = vpop.f32.mrf.mxu0 }
 0x2f6   :  { %v1653_v27 = vadd.f32 %v1640_v58, %v1631_v63  ;;  %v1820_v8 = vadd.f32 %v1805_v37, %v1651_v33  ;;  %v5799_v37 = vld [vmem:[%s6319_s1 + $0xb78] sm:$0xff]  ;;  %v5867_v33 = vld [vmem:[%s6319_s1 + $0xb20] sm:$0xff] }
 0x2f7   :  { %v1633_v29 = vpop.f32.mrf.mxu1  ;;  %v1807_v22 = vpop.f32.mrf.mxu0 }
 0x2f8   :  { %v1654_v38 = vadd.f32 %v1644_v23, %v1633_v29  ;;  %v1821_v43 = vadd.f32 %v1807_v22, %v1652_v54  ;;  %v5818_v23 = vld [vmem:[%s6319_s1 + $0xb60] sm:$0xff]  ;;  %v5824_v22 = vld [vmem:[%s6319_s1 + $0xb58] sm:$0xff] }
 0x2f9   :  { %v1963_v20 = vpop.f32.mrf.mxu1  ;;  %v5891_v54 = vld [vmem:[%s6319_s1 + $0xb00] sm:$0xff] }
 0x2fa   :  { %v1986_v55 = vadd.f32 %v1963_v20, %v1816_v51  ;;  %v5805_v20 = vld [vmem:[%s6319_s1 + $0xb70] sm:$0xff]  ;;  %v5885_v51 = vld [vmem:[%s6319_s1 + $0xb08] sm:$0xff] }
 0x2fb   :  { %v1965_v52 = vpop.f32.mrf.mxu1 }
 0x2fc   :  { %v1987_v12 = vadd.f32 %v1965_v52, %v1817_v11  ;;  %v1994_v53 = vmax.f32 %v1986_v55, 0.0  ;;  %v5811_v52 = vld [vmem:[%s6319_s1 + $0xb68] sm:$0xff] }
 0x2fd   :  { %v1969_v31 = vpop.f32.mrf.mxu1  ;;  %v1811_v6 = vpop.f32.mrf.mxu0 }
 0x2fe   :  { %v1988_v61 = vadd.f32 %v1969_v31, %v1818_v35  ;;  %v1822_v2 = vadd.f32 %v1811_v6, %v1653_v27  ;;  %v1995_v36 = vmax.f32 %v1987_v12, 0.0  ;;  %v5831_v31 = vld [vmem:[%s6319_s1 + $0xb50] sm:$0xff]  ;;  %v5849_v6 = vld [vmem:[%s6319_s1 + $0xb38] sm:$0xff] }
 0x2ff   :  { %v1971_v26 = vpop.f32.mrf.mxu1  ;;  %v1813_v41 = vpop.f32.mrf.mxu0  ;;  %v5873_v35 = vld [vmem:[%s6319_s1 + $0xb18] sm:$0xff] }
 0x300   :  { %v1989_v10 = vadd.f32 %v1971_v26, %v1819_v57  ;;  %v1996_v5 = vmax.f32 %v1988_v61, 0.0  ;;  %v1823_v39 = vadd.f32 %v1813_v41, %v1654_v38  ;;  %v5855_v26 = vld [vmem:[%s6319_s1 + $0xb30] sm:$0xff] }
 0x301   :  { %v1975_v25 = vpop.f32.mrf.mxu1  ;;  %v3965_v57 = vld [vmem:[%s6319_s1 + $0xaf0] ss:$8 sm:$0x3] }
 0x302   :  { %v1990_v14 = vadd.f32 %v1975_v25, %v1820_v8  ;;  %v1997_v4 = vmax.f32 %v1989_v10, 0.0  ;;  %v2002_v28 = vmax.f32 %v1994_v53, %v1996_v5  ;;  %v5925_v61 = vrot.slane %v3965_v57, %v6337_v60 }
 0x303   :  { %v1977_v50 = vpop.f32.mrf.mxu1  ;;  %v5929_v41 = vrot.slane %v3965_v57, %v6338_v21 }
 0x304   :  { %v1991_v34 = vadd.f32 %v1977_v50, %v1821_v43  ;;  %v1998_v15 = vmax.f32 %v1990_v14, 0.0  ;;  %v2003_v46 = vmax.f32 %v1995_v36, %v1997_v4 }
 0x305   :  { %v1981_v19 = vpop.f32.mrf.mxu1 }
 0x306   :  { %v1992_v18 = vadd.f32 %v1981_v19, %v1822_v2  ;;  %v1999_v7 = vmax.f32 %v1991_v34, 0.0 }
 0x307   :  { %v1983_v62 = vpop.f32.mrf.mxu1 }
 0x308   :  { %v2000_v44 = vmax.f32 %v1992_v18, 0.0  ;;  %v1993_v45 = vadd.f32 %v1983_v62, %v1823_v39 }
 0x30a   :  { %v2004_v40 = vmax.f32 %v1998_v15, %v2000_v44  ;;  %v2001_v16 = vmax.f32 %v1993_v45, 0.0 }
 0x30c   :  { %v5770_v63 = vmax.f32 %v2002_v28, %v2004_v40  ;;  %v2005_v0 = vmax.f32 %v1999_v7, %v2001_v16 }
 0x30e   :  { %v5772_v29 = vmax.f32 %v2003_v46, %v2005_v0  ;;  %3966 = vmatmul.mubr.msk.f32.vlgmr.msra.gmra.mxu0 %vm2029_vm1, %v5770_v63 }
 0x30f   :  { %2133 = vmatpush1.msra.mxu0 %v5716_v30  ;;  %2172 = vmatprep.mubr.f32.mxu0 %v6333_v42 }
 0x310   :  { %2403 = vrot.lane.b32.xlu0 %v5772_v29, %s4182_s19  ;;  %2134 = vmatprep.subr.mxu0 %v5723_v24 }
 0x311   :  { %2135 = vmatpush1.msra.mxu0 %v5730_v47 }
 0x312   :  { %2136 = vmatprep.subr.mxu0 %v5737_v13 }
 0x313   :  { %2137 = vmatpush1.msra.mxu0 %v5744_v32 }
 0x314   :  { %2553 = vrot.lane.b32.xlu0 %v5772_v29, %s4183_s20  ;;  %2138 = vmatprep.subr.mxu0 %v5751_v17 }
 0x315   :  { %2139 = vmatpush1.msra.mxu0 %v5758_v1 }
 0x316   :  { %2207 = vmatprep.subr.mxu0 %v5710_v56 }
 0x382   :  { %v2404_v3 = vpop.permute.xlu0 %2403 }
 0x383   :  { %3971 = vmatmul.mubr.msk.f32.vlgmr.msra.gmra.mxu1 %vm2029_vm1, %v2404_v3 }
 0x384   :  { %2582 = vmatpush1.msra.mxu1 %v5716_v30  ;;  %2621 = vmatprep.mubr.f32.mxu1 %v6333_v42 }
 0x385   :  { %2583 = vmatprep.subr.mxu1 %v5723_v24 }
 0x386   :  { %2584 = vmatpush1.msra.mxu1 %v5730_v47  ;;  %v2554_v58 = vpop.permute.xlu0 %2553 }
 0x387   :  { %2585 = vmatprep.subr.mxu1 %v5737_v13 }
 0x388   :  { %2586 = vmatpush1.msra.mxu1 %v5744_v32 }
 0x389   :  { %2587 = vmatprep.subr.mxu1 %v5751_v17 }
 0x38a   :  { %2588 = vmatpush1.msra.mxu1 %v5758_v1 }
 0x38b   :  { %3973 = vmatmul.mubr.msk.f32.vlgmr.msra.gmra.mxu1 %vm2029_vm1, %v2554_v58  ;;  %2663 = vmatprep.subr.mxu1 %v5799_v37 }
 0x38c   :  { %2664 = vmatpush1.msra.mxu1 %v5805_v20  ;;  %2711 = vmatprep.mubr.f32.mxu1 %v6333_v42 }
 0x38d   :  { %2665 = vmatprep.subr.mxu1 %v5811_v52 }
 0x38e   :  { %2666 = vmatpush1.msra.mxu1 %v5818_v23 }
 0x38f   :  { %2667 = vmatprep.subr.mxu1 %v5824_v22 }
 0x390   :  { %2668 = vmatpush1.msra.mxu1 %v5831_v31 }
 0x391   :  { %2669 = vmatprep.subr.mxu1 %v5837_v49 }
 0x392   :  { %2670 = vmatpush1.msra.mxu1 %v5843_v48 }
 0x393   :  { %2671 = vmatprep.subr.mxu1 %v5849_v6 }
 0x394   :  { %2672 = vmatpush1.msra.mxu1 %v5855_v26 }
 0x395   :  { %2673 = vmatprep.subr.mxu1 %v5861_v59 }
 0x396   :  { %2674 = vmatpush1.msra.mxu1 %v5867_v33 }
 0x397   :  { %2675 = vmatprep.subr.mxu1 %v5873_v35 }
 0x398   :  { %2676 = vmatpush1.msra.mxu1 %v5879_v9 }
 0x399   :  { %2677 = vmatprep.subr.mxu1 %v5885_v51 }
 0x39a   :  { %2678 = vmatpush1.msra.mxu1 %v5891_v54 }
 0x39b   :  { %2712 = vmatmul.mubr.f32.vlgmr.msra.gmra.mxu1 %v6333_v42  ;;  %2799 = vmatprep.subr.mxu1 %v5799_v37 }
 0x39c   :  { %2800 = vmatpush1.msra.mxu1 %v5805_v20  ;;  %2847 = vmatprep.mubr.f32.mxu1 %v6333_v42 }
 0x39d   :  { %2801 = vmatprep.subr.mxu1 %v5811_v52 }
 0x39e   :  { %2802 = vmatpush1.msra.mxu1 %v5818_v23 }
 0x39f   :  { %2803 = vmatprep.subr.mxu1 %v5824_v22 }
 0x3a0   :  { %2804 = vmatpush1.msra.mxu1 %v5831_v31 }
 0x3a1   :  { %2805 = vmatprep.subr.mxu1 %v5837_v49 }
 0x3a2   :  { %2806 = vmatpush1.msra.mxu1 %v5843_v48 }
 0x3a3   :  { %2807 = vmatprep.subr.mxu1 %v5849_v6 }
 0x3a4   :  { %2808 = vmatpush1.msra.mxu1 %v5855_v26 }
 0x3a5   :  { %2809 = vmatprep.subr.mxu1 %v5861_v59 }
 0x3a6   :  { %2810 = vmatpush1.msra.mxu1 %v5867_v33 }
 0x3a7   :  { %2811 = vmatprep.subr.mxu1 %v5873_v35 }
 0x3a8   :  { %2812 = vmatpush1.msra.mxu1 %v5879_v9 }
 0x3a9   :  { %2813 = vmatprep.subr.mxu1 %v5885_v51 }
 0x3aa   :  { %2814 = vmatpush1.msra.mxu1 %v5891_v54 }
 0x3ab   :  { %3069 = vmatprep.subr.mxu1 %v5799_v37 }
 0x3ce   :  { %v2099_v11 = vpop.f32.mrf.mxu0 }
 0x3cf   :  { %v2100_v55 = vadd.f32 %v2099_v11, %v5925_v61 }
 0x443   :  { %v5915_v25 = vpop.f32.mrf.mxu1 }
 0x445   :  { %v5920_v27 = vpop.f32.mrf.mxu1 }
 0x44b   :  { %v5922_v8 = vpop.f32.mrf.mxu1 }
 0x44d   :  { %v2625_v38 = vpop.f32.mrf.mxu1 }
 0x44e   :  { %v2626_v43 = vadd.f32 %v2625_v38, %v5929_v41 }
 0x45b   :  { %v2713_v50 = vpop.f32.mrf.mxu1 }
 0x45c   :  { %v2718_v2 = vadd.f32 %v2713_v50, %v2100_v55 }
 0x45d   :  { %v2715_v10 = vpop.f32.mrf.mxu1 }
 0x45e   :  { %4053 = vtanh.f32 %v2718_v2  ;;  %v2743_v14 = vadd.f32 %v2715_v10, %v2626_v43  ;;  %v3974_v19 = vmul.f32 -1.442695, %v2718_v2 }
 0x460   :  { %4055 = vtanh.f32 %v2743_v14  ;;  %v3975_v5 = vmul.f32 -1.442695, %v2743_v14 }
 0x461   :  { %4057 = vpow2.f32 %v3974_v19 }
 0x462   :  { %4059 = vpow2.f32 %v3975_v5 }
 0x46b   :  { %v4054_v12 = vpop.eup %4053 }
 0x46c   :  { %2728 = vrot.lane.b32.xlu1 %v4054_v12, %s4184_s28 }
 0x46d   :  { %v4056_v60 = vpop.eup %4055 }
 0x46e   :  { %v4058_v21 = vpop.eup %4057 }
 0x46f   :  { %v2722_v39 = vadd.f32 1.0, %v4058_v21  ;;  %v4060_v34 = vpop.eup %4059 }
 0x470   :  { %2753 = vrot.lane.b32.xlu1 %v4056_v60, %s4184_s28  ;;  %v2747_v18 = vadd.f32 1.0, %v4060_v34 }
 0x471   :  { %4061 = vrcp.f32 %v2722_v39 }
 0x472   :  { %4063 = vrcp.f32 %v2747_v18 }
 0x47e   :  { %v4062_v53 = vpop.eup %4061 }
 0x47f   :  { %v4064_v15 = vpop.eup %4063  ;;  %v2726_v36 = vmul.f32 0.0, %v4062_v53 }
 0x480   :  { %v2751_v40 = vmul.f32 0.0, %v4064_v15 }
 0x4de   :  { %v2729_v62 = vpop.permute.xlu1 %2728 }
 0x4df   :  { %v2731_v4 = vmul.f32 %v4062_v53, %v2729_v62 }
 0x4e1   :  { %2733 = vrot.lane.b32.xlu0 %v2731_v4, %s4183_s20 }
 0x4e2   :  { %v2754_v44 = vpop.permute.xlu1 %2753 }
 0x4e3   :  { %v2756_v45 = vmul.f32 %v4064_v15, %v2754_v44 }
 0x4e5   :  { %2758 = vrot.lane.b32.xlu1 %v2756_v45, %s4183_s20 }
 0x553   :  { %v2734_v28 = vpop.permute.xlu0 %2733 }
 0x554   :  { %v5936_v7 = vadd.f32 %v2734_v28, %v2726_v36 }
 0x556   :  { %4065 = vtanh.f32 %v5936_v7 }
 0x557   :  { %v2759_v16 = vpop.permute.xlu1 %2758 }
 0x558   :  { %v5939_v46 = vadd.f32 %v2759_v16, %v2751_v40 }
 0x55a   :  { %4067 = vtanh.f32 %v5939_v46 }
 0x563   :  { %v4066_v0 = vpop.eup %4065 }
 0x564   :  { %2739 = vrot.lane.b32.xlu0 %v4066_v0, %s4184_s28 }
 0x567   :  { %v4068_v3 = vpop.eup %4067 }
 0x568   :  { %2104 = vrot.lane.b32.xlu0 %v5770_v63, %s4182_s19  ;;  %2764 = vrot.lane.b32.xlu1 %v4068_v3, %s4184_s28 }
 0x56c   :  { %2254 = vrot.lane.b32.xlu0 %v5770_v63, %s4183_s20  ;;  %2179 = vrot.lane.b32.xlu1 %v5770_v63, %s4184_s28 }
 0x570   :  { %2478 = vrot.lane.b32.xlu1 %v5772_v29, %s4184_s28 }
 0x5d6   :  { %v2740_v58 = vpop.permute.xlu0 %2739 }
 0x5d7   :  { %v2742_v57 = vmul.f32 %v4062_v53, %v2740_v58 }
 0x5d9   :  { %2769 = vrot.lane.b32.xlu0 %v2742_v57, %s4183_s20 }
 0x5da   :  { %v2105_v11 = vpop.permute.xlu0 %2104  ;;  %v2765_v38 = vpop.permute.xlu1 %2764 }
 0x5db   :  { %v2767_v55 = vmul.f32 %v4064_v15, %v2765_v38  ;;  %3967 = vmatmul.mubr.msk.f32.vlgmr.msra.gmra.mxu0 %vm2029_vm1, %v2105_v11 }
 0x5dc   :  { %2208 = vmatpush1.msra.mxu0 %v5716_v30  ;;  %2247 = vmatprep.mubr.f32.mxu0 %v6333_v42 }
 0x5dd   :  { %2209 = vmatprep.subr.mxu0 %v5723_v24  ;;  %2774 = vrot.lane.b32.xlu1 %v2767_v55, %s4184_s28 }
 0x5de   :  { %2210 = vmatpush1.msra.mxu0 %v5730_v47  ;;  %v2180_v63 = vpop.permute.xlu1 %2179  ;;  %v2255_v50 = vpop.permute.xlu0 %2254 }
 0x5df   :  { %2211 = vmatprep.subr.mxu0 %v5737_v13 }
 0x5e0   :  { %2212 = vmatpush1.msra.mxu0 %v5744_v32 }
 0x5e1   :  { %2213 = vmatprep.subr.mxu0 %v5751_v17 }
 0x5e2   :  { %2214 = vmatpush1.msra.mxu0 %v5758_v1  ;;  %v2479_v43 = vpop.permute.xlu1 %2478 }
 0x5e3   :  { %3968 = vmatmul.mubr.msk.f32.vlgmr.msra.gmra.mxu0 %vm2029_vm1, %v2180_v63  ;;  %2282 = vmatprep.subr.mxu0 %v5710_v56 }
 0x5e4   :  { %2283 = vmatpush1.msra.mxu0 %v5716_v30  ;;  %2322 = vmatprep.mubr.f32.mxu0 %v6333_v42 }
 0x5e5   :  { %2284 = vmatprep.subr.mxu0 %v5723_v24 }
 0x5e6   :  { %2285 = vmatpush1.msra.mxu0 %v5730_v47 }
 0x5e7   :  { %2286 = vmatprep.subr.mxu0 %v5737_v13 }
 0x5e8   :  { %2287 = vmatpush1.msra.mxu0 %v5744_v32 }
 0x5e9   :  { %2288 = vmatprep.subr.mxu0 %v5751_v17 }
 0x5ea   :  { %2289 = vmatpush1.msra.mxu0 %v5758_v1 }
 0x5eb   :  { %3969 = vmatmul.mubr.msk.f32.vlgmr.msra.gmra.mxu0 %vm2029_vm1, %v2255_v50  ;;  %2356 = vmatprep.subr.mxu0 %v5710_v56 }
 0x5ec   :  { %2357 = vmatpush1.msra.mxu0 %v5716_v30  ;;  %2396 = vmatprep.mubr.f32.mxu0 %v6333_v42 }
 0x5ed   :  { %2358 = vmatprep.subr.mxu0 %v5723_v24 }
 0x5ee   :  { %2359 = vmatpush1.msra.mxu0 %v5730_v47 }
 0x5ef   :  { %2360 = vmatprep.subr.mxu0 %v5737_v13 }
 0x5f0   :  { %2361 = vmatpush1.msra.mxu0 %v5744_v32 }
 0x5f1   :  { %2362 = vmatprep.subr.mxu0 %v5751_v17 }
 0x5f2   :  { %2363 = vmatpush1.msra.mxu0 %v5758_v1 }
 0x5f3   :  { %3970 = vmatmul.mubr.msk.f32.vlgmr.msra.gmra.mxu0 %vm2029_vm1, %v5772_v29  ;;  %2506 = vmatprep.subr.mxu0 %v5710_v56 }
 0x5f4   :  { %2507 = vmatpush1.msra.mxu0 %v5716_v30  ;;  %2546 = vmatprep.mubr.f32.mxu0 %v6333_v42 }
 0x5f5   :  { %2508 = vmatprep.subr.mxu0 %v5723_v24 }
 0x5f6   :  { %2509 = vmatpush1.msra.mxu0 %v5730_v47  ;;  %v6034_v47 = vpop.f32.mrf.mxu0 }
 0x5f7   :  { %2510 = vmatprep.subr.mxu0 %v5737_v13 }
 0x5f8   :  { %2511 = vmatpush1.msra.mxu0 %v5744_v32 }
 0x5f9   :  { %2512 = vmatprep.subr.mxu0 %v5751_v17 }
 0x5fa   :  { %2513 = vmatpush1.msra.mxu0 %v5758_v1 }
 0x5fb   :  { %3972 = vmatmul.mubr.msk.f32.vlgmr.msra.gmra.mxu0 %vm2029_vm1, %v2479_v43  ;;  %2934 = vmatprep.subr.mxu0 %v5799_v37 }
 0x5fc   :  { %2935 = vmatpush1.msra.mxu0 %v5805_v20  ;;  %2982 = vmatprep.mubr.f32.mxu0 %v6333_v42 }
 0x5fd   :  { %2936 = vmatprep.subr.mxu0 %v5811_v52 }
 0x5fe   :  { %2937 = vmatpush1.msra.mxu0 %v5818_v23 }
 0x5ff   :  { %2938 = vmatprep.subr.mxu0 %v5824_v22 }
 0x600   :  { %2939 = vmatpush1.msra.mxu0 %v5831_v31 }
 0x601   :  { %2940 = vmatprep.subr.mxu0 %v5837_v49 }
 0x602   :  { %2941 = vmatpush1.msra.mxu0 %v5843_v48 }
 0x603   :  { %2942 = vmatprep.subr.mxu0 %v5849_v6 }
 0x604   :  { %2943 = vmatpush1.msra.mxu0 %v5855_v26 }
 0x605   :  { %2944 = vmatprep.subr.mxu0 %v5861_v59 }
 0x606   :  { %2945 = vmatpush1.msra.mxu0 %v5867_v33 }
 0x607   :  { %2946 = vmatprep.subr.mxu0 %v5873_v35 }
 0x608   :  { %2947 = vmatpush1.msra.mxu0 %v5879_v9 }
 0x609   :  { %2948 = vmatprep.subr.mxu0 %v5885_v51 }
 0x60a   :  { %2949 = vmatpush1.msra.mxu0 %v5891_v54 }
 0x60b   :  { %3204 = vmatprep.subr.mxu0 %v5799_v37 }
 0x64b   :  { %v2770_v56 = vpop.permute.xlu0 %2769 }
 0x64c   :  { %2772 = vst.msk [vmem:[#allocation4] sm:$0xff] %vm2029_vm1, %v2770_v56 }
 0x64f   :  { %v2775_v30 = vpop.permute.xlu1 %2774 }
 0x650   :  { %2778 = vst.msk [vmem:[#allocation4 + $0x38] sm:$0xff] %vm2777_vm2, %v2775_v30  ;;  %v2779_v24 = vsel %vm2029_vm1, %v2770_v56, %v2775_v30 }
 0x651   :  { %3976 = vmatmul.mubr.msk.f32.vlgmr.msra.gmra.mxu1 %vm45_vm0, %v2779_v24 }
 0x652   :  { %3070 = vmatpush1.msra.mxu1 %v5805_v20  ;;  %3117 = vmatprep.mubr.f32.mxu1 %v6333_v42 }
 0x653   :  { %3071 = vmatprep.subr.mxu1 %v5811_v52 }
 0x654   :  { %3072 = vmatpush1.msra.mxu1 %v5818_v23 }
 0x655   :  { %3073 = vmatprep.subr.mxu1 %v5824_v22 }
 0x656   :  { %3074 = vmatpush1.msra.mxu1 %v5831_v31 }
 0x657   :  { %3075 = vmatprep.subr.mxu1 %v5837_v49 }
 0x658   :  { %3076 = vmatpush1.msra.mxu1 %v5843_v48 }
 0x659   :  { %3077 = vmatprep.subr.mxu1 %v5849_v6 }
 0x65a   :  { %3078 = vmatpush1.msra.mxu1 %v5855_v26 }
 0x65b   :  { %3079 = vmatprep.subr.mxu1 %v5861_v59 }
 0x65c   :  { %3080 = vmatpush1.msra.mxu1 %v5867_v33 }
 0x65d   :  { %3081 = vmatprep.subr.mxu1 %v5873_v35 }
 0x65e   :  { %3082 = vmatpush1.msra.mxu1 %v5879_v9 }
 0x65f   :  { %3083 = vmatprep.subr.mxu1 %v5885_v51 }
 0x660   :  { %3084 = vmatpush1.msra.mxu1 %v5891_v54 }
 0x661   :  { %3339 = vmatprep.subr.mxu1 %v5799_v37 }
 0x69b   :  { %v2174_v13 = vpop.f32.mrf.mxu0 }
 0x69c   :  { %v2175_v19 = vadd.f32 %v2174_v13, %v5925_v61 }
 0x69d   :  { %v6036_v32 = vpop.f32.mrf.mxu0 }
 0x6a3   :  { %v6038_v17 = vpop.f32.mrf.mxu0 }
 0x6a5   :  { %v6040_v1 = vpop.f32.mrf.mxu0 }
 0x6ab   :  { %v6042_v29 = vpop.f32.mrf.mxu0 }
 0x6ad   :  { %v6044_v2 = vpop.f32.mrf.mxu0 }
 0x6b3   :  { %v6046_v10 = vpop.f32.mrf.mxu0 }
 0x6b5   :  { %v6048_v14 = vpop.f32.mrf.mxu0 }
 0x6bb   :  { %v6050_v12 = vpop.f32.mrf.mxu0 }
 0x6bd   :  { %v2550_v60 = vpop.f32.mrf.mxu0 }
 0x6be   :  { %v2551_v21 = vadd.f32 %v2550_v60, %v5929_v41 }
 0x711   :  { %v2849_v5 = vpop.f32.mrf.mxu1 }
 0x712   :  { %v2854_v39 = vadd.f32 %v2849_v5, %v2175_v19 }
 0x713   :  { %v2851_v34 = vpop.f32.mrf.mxu1 }
 0x714   :  { %4069 = vtanh.f32 %v2854_v39  ;;  %v2879_v18 = vadd.f32 %v2851_v34, %v2551_v21  ;;  %v3977_v4 = vmul.f32 -1.442695, %v2854_v39  ;;  %v2250_v21 = vadd.f32 %v6038_v17, %v5925_v61 }
 0x715   :  { %v2476_v34 = vadd.f32 %v5920_v27, %v5929_v41 }
 0x716   :  { %4071 = vtanh.f32 %v2879_v18  ;;  %v3978_v15 = vmul.f32 -1.442695, %v2879_v18 }
 0x717   :  { %4073 = vpow2.f32 %v3977_v4 }
 0x718   :  { %4075 = vpow2.f32 %v3978_v15 }
 0x721   :  { %v4070_v53 = vpop.eup %4069 }
 0x722   :  { %2864 = vrot.lane.b32.xlu0 %v4070_v53, %s4184_s28 }
 0x723   :  { %v4072_v62 = vpop.eup %4071 }
 0x724   :  { %2889 = vrot.lane.b32.xlu1 %v4072_v62, %s4184_s28  ;;  %v4074_v44 = vpop.eup %4073 }
 0x725   :  { %v4076_v45 = vpop.eup %4075  ;;  %v2858_v36 = vadd.f32 1.0, %v4074_v44 }
 0x726   :  { %v2883_v28 = vadd.f32 1.0, %v4076_v45 }
 0x727   :  { %4077 = vrcp.f32 %v2858_v36 }
 0x728   :  { %4079 = vrcp.f32 %v2883_v28 }
 0x734   :  { %v4078_v40 = vpop.eup %4077 }
 0x735   :  { %v4080_v3 = vpop.eup %4079  ;;  %v2862_v11 = vmul.f32 %v4078_v40, %v5936_v7 }
 0x736   :  { %v2887_v63 = vmul.f32 %v4080_v3, %v5939_v46 }
 0x794   :  { %v2865_v16 = vpop.permute.xlu0 %2864 }
 0x795   :  { %v2867_v0 = vmul.f32 %v4078_v40, %v2865_v16 }
 0x796   :  { %v2890_v58 = vpop.permute.xlu1 %2889 }
 0x797   :  { %2869 = vrot.lane.b32.xlu0 %v2867_v0, %s4183_s20  ;;  %v2892_v57 = vmul.f32 %v4080_v3, %v2890_v58 }
 0x799   :  { %2894 = vrot.lane.b32.xlu1 %v2892_v57, %s4183_s20 }
 0x809   :  { %v2870_v38 = vpop.permute.xlu0 %2869 }
 0x80a   :  { %v6059_v55 = vadd.f32 %v2870_v38, %v2862_v11 }
 0x80b   :  { %v2895_v50 = vpop.permute.xlu1 %2894 }
 0x80c   :  { %4081 = vtanh.f32 %v6059_v55  ;;  %v6063_v43 = vadd.f32 %v2895_v50, %v2887_v63 }
 0x80e   :  { %4083 = vtanh.f32 %v6063_v43 }
 0x819   :  { %v4082_v56 = vpop.eup %4081 }
 0x81a   :  { %2875 = vrot.lane.b32.xlu0 %v4082_v56, %s4184_s28 }
 0x81b   :  { %v4084_v30 = vpop.eup %4083 }
 0x81c   :  { %2900 = vrot.lane.b32.xlu1 %v4084_v30, %s4184_s28 }
 0x88c   :  { %v2876_v24 = vpop.permute.xlu0 %2875 }
 0x88d   :  { %v2878_v7 = vmul.f32 %v4078_v40, %v2876_v24 }
 0x88e   :  { %v2901_v13 = vpop.permute.xlu1 %2900 }
 0x88f   :  { %2905 = vrot.lane.b32.xlu0 %v2878_v7, %s4183_s20  ;;  %v2903_v60 = vmul.f32 %v4080_v3, %v2901_v13 }
 0x891   :  { %2910 = vrot.lane.b32.xlu1 %v2903_v60, %s4184_s28 }
 0x901   :  { %v2906_v46 = vpop.permute.xlu0 %2905 }
 0x902   :  { %2908 = vst.msk [vmem:[#allocation4 + $0x8] sm:$0xff] %vm2029_vm1, %v2906_v46 }
 0x903   :  { %v2911_v19 = vpop.permute.xlu1 %2910 }
 0x904   :  { %2913 = vst.msk [vmem:[#allocation4 + $0x30] sm:$0xff] %vm2777_vm2, %v2911_v19  ;;  %v2914_v5 = vsel %vm2029_vm1, %v2906_v46, %v2911_v19 }
 0x905   :  { %3979 = vmatmul.mubr.msk.f32.vlgmr.msra.gmra.mxu0 %vm45_vm0, %v2914_v5 }
 0x906   :  { %3205 = vmatpush1.msra.mxu0 %v5805_v20  ;;  %3252 = vmatprep.mubr.f32.mxu0 %v6333_v42 }
 0x907   :  { %3206 = vmatprep.subr.mxu0 %v5811_v52 }
 0x908   :  { %3207 = vmatpush1.msra.mxu0 %v5818_v23 }
 0x909   :  { %3208 = vmatprep.subr.mxu0 %v5824_v22 }
 0x90a   :  { %3209 = vmatpush1.msra.mxu0 %v5831_v31 }
 0x90b   :  { %3210 = vmatprep.subr.mxu0 %v5837_v49 }
 0x90c   :  { %3211 = vmatpush1.msra.mxu0 %v5843_v48 }
 0x90d   :  { %3212 = vmatprep.subr.mxu0 %v5849_v6 }
 0x90e   :  { %3213 = vmatpush1.msra.mxu0 %v5855_v26 }
 0x90f   :  { %3214 = vmatprep.subr.mxu0 %v5861_v59 }
 0x910   :  { %3215 = vmatpush1.msra.mxu0 %v5867_v33 }
 0x911   :  { %3216 = vmatprep.subr.mxu0 %v5873_v35 }
 0x912   :  { %3217 = vmatpush1.msra.mxu0 %v5879_v9 }
 0x913   :  { %3218 = vmatprep.subr.mxu0 %v5885_v51 }
 0x914   :  { %3219 = vmatpush1.msra.mxu0 %v5891_v54 }
 0x915   :  { %3474 = vmatprep.subr.mxu0 %v5799_v37 }
 0x9c5   :  { %v2984_v39 = vpop.f32.mrf.mxu0 }
 0x9c6   :  { %v2989_v18 = vadd.f32 %v2984_v39, %v2250_v21  ;;  %v2325_v21 = vadd.f32 %v6042_v29, %v5925_v61 }
 0x9c7   :  { %v2986_v53 = vpop.f32.mrf.mxu0 }
 0x9c8   :  { %4085 = vtanh.f32 %v2989_v18  ;;  %v3014_v62 = vadd.f32 %v2986_v53, %v2476_v34  ;;  %v3980_v44 = vmul.f32 -1.442695, %v2989_v18  ;;  %v2401_v34 = vadd.f32 %v6048_v14, %v5929_v41 }
 0x9ca   :  { %4087 = vtanh.f32 %v3014_v62  ;;  %v3981_v45 = vmul.f32 -1.442695, %v3014_v62 }
 0x9cb   :  { %4089 = vpow2.f32 %v3980_v44 }
 0x9cc   :  { %4091 = vpow2.f32 %v3981_v45 }
 0x9d5   :  { %v4086_v4 = vpop.eup %4085 }
 0x9d6   :  { %2999 = vrot.lane.b32.xlu0 %v4086_v4, %s4184_s28 }
 0x9d7   :  { %v4088_v15 = vpop.eup %4087 }
 0x9d8   :  { %3024 = vrot.lane.b32.xlu1 %v4088_v15, %s4184_s28  ;;  %v4090_v17 = vpop.eup %4089 }
 0x9d9   :  { %v4092_v36 = vpop.eup %4091  ;;  %v2993_v28 = vadd.f32 1.0, %v4090_v17 }
 0x9da   :  { %v3018_v40 = vadd.f32 1.0, %v4092_v36 }
 0x9db   :  { %4093 = vrcp.f32 %v2993_v28 }
 0x9dc   :  { %4095 = vrcp.f32 %v3018_v40 }
 0x9e8   :  { %v4094_v27 = vpop.eup %4093 }
 0x9e9   :  { %v4096_v3 = vpop.eup %4095  ;;  %v2997_v11 = vmul.f32 %v4094_v27, %v6059_v55 }
 0x9ea   :  { %v3022_v50 = vmul.f32 %v4096_v3, %v6063_v43 }
 0xa48   :  { %v3000_v16 = vpop.permute.xlu0 %2999 }
 0xa49   :  { %v3002_v0 = vmul.f32 %v4094_v27, %v3000_v16 }
 0xa4a   :  { %v3025_v58 = vpop.permute.xlu1 %3024 }
 0xa4b   :  { %3004 = vrot.lane.b32.xlu0 %v3002_v0, %s4183_s20  ;;  %v3027_v57 = vmul.f32 %v4096_v3, %v3025_v58 }
 0xa4d   :  { %3029 = vrot.lane.b32.xlu1 %v3027_v57, %s4183_s20 }
 0xabd   :  { %v3005_v38 = vpop.permute.xlu0 %3004 }
 0xabe   :  { %v6100_v63 = vadd.f32 %v3005_v38, %v2997_v11 }
 0xabf   :  { %v3030_v56 = vpop.permute.xlu1 %3029 }
 0xac0   :  { %4097 = vtanh.f32 %v6100_v63  ;;  %v6104_v30 = vadd.f32 %v3030_v56, %v3022_v50 }
 0xac2   :  { %4099 = vtanh.f32 %v6104_v30 }
 0xacd   :  { %v4098_v24 = vpop.eup %4097 }
 0xace   :  { %3010 = vrot.lane.b32.xlu0 %v4098_v24, %s4184_s28 }
 0xacf   :  { %v4100_v7 = vpop.eup %4099 }
 0xad0   :  { %3035 = vrot.lane.b32.xlu1 %v4100_v7, %s4184_s28 }
 0xb40   :  { %v3011_v13 = vpop.permute.xlu0 %3010 }
 0xb41   :  { %v3013_v55 = vmul.f32 %v4094_v27, %v3011_v13 }
 0xb42   :  { %v3036_v60 = vpop.permute.xlu1 %3035 }
 0xb43   :  { %3040 = vrot.lane.b32.xlu0 %v3013_v55, %s4183_s20  ;;  %v3038_v46 = vmul.f32 %v4096_v3, %v3036_v60 }
 0xb45   :  { %3045 = vrot.lane.b32.xlu1 %v3038_v46, %s4184_s28 }
 0xbb5   :  { %v3041_v43 = vpop.permute.xlu0 %3040 }
 0xbb6   :  { %3043 = vst.msk [vmem:[#allocation4 + $0x10] sm:$0xff] %vm2029_vm1, %v3041_v43 }
 0xbb7   :  { %v3046_v19 = vpop.permute.xlu1 %3045 }
 0xbb8   :  { %3048 = vst.msk [vmem:[#allocation4 + $0x28] sm:$0xff] %vm2777_vm2, %v3046_v19  ;;  %v3049_v5 = vsel %vm2029_vm1, %v3041_v43, %v3046_v19  ;;  %v2399_v43 = vadd.f32 %v6046_v10, %v5925_v61 }
 0xbb9   :  { %3982 = vmatmul.mubr.msk.f32.vlgmr.msra.gmra.mxu1 %vm45_vm0, %v3049_v5  ;;  %v2327_v5 = vadd.f32 %v6044_v2, %v5929_v41 }
 0xbba   :  { %3340 = vmatpush1.msra.mxu1 %v5805_v20  ;;  %3387 = vmatprep.mubr.f32.mxu1 %v6333_v42 }
 0xbbb   :  { %3341 = vmatprep.subr.mxu1 %v5811_v52 }
 0xbbc   :  { %3342 = vmatpush1.msra.mxu1 %v5818_v23 }
 0xbbd   :  { %3343 = vmatprep.subr.mxu1 %v5824_v22 }
 0xbbe   :  { %3344 = vmatpush1.msra.mxu1 %v5831_v31 }
 0xbbf   :  { %3345 = vmatprep.subr.mxu1 %v5837_v49 }
 0xbc0   :  { %3346 = vmatpush1.msra.mxu1 %v5843_v48 }
 0xbc1   :  { %3347 = vmatprep.subr.mxu1 %v5849_v6 }
 0xbc2   :  { %3348 = vmatpush1.msra.mxu1 %v5855_v26 }
 0xbc3   :  { %3349 = vmatprep.subr.mxu1 %v5861_v59 }
 0xbc4   :  { %3350 = vmatpush1.msra.mxu1 %v5867_v33 }
 0xbc5   :  { %3351 = vmatprep.subr.mxu1 %v5873_v35 }
 0xbc6   :  { %3352 = vmatpush1.msra.mxu1 %v5879_v9 }
 0xbc7   :  { %3353 = vmatprep.subr.mxu1 %v5885_v51 }
 0xbc8   :  { %3354 = vmatpush1.msra.mxu1 %v5891_v54 }
 0xbc9   :  { %3609 = vmatprep.subr.mxu1 %v5799_v37 }
 0xc79   :  { %v3119_v39 = vpop.f32.mrf.mxu1 }
 0xc7a   :  { %v3124_v18 = vadd.f32 %v3119_v39, %v2325_v21 }
 0xc7b   :  { %v3121_v53 = vpop.f32.mrf.mxu1 }
 0xc7c   :  { %4101 = vtanh.f32 %v3124_v18  ;;  %v3149_v62 = vadd.f32 %v3121_v53, %v2401_v34  ;;  %v3983_v44 = vmul.f32 -1.442695, %v3124_v18 }
 0xc7e   :  { %4103 = vtanh.f32 %v3149_v62  ;;  %v3984_v37 = vmul.f32 -1.442695, %v3149_v62 }
 0xc7f   :  { %4105 = vpow2.f32 %v3983_v44 }
 0xc80   :  { %4107 = vpow2.f32 %v3984_v37 }
 0xc89   :  { %v4102_v4 = vpop.eup %4101 }
 0xc8a   :  { %3134 = vrot.lane.b32.xlu0 %v4102_v4, %s4184_s28 }
 0xc8b   :  { %v4104_v15 = vpop.eup %4103 }
 0xc8c   :  { %3159 = vrot.lane.b32.xlu1 %v4104_v15, %s4184_s28  ;;  %v4106_v29 = vpop.eup %4105 }
 0xc8d   :  { %v4108_v45 = vpop.eup %4107  ;;  %v3128_v17 = vadd.f32 1.0, %v4106_v29 }
 0xc8e   :  { %v3153_v36 = vadd.f32 1.0, %v4108_v45 }
 0xc8f   :  { %4109 = vrcp.f32 %v3128_v17 }
 0xc90   :  { %4111 = vrcp.f32 %v3153_v36 }
 0xc9c   :  { %v4110_v14 = vpop.eup %4109 }
 0xc9d   :  { %v4112_v27 = vpop.eup %4111  ;;  %v3132_v3 = vmul.f32 %v4110_v14, %v6100_v63 }
 0xc9e   :  { %v3157_v11 = vmul.f32 %v4112_v27, %v6104_v30 }
 0xcfc   :  { %v3135_v28 = vpop.permute.xlu0 %3134 }
 0xcfd   :  { %v3137_v40 = vmul.f32 %v4110_v14, %v3135_v28 }
 0xcfe   :  { %v3160_v16 = vpop.permute.xlu1 %3159 }
 0xcff   :  { %3139 = vrot.lane.b32.xlu0 %v3137_v40, %s4183_s20  ;;  %v3162_v0 = vmul.f32 %v4112_v27, %v3160_v16 }
 0xd01   :  { %3164 = vrot.lane.b32.xlu1 %v3162_v0, %s4183_s20 }
 0xd71   :  { %v3140_v58 = vpop.permute.xlu0 %3139 }
 0xd72   :  { %v6141_v57 = vadd.f32 %v3140_v58, %v3132_v3 }
 0xd73   :  { %v3165_v38 = vpop.permute.xlu1 %3164 }
 0xd74   :  { %4113 = vtanh.f32 %v6141_v57  ;;  %v6145_v50 = vadd.f32 %v3165_v38, %v3157_v11 }
 0xd76   :  { %4115 = vtanh.f32 %v6145_v50 }
 0xd81   :  { %v4114_v56 = vpop.eup %4113 }
 0xd82   :  { %3145 = vrot.lane.b32.xlu0 %v4114_v56, %s4184_s28 }
 0xd83   :  { %v4116_v24 = vpop.eup %4115 }
 0xd84   :  { %3170 = vrot.lane.b32.xlu1 %v4116_v24, %s4184_s28 }
 0xdf4   :  { %v3146_v7 = vpop.permute.xlu0 %3145 }
 0xdf5   :  { %v3148_v63 = vmul.f32 %v4110_v14, %v3146_v7 }
 0xdf6   :  { %v3171_v13 = vpop.permute.xlu1 %3170 }
 0xdf7   :  { %3175 = vrot.lane.b32.xlu0 %v3148_v63, %s4183_s20  ;;  %v3173_v55 = vmul.f32 %v4112_v27, %v3171_v13 }
 0xdf9   :  { %3180 = vrot.lane.b32.xlu1 %v3173_v55, %s4184_s28 }
 0xe69   :  { %v3176_v30 = vpop.permute.xlu0 %3175 }
 0xe6a   :  { %3178 = vst.msk [vmem:[#allocation4 + $0x18] sm:$0xff] %vm2029_vm1, %v3176_v30 }
 0xe6b   :  { %v3181_v60 = vpop.permute.xlu1 %3180 }
 0xe6c   :  { %3183 = vst.msk [vmem:[#allocation4 + $0x20] sm:$0xff] %vm2777_vm2, %v3181_v60  ;;  %v3184_v46 = vsel %vm2029_vm1, %v3176_v30, %v3181_v60 }
 0xe6d   :  { %3985 = vmatmul.mubr.msk.f32.vlgmr.msra.gmra.mxu0 %vm45_vm0, %v3184_v46 }
 0xe6e   :  { %3475 = vmatpush1.msra.mxu0 %v5805_v20  ;;  %3522 = vmatprep.mubr.f32.mxu0 %v6333_v42 }
 0xe6f   :  { %3476 = vmatprep.subr.mxu0 %v5811_v52 }
 0xe70   :  { %3477 = vmatpush1.msra.mxu0 %v5818_v23 }
 0xe71   :  { %3478 = vmatprep.subr.mxu0 %v5824_v22 }
 0xe72   :  { %3479 = vmatpush1.msra.mxu0 %v5831_v31 }
 0xe73   :  { %3480 = vmatprep.subr.mxu0 %v5837_v49 }
 0xe74   :  { %3481 = vmatpush1.msra.mxu0 %v5843_v48 }
 0xe75   :  { %3482 = vmatprep.subr.mxu0 %v5849_v6 }
 0xe76   :  { %3483 = vmatpush1.msra.mxu0 %v5855_v26 }
 0xe77   :  { %3484 = vmatprep.subr.mxu0 %v5861_v59 }
 0xe78   :  { %3485 = vmatpush1.msra.mxu0 %v5867_v33 }
 0xe79   :  { %3486 = vmatprep.subr.mxu0 %v5873_v35 }
 0xe7a   :  { %3487 = vmatpush1.msra.mxu0 %v5879_v9 }
 0xe7b   :  { %3488 = vmatprep.subr.mxu0 %v5885_v51 }
 0xe7c   :  { %3489 = vmatpush1.msra.mxu0 %v5891_v54 }
 0xf2d   :  { %v3254_v19 = vpop.f32.mrf.mxu0 }
 0xf2e   :  { %v3259_v21 = vadd.f32 %v3254_v19, %v2399_v43 }
 0xf2f   :  { %v3256_v39 = vpop.f32.mrf.mxu0 }
 0xf30   :  { %4117 = vtanh.f32 %v3259_v21  ;;  %v3284_v34 = vadd.f32 %v3256_v39, %v2327_v5  ;;  %v3986_v62 = vmul.f32 -1.442695, %v3259_v21 }
 0xf32   :  { %4119 = vtanh.f32 %v3284_v34  ;;  %v3987_v4 = vmul.f32 -1.442695, %v3284_v34 }
 0xf33   :  { %4121 = vpow2.f32 %v3986_v62 }
 0xf34   :  { %4123 = vpow2.f32 %v3987_v4 }
 0xf3d   :  { %v4118_v18 = vpop.eup %4117 }
 0xf3e   :  { %3269 = vrot.lane.b32.xlu0 %v4118_v18, %s4184_s28 }
 0xf3f   :  { %v4120_v53 = vpop.eup %4119 }
 0xf40   :  { %3294 = vrot.lane.b32.xlu1 %v4120_v53, %s4184_s28  ;;  %v4122_v10 = vpop.eup %4121 }
 0xf41   :  { %v4124_v15 = vpop.eup %4123  ;;  %v3263_v44 = vadd.f32 1.0, %v4122_v10 }
 0xf42   :  { %v3288_v37 = vadd.f32 1.0, %v4124_v15 }
 0xf43   :  { %4125 = vrcp.f32 %v3263_v44  ;;  %v2549_v44 = vadd.f32 %v6050_v12, %v5925_v61 }
 0xf44   :  { %4127 = vrcp.f32 %v3288_v37 }
 0xf50   :  { %v4126_v2 = vpop.eup %4125 }
 0xf51   :  { %v4128_v17 = vpop.eup %4127  ;;  %v3267_v28 = vmul.f32 %v4126_v2, %v6141_v57 }
 0xf52   :  { %v3292_v16 = vmul.f32 %v4128_v17, %v6145_v50 }
 0xfb0   :  { %v3270_v29 = vpop.permute.xlu0 %3269 }
 0xfb1   :  { %v3272_v45 = vmul.f32 %v4126_v2, %v3270_v29 }
 0xfb2   :  { %v3295_v36 = vpop.permute.xlu1 %3294 }
 0xfb3   :  { %3274 = vrot.lane.b32.xlu0 %v3272_v45, %s4183_s20  ;;  %v3297_v14 = vmul.f32 %v4128_v17, %v3295_v36 }
 0xfb5   :  { %3299 = vrot.lane.b32.xlu1 %v3297_v14, %s4183_s20 }
0x1025   :  { %v3275_v40 = vpop.permute.xlu0 %3274 }
0x1026   :  { %v6181_v27 = vadd.f32 %v3275_v40, %v3267_v28 }
0x1027   :  { %v3300_v0 = vpop.permute.xlu1 %3299 }
0x1028   :  { %4129 = vtanh.f32 %v6181_v27  ;;  %v6185_v3 = vadd.f32 %v3300_v0, %v3292_v16 }
0x102a   :  { %4131 = vtanh.f32 %v6185_v3 }
0x1035   :  { %v4130_v58 = vpop.eup %4129 }
0x1036   :  { %3280 = vrot.lane.b32.xlu0 %v4130_v58, %s4184_s28 }
0x1037   :  { %v4132_v11 = vpop.eup %4131 }
0x1038   :  { %3305 = vrot.lane.b32.xlu1 %v4132_v11, %s4184_s28 }
0x10a8   :  { %v3281_v38 = vpop.permute.xlu0 %3280 }
0x10a9   :  { %v3283_v57 = vmul.f32 %v4126_v2, %v3281_v38  ;;  %v2177_v2 = vadd.f32 %v6036_v32, %v5929_v41 }
0x10aa   :  { %v3306_v56 = vpop.permute.xlu1 %3305 }
0x10ab   :  { %3310 = vrot.lane.b32.xlu0 %v3283_v57, %s4183_s20  ;;  %v3308_v24 = vmul.f32 %v4128_v17, %v3306_v56 }
0x10ad   :  { %3315 = vrot.lane.b32.xlu1 %v3308_v24, %s4184_s28 }
0x111d   :  { %v3311_v50 = vpop.permute.xlu0 %3310 }
0x111e   :  { %3313 = vst.msk [vmem:[#allocation4 + $0x20] sm:$0xff] %vm2029_vm1, %v3311_v50 }
0x111f   :  { %v3316_v7 = vpop.permute.xlu1 %3315 }
0x1120   :  { %3318 = vst.msk [vmem:[#allocation4 + $0x18] sm:$0xff] %vm2777_vm2, %v3316_v7  ;;  %v3319_v63 = vsel %vm2029_vm1, %v3311_v50, %v3316_v7 }
0x1121   :  { %3988 = vmatmul.mubr.msk.f32.vlgmr.msra.gmra.mxu1 %vm45_vm0, %v3319_v63 }
0x1122   :  { %3610 = vmatpush1.msra.mxu1 %v5805_v20  ;;  %3657 = vmatprep.mubr.f32.mxu1 %v6333_v42  ;;  %v2474_v42 = vadd.f32 %v5915_v25, %v5925_v61 }
0x1123   :  { %3611 = vmatprep.subr.mxu1 %v5811_v52  ;;  %v2252_v52 = vadd.f32 %v6040_v1, %v5929_v41 }
0x1124   :  { %3612 = vmatpush1.msra.mxu1 %v5818_v23 }
0x1125   :  { %3613 = vmatprep.subr.mxu1 %v5824_v22 }
0x1126   :  { %3614 = vmatpush1.msra.mxu1 %v5831_v31 }
0x1127   :  { %3615 = vmatprep.subr.mxu1 %v5837_v49 }
0x1128   :  { %3616 = vmatpush1.msra.mxu1 %v5843_v48 }
0x1129   :  { %3617 = vmatprep.subr.mxu1 %v5849_v6 }
0x112a   :  { %3618 = vmatpush1.msra.mxu1 %v5855_v26 }
0x112b   :  { %3619 = vmatprep.subr.mxu1 %v5861_v59 }
0x112c   :  { %3620 = vmatpush1.msra.mxu1 %v5867_v33 }
0x112d   :  { %3621 = vmatprep.subr.mxu1 %v5873_v35 }
0x112e   :  { %3622 = vmatpush1.msra.mxu1 %v5879_v9 }
0x112f   :  { %3623 = vmatprep.subr.mxu1 %v5885_v51 }
0x1130   :  { %3624 = vmatpush1.msra.mxu1 %v5891_v54 }
0x11e1   :  { %v3389_v20 = vpop.f32.mrf.mxu1 }
0x11e2   :  { %v3394_v23 = vadd.f32 %v3389_v20, %v2474_v42 }
0x11e3   :  { %v3391_v22 = vpop.f32.mrf.mxu1 }
0x11e4   :  { %4133 = vtanh.f32 %v3394_v23  ;;  %v3419_v31 = vadd.f32 %v3391_v22, %v2252_v52  ;;  %v3989_v6 = vmul.f32 -1.442695, %v3394_v23 }
0x11e6   :  { %4135 = vtanh.f32 %v3419_v31  ;;  %v3990_v26 = vmul.f32 -1.442695, %v3419_v31 }
0x11e7   :  { %4137 = vpow2.f32 %v3989_v6 }
0x11e8   :  { %4139 = vpow2.f32 %v3990_v26 }
0x11f1   :  { %v4134_v49 = vpop.eup %4133 }
0x11f2   :  { %3404 = vrot.lane.b32.xlu0 %v4134_v49, %s4184_s28 }
0x11f3   :  { %v4136_v48 = vpop.eup %4135 }
0x11f4   :  { %3429 = vrot.lane.b32.xlu1 %v4136_v48, %s4184_s28  ;;  %v4138_v59 = vpop.eup %4137 }
0x11f5   :  { %v4140_v33 = vpop.eup %4139  ;;  %v3398_v35 = vadd.f32 1.0, %v4138_v59  ;;  %v2624_v59 = vadd.f32 %v5922_v8, %v5925_v61 }
0x11f6   :  { %v3423_v9 = vadd.f32 1.0, %v4140_v33 }
0x11f7   :  { %4141 = vrcp.f32 %v3398_v35  ;;  %v2102_v35 = vadd.f32 %v6034_v47, %v5929_v41 }
0x11f8   :  { %4143 = vrcp.f32 %v3423_v9 }
0x1204   :  { %v4142_v51 = vpop.eup %4141 }
0x1205   :  { %v4144_v1 = vpop.eup %4143  ;;  %v3402_v30 = vmul.f32 %v4142_v51, %v6181_v27 }
0x1206   :  { %v3427_v43 = vmul.f32 %v4144_v1, %v6185_v3 }
0x1264   :  { %v3405_v54 = vpop.permute.xlu0 %3404 }
0x1265   :  { %v3407_v25 = vmul.f32 %v4142_v51, %v3405_v54 }
0x1266   :  { %v3430_v13 = vpop.permute.xlu1 %3429 }
0x1267   :  { %3409 = vrot.lane.b32.xlu0 %v3407_v25, %s4183_s20  ;;  %v3432_v55 = vmul.f32 %v4144_v1, %v3430_v13 }
0x1269   :  { %3434 = vrot.lane.b32.xlu1 %v3432_v55, %s4183_s20 }
0x12d9   :  { %v3410_v60 = vpop.permute.xlu0 %3409 }
0x12da   :  { %v3412_v46 = vadd.f32 %v3410_v60, %v3402_v30 }
0x12db   :  { %v3435_v19 = vpop.permute.xlu1 %3434 }
0x12dc   :  { %4145 = vtanh.f32 %v3412_v46  ;;  %v3437_v5 = vadd.f32 %v3435_v19, %v3427_v43 }
0x12de   :  { %4147 = vtanh.f32 %v3437_v5 }
0x12e9   :  { %v4146_v21 = vpop.eup %4145 }
0x12ea   :  { %3415 = vrot.lane.b32.xlu0 %v4146_v21, %s4184_s28 }
0x12eb   :  { %v4148_v39 = vpop.eup %4147 }
0x12ec   :  { %3440 = vrot.lane.b32.xlu1 %v4148_v39, %s4184_s28 }
0x135c   :  { %v3416_v34 = vpop.permute.xlu0 %3415 }
0x135d   :  { %v3418_v18 = vmul.f32 %v4142_v51, %v3416_v34 }
0x135e   :  { %v3441_v53 = vpop.permute.xlu1 %3440 }
0x135f   :  { %3445 = vrot.lane.b32.xlu0 %v3418_v18, %s4183_s20  ;;  %v3443_v62 = vmul.f32 %v4144_v1, %v3441_v53 }
0x1361   :  { %3450 = vrot.lane.b32.xlu1 %v3443_v62, %s4184_s28 }
0x13d1   :  { %v3446_v4 = vpop.permute.xlu0 %3445 }
0x13d2   :  { %3448 = vst.msk [vmem:[#allocation4 + $0x28] sm:$0xff] %vm2029_vm1, %v3446_v4 }
0x13d3   :  { %v3451_v10 = vpop.permute.xlu1 %3450 }
0x13d4   :  { %3453 = vst.msk [vmem:[#allocation4 + $0x10] sm:$0xff] %vm2777_vm2, %v3451_v10  ;;  %v3454_v15 = vsel %vm2029_vm1, %v3446_v4, %v3451_v10  ;;  %v3731_v4 = vld [vmem:[%s6319_s1 + $0xbf0] sm:$0xff]  ;;  %v3730_v10 = vld [vmem:[%s6319_s1 + $0xbe0] sm:$0xff] }
0x13d5   :  { %3991 = vmatmul.mubr.msk.f32.vlgmr.msra.gmra.mxu0 %vm45_vm0, %v3454_v15  ;;  %4021 = vmatprep.subr.mxu0 %v3731_v4  ;;  %v3729_v15 = vld [vmem:[%s6319_s1 + $0xbd0] sm:$0xff] }
0x13d6   :  { %4022 = vmatpush3.msra.mxu0 %v3731_v4 }
0x13d7   :  { %4023 = vmatprep.subr.mxu0 %v3730_v10 }
0x13d8   :  { %4024 = vmatpush3.msra.mxu0 %v3730_v10 }
0x13d9   :  { %4025 = vmatprep.subr.mxu0 %v3729_v15 }
0x13da   :  { %4026 = vmatpush3.msra.mxu0 %v3729_v15 }
0x1495   :  { %v3524_v37 = vpop.f32.mrf.mxu0 }
0x1496   :  { %v3529_v29 = vadd.f32 %v3524_v37, %v2549_v44 }
0x1497   :  { %v3526_v45 = vpop.f32.mrf.mxu0 }
0x1498   :  { %4149 = vtanh.f32 %v3529_v29  ;;  %v3554_v17 = vadd.f32 %v3526_v45, %v2177_v2  ;;  %v3992_v28 = vmul.f32 -1.442695, %v3529_v29  ;;  %v3728_v2 = vld [vmem:[%s6319_s1 + $0xbc0] sm:$0xff]  ;;  %v3727_v29 = vld [vmem:[%s6319_s1 + $0xbb0] sm:$0xff] }
0x1499   :  { %4027 = vmatprep.subr.mxu0 %v3728_v2  ;;  %v3726_v45 = vld [vmem:[%s6319_s1 + $0xba0] sm:$0xff] }
0x149a   :  { %4151 = vtanh.f32 %v3554_v17  ;;  %v3993_v40 = vmul.f32 -1.442695, %v3554_v17  ;;  %4028 = vmatpush3.msra.mxu0 %v3728_v2  ;;  %v3725_v17 = vld [vmem:[%s6319_s1 + $0xb90] sm:$0xff] }
0x149b   :  { %4153 = vpow2.f32 %v3992_v28  ;;  %4029 = vmatprep.subr.mxu0 %v3727_v29 }
0x149c   :  { %4155 = vpow2.f32 %v3993_v40  ;;  %4030 = vmatpush3.msra.mxu0 %v3727_v29 }
0x149d   :  { %4031 = vmatprep.subr.mxu0 %v3726_v45 }
0x149e   :  { %4032 = vmatpush3.msra.mxu0 %v3726_v45 }
0x149f   :  { %4033 = vmatprep.subr.mxu0 %v3725_v17 }
0x14a0   :  { %4034 = vmatpush3.msra.mxu0 %v3725_v17 }
0x14a5   :  { %v4150_v36 = vpop.eup %4149 }
0x14a6   :  { %3539 = vrot.lane.b32.xlu0 %v4150_v36, %s4184_s28  ;;  %v3724_v36 = vld [vmem:[%s6319_s1 + $0xb80] sm:$0xff] }
0x14a7   :  { %v4152_v14 = vpop.eup %4151  ;;  %4035 = vmatprep.subr.mxu0 %v3724_v36 }
0x14a8   :  { %3564 = vrot.lane.b32.xlu1 %v4152_v14, %s4184_s28  ;;  %v4154_v12 = vpop.eup %4153  ;;  %4036 = vmatpush3.msra.mxu0 %v3724_v36 }
0x14a9   :  { %v4156_v27 = vpop.eup %4155  ;;  %v3533_v16 = vadd.f32 1.0, %v4154_v12 }
0x14aa   :  { %v3558_v0 = vadd.f32 1.0, %v4156_v27 }
0x14ab   :  { %4157 = vrcp.f32 %v3533_v16 }
0x14ac   :  { %4159 = vrcp.f32 %v3558_v0 }
0x14b8   :  { %v4158_v32 = vpop.eup %4157 }
0x14b9   :  { %v4160_v11 = vpop.eup %4159  ;;  %v3537_v56 = vmul.f32 %v4158_v32, %v3412_v46 }
0x14ba   :  { %v3562_v7 = vmul.f32 %v4160_v11, %v3437_v5 }
0x1518   :  { %v3540_v3 = vpop.permute.xlu0 %3539 }
0x1519   :  { %v3542_v58 = vmul.f32 %v4158_v32, %v3540_v3  ;;  %v3735_v3 = vld [vmem:[#allocation4 + $0x10] sm:$0xff] }
0x151a   :  { %v3565_v38 = vpop.permute.xlu1 %3564 }
0x151b   :  { %3544 = vrot.lane.b32.xlu0 %v3542_v58, %s4183_s20  ;;  %v3567_v57 = vmul.f32 %v4160_v11, %v3565_v38  ;;  %v3736_v58 = vld [vmem:[#allocation4 + $0x18] sm:$0xff]  ;;  %v3738_v38 = vld [vmem:[#allocation4 + $0x28] sm:$0xff] }
0x151d   :  { %3569 = vrot.lane.b32.xlu1 %v3567_v57, %s4183_s20 }
0x158d   :  { %v3545_v24 = vpop.permute.xlu0 %3544 }
0x158e   :  { %v3547_v50 = vadd.f32 %v3545_v24, %v3537_v56  ;;  %v3732_v24 = vld [vmem:[%s6319_s1 + $0xc00] ss:$0 sm:$0xff] }
0x158f   :  { %v3570_v63 = vpop.permute.xlu1 %3569 }
0x1590   :  { %4161 = vtanh.f32 %v3547_v50  ;;  %v3572_v42 = vadd.f32 %v3570_v63, %v3562_v7 }
0x1592   :  { %4163 = vtanh.f32 %v3572_v42 }
0x159d   :  { %v4162_v20 = vpop.eup %4161 }
0x159e   :  { %3550 = vrot.lane.b32.xlu0 %v4162_v20, %s4184_s28 }
0x159f   :  { %v4164_v52 = vpop.eup %4163 }
0x15a0   :  { %3575 = vrot.lane.b32.xlu1 %v4164_v52, %s4184_s28 }
0x1610   :  { %v3551_v23 = vpop.permute.xlu0 %3550 }
0x1611   :  { %v3553_v22 = vmul.f32 %v4158_v32, %v3551_v23 }
0x1612   :  { %v3576_v31 = vpop.permute.xlu1 %3575 }
0x1613   :  { %3580 = vrot.lane.b32.xlu0 %v3553_v22, %s4183_s20  ;;  %v3578_v49 = vmul.f32 %v4160_v11, %v3576_v31  ;;  %v3737_v11 = vld [vmem:[#allocation4 + $0x20] sm:$0xff] }
0x1615   :  { %3585 = vrot.lane.b32.xlu1 %v3578_v49, %s4184_s28 }
0x1685   :  { %v3581_v48 = vpop.permute.xlu0 %3580 }
0x1686   :  { %3583 = vst.msk [vmem:[#allocation4 + $0x30] sm:$0xff] %vm2029_vm1, %v3581_v48 }
0x1687   :  { %v3586_v6 = vpop.permute.xlu1 %3585 }
0x1688   :  { %3588 = vst.msk [vmem:[#allocation4 + $0x8] sm:$0xff] %vm2777_vm2, %v3586_v6  ;;  %v3589_v26 = vsel %vm2029_vm1, %v3581_v48, %v3586_v6 }
0x1689   :  { %3994 = vmatmul.mubr.msk.f32.vlgmr.msra.gmra.mxu1 %vm45_vm0, %v3589_v26 }
0x168d   :  { %v3739_v57 = vld [vmem:[#allocation4 + $0x30] sm:$0xff] }
0x168f   :  { %v3734_v32 = vld [vmem:[#allocation4 + $0x8] sm:$0xff] }
0x1749   :  { %v3659_v33 = vpop.f32.mrf.mxu1 }
0x174a   :  { %v3664_v9 = vadd.f32 %v3659_v33, %v2624_v59 }
0x174b   :  { %v3661_v51 = vpop.f32.mrf.mxu1 }
0x174c   :  { %4165 = vtanh.f32 %v3664_v9  ;;  %v3689_v54 = vadd.f32 %v3661_v51, %v2102_v35  ;;  %v3995_v13 = vmul.f32 -1.442695, %v3664_v9 }
0x174e   :  { %4167 = vtanh.f32 %v3689_v54  ;;  %v3996_v55 = vmul.f32 -1.442695, %v3689_v54 }
0x174f   :  { %4169 = vpow2.f32 %v3995_v13 }
0x1750   :  { %4171 = vpow2.f32 %v3996_v55 }
0x1759   :  { %v4166_v25 = vpop.eup %4165 }
0x175a   :  { %3674 = vrot.lane.b32.xlu1 %v4166_v25, %s4184_s28 }
0x175b   :  { %v4168_v1 = vpop.eup %4167 }
0x175c   :  { %3699 = vrot.lane.b32.xlu0 %v4168_v1, %s4184_s28  ;;  %v4170_v8 = vpop.eup %4169 }
0x175d   :  { %v4172_v61 = vpop.eup %4171  ;;  %v3668_v30 = vadd.f32 1.0, %v4170_v8 }
0x175e   :  { %v3693_v60 = vadd.f32 1.0, %v4172_v61 }
0x175f   :  { %4173 = vrcp.f32 %v3668_v30 }
0x1760   :  { %4175 = vrcp.f32 %v3693_v60 }
0x176c   :  { %v4174_v41 = vpop.eup %4173 }
0x176d   :  { %v4176_v43 = vpop.eup %4175  ;;  %v3672_v21 = vmul.f32 %v4174_v41, %v3547_v50 }
0x176e   :  { %v3697_v18 = vmul.f32 %v4176_v43, %v3572_v42 }
0x17cc   :  { %v3675_v47 = vpop.permute.xlu1 %3674 }
0x17cd   :  { %v3677_v46 = vmul.f32 %v4174_v41, %v3675_v47 }
0x17ce   :  { %v3700_v19 = vpop.permute.xlu0 %3699 }
0x17cf   :  { %3679 = vrot.lane.b32.xlu1 %v3677_v46, %s4183_s20  ;;  %v3702_v5 = vmul.f32 %v4176_v43, %v3700_v19 }
0x17d1   :  { %3704 = vrot.lane.b32.xlu0 %v3702_v5, %s4183_s20 }
0x1841   :  { %v3680_v39 = vpop.permute.xlu1 %3679 }
0x1842   :  { %v3682_v34 = vadd.f32 %v3680_v39, %v3672_v21 }
0x1843   :  { %v3705_v53 = vpop.permute.xlu0 %3704 }
0x1844   :  { %4177 = vtanh.f32 %v3682_v34  ;;  %v3707_v62 = vadd.f32 %v3705_v53, %v3697_v18 }
0x1846   :  { %4179 = vtanh.f32 %v3707_v62 }
0x1851   :  { %v4178_v44 = vpop.eup %4177 }
0x1852   :  { %3685 = vrot.lane.b32.xlu1 %v4178_v44, %s4184_s28 }
0x1853   :  { %v4180_v37 = vpop.eup %4179 }
0x1854   :  { %3710 = vrot.lane.b32.xlu0 %v4180_v37, %s4184_s28 }
0x18c4   :  { %v3686_v14 = vpop.permute.xlu1 %3685 }
0x18c5   :  { %v3688_v28 = vmul.f32 %v4174_v41, %v3686_v14 }
0x18c6   :  { %v3711_v40 = vpop.permute.xlu0 %3710 }
0x18c7   :  { %3715 = vrot.lane.b32.xlu1 %v3688_v28, %s4183_s20  ;;  %v3713_v12 = vmul.f32 %v4176_v43, %v3711_v40 }
0x18c9   :  { %3720 = vrot.lane.b32.xlu0 %v3713_v12, %s4184_s28 }
0x1939   :  { %v3716_v27 = vpop.permute.xlu1 %3715 }
0x193a   :  { %3718 = vst.msk [vmem:[#allocation4 + $0x38] sm:$0xff] %vm2029_vm1, %v3716_v27 }
0x193b   :  { %v3721_v16 = vpop.permute.xlu0 %3720 }
0x193c   :  { %3723 = vst.msk [vmem:[#allocation4] sm:$0xff] %vm2777_vm2, %v3721_v16 }
0x1941   :  { %v3740_v56 = vld [vmem:[#allocation4 + $0x38] sm:$0xff] }
0x1943   :  { %v3733_v0 = vld [vmem:[#allocation4] sm:$0xff] }
0x1944   :  { %4037 = vmatprep.mubr.msk.f32.mxu0 %vm45_vm0, %v3733_v0 }
0x1945   :  { %4038 = vmatmul.mubr.msk.f32.vlgmr.msra.gmra.mxu0 %vm45_vm0, %v3734_v32 }
0x1946   :  { %4040 = vmatprep.mubr.msk.f32.mxu0 %vm45_vm0, %v3735_v3 }
0x1949   :  { %4041 = vmatmul.mubr.msk.f32.gmra.mxu0 %vm45_vm0, %v3736_v58 }
0x194a   :  { %4043 = vmatprep.mubr.msk.f32.mxu0 %vm45_vm0, %v3737_v11 }
0x194d   :  { %4044 = vmatmul.mubr.msk.f32.gmra.mxu0 %vm45_vm0, %v3738_v38 }
0x194e   :  { %4046 = vmatprep.mubr.msk.f32.mxu0 %vm45_vm0, %v3739_v57 }
0x1951   :  { %4047 = vmatmul.mubr.msk.f32.gmra.mxu0 %vm45_vm0, %v3740_v56 }
0x1a05   :  { %v4039_v50 = vpop.f32.mrf.mxu0 }
0x1a06   :  { %v3837_v7 = vadd.f32 %v4039_v50, %v3732_v24 }
0x1a07   :  { %v3831_v63 = vpop.f32.mrf.mxu0 }
0x1a08   :  { %3871 = vst [vmem:[%s6321_s2 + $0x8] sm:$0xff] %v3837_v7  ;;  %v3832_v42 = vadd.f32 %v3831_v63, %v3732_v24 }
0x1a09   :  { %v4042_v20 = vpop.f32.mrf.mxu0 }
0x1a0a   :  { %3870 = vst [vmem:[%s6321_s2] sm:$0xff] %v3832_v42  ;;  %v3847_v52 = vadd.f32 %v4042_v20, %v3732_v24 }
0x1a0b   :  { %v3841_v23 = vpop.f32.mrf.mxu0 }
0x1a0c   :  { %3873 = vst [vmem:[%s6321_s2 + $0x18] sm:$0xff] %v3847_v52  ;;  %v3842_v22 = vadd.f32 %v3841_v23, %v3732_v24 }
0x1a0d   :  { %v4045_v31 = vpop.f32.mrf.mxu0 }
0x1a0e   :  { %3872 = vst [vmem:[%s6321_s2 + $0x10] sm:$0xff] %v3842_v22  ;;  %v3857_v49 = vadd.f32 %v4045_v31, %v3732_v24 }
0x1a0f   :  { %v3851_v48 = vpop.f32.mrf.mxu0 }
0x1a10   :  { %3875 = vst [vmem:[%s6321_s2 + $0x28] sm:$0xff] %v3857_v49  ;;  %v3852_v6 = vadd.f32 %v3851_v48, %v3732_v24 }
0x1a11   :  { %v4048_v26 = vpop.f32.mrf.mxu0 }
0x1a12   :  { %3874 = vst [vmem:[%s6321_s2 + $0x20] sm:$0xff] %v3852_v6  ;;  %v3867_v59 = vadd.f32 %v4048_v26, %v3732_v24 }
0x1a13   :  { %v3861_v33 = vpop.f32.mrf.mxu0 }
0x1a14   :  { %3877 = vst [vmem:[%s6321_s2 + $0x38] sm:$0xff] %v3867_v59  ;;  %v3862_v35 = vadd.f32 %v3861_v33, %v3732_v24 }
0x1a16   :  { %3876 = vst [vmem:[%s6321_s2 + $0x30] sm:$0xff] %v3862_v35 }

</bundles_post_ra>
